<compile_context>
chip_gen: v6e
topology: v6e:2x2x1
jax: 0.10.0
libtpu: 0.0.40
codegen_flags: <defaults>
</compile_context>

<pallas_src>
import functools

import numpy as np
import jax
import jax.numpy as jnp
from jax import lax
from jax.experimental import pallas as pl
from jax.experimental.pallas import tpu as pltpu


_TL_MAX = 256                      # output-time rows per tile (v5e/v6e can use 512)
_LRELU_SLOPE = 0.1
_VMEM_LIMIT = 48 * 1024 * 1024     # fits v7x 64 MiB physical VMEM with headroom


def _round_up(v, m):
    return ((v + m - 1) // m) * m


# ----------------------------- Pallas kernel --------------------------------
def _conv1d_kernel(*refs, stride, ksize, tl, tl_in, halo_c,
                   use_halo, stage, cin1, apply_lrelu):
    """One (batch, time-tile) grid step.

    Ref order: x_main, [x_halo], w, b, out, [act], [stage scratch].
      x_main : (tl_in, Cin)        input rows of this tile (bf16 act or f32)
      x_halo : (halo_c, Cin)       first rows of the following tile
      w      : (K*Cin, Cout_pad)   packed weight (bf16 for Cin>1), VMEM-resident
      b      : (1, Cout_pad)       bias (f32), VMEM-resident
      out    : (tl, Cout_pad)      conv output tile
      act    : (tl, Cout_pad)      LeakyReLU output tile
      stage  : VMEM (tl_in+halo_c, Cin) f32 staging scratch
    """
    it = iter(refs)
    x_ref = next(it)
    xn_ref = next(it) if use_halo else None
    w_ref = next(it)
    b_ref = next(it)
    out_ref = next(it)
    act_ref = next(it) if apply_lrelu else None
    src_ref = next(it) if stage else None

    if stage:
        # Stage the (possibly bf16) tile + halo rows into one f32 scratch so every
        # tap below is a plain (optionally strided) sublane read on 32-bit data.
        src_ref[pl.ds(0, tl_in), :] = x_ref[...].astype(jnp.float32)
        if use_halo:
            src_ref[pl.ds(tl_in, halo_c), :] = xn_ref[...].astype(jnp.float32)
        src = src_ref
    else:
        src = x_ref

    def tap(k):
        if stride == 1:
            return src[pl.ds(k, tl), :]
        return src[pl.ds(k, tl, stride=stride), :]

    co = out_ref.shape[-1]
    if cin1:
        # Cin == 1 (first conv / AvgPool): rank-1 taps would waste the MXU; use K
        # scaled lane-broadcast multiply-adds on the VPU (exact f32).
        acc = jnp.zeros((tl, co), jnp.float32)
        for k in range(ksize):
            acc = acc + tap(k).astype(jnp.float32) * w_ref[pl.ds(k, 1), :]
    else:
        # Fuse all K taps into one (tl, K*Cin) x (K*Cin, Cout) bf16 matmul with f32
        # accumulation: no VMEM accumulator read-modify-write per tap.
        xcol = jnp.concatenate(
            [tap(k).astype(jnp.bfloat16) for k in range(ksize)], axis=-1)
        acc = jnp.dot(xcol, w_ref[...], preferred_element_type=jnp.float32)

    acc = acc + b_ref[...]
    out_ref[...] = acc.astype(out_ref.dtype)
    if apply_lrelu:
        act_ref[...] = jnp.where(acc >= 0.0, acc,
                                 _LRELU_SLOPE * acc).astype(act_ref.dtype)


# ------------------------------ conv wrapper ---------------------------------
def conv1d_pallas(x_blc, w_packed, b_packed, *, cin, cout, ksize, stride, padding,
                  apply_lrelu, out_dtype=jnp.bfloat16, act_dtype=jnp.bfloat16):
    """Conv1d (+ optional fused LeakyReLU second output) via a tiled Pallas kernel.

    x_blc    : (B, L, Cin) activations (time = sublane, channel = lane)
    w_packed : (K*Cin, Cout_pad) packed weight (bf16 for Cin>1, f32 for Cin==1)
    b_packed : (1, Cout_pad) float32 bias
    Returns conv_out and, if apply_lrelu, act_out, each (B, Lout, Cout).
    """
    B, L, _ = x_blc.shape
    cout_pad = w_packed.shape[1]
    l_out = (L + 2 * padding - ksize) // stride + 1
    assert l_out > 0, (L, ksize, stride, padding)

    # Only the conv's own zero padding is materialised; block/halo overhang past the
    # end of the padded array is handled by Pallas partial edge blocks (those rows
    # only ever feed output rows >= l_out, which are dropped by the partial write).
    if padding:
        x_blc = jnp.pad(x_blc, ((0, 0), (padding, padding), (0, 0)))
    p_len = L + 2 * padding

    if l_out <= _TL_MAX:
        n_t, tl = 1, l_out
        tl_in = p_len
        use_halo, halo_c = False, 0
    else:
        tl = _TL_MAX
        n_t = pl.cdiv(l_out, tl)
        tl_in = tl * stride
        halo = max(ksize - stride, 0)
        halo_c = _round_up(halo, 8) if halo > 0 else 0
        use_halo = halo_c > 0

    cin1 = (cin == 1)
    stage = use_halo or not cin1

    inputs = [x_blc]
    in_specs = [pl.BlockSpec((None, tl_in, cin), lambda b, t: (b, t, 0))]
    if use_halo:
        # Fetch only halo_c (8/16) rows of the following tile instead of the whole
        # next block.  tl_in is a multiple of halo_c for every layer config.  The
        # block index is clamped so it never starts out of bounds; when the clamp
        # kicks in, those rows only feed dropped (>= l_out) output rows.
        r = tl_in // halo_c
        hblk_max = pl.cdiv(p_len, halo_c) - 1
        inputs.append(x_blc)
        in_specs.append(pl.BlockSpec(
            (None, halo_c, cin),
            lambda b, t: (b, jnp.minimum((t + 1) * r, hblk_max), 0)))
    inputs += [w_packed, b_packed]
    # Constant index maps -> weight/bias DMA'd once, VMEM-resident for the grid.
    in_specs += [
        pl.BlockSpec((ksize * cin, cout_pad), lambda b, t: (0, 0)),
        pl.BlockSpec((1, cout_pad), lambda b, t: (0, 0)),
    ]

    out_shapes = [jax.ShapeDtypeStruct((B, l_out, cout_pad), out_dtype)]
    out_specs = [pl.BlockSpec((None, tl, cout_pad), lambda b, t: (b, t, 0))]
    if apply_lrelu:
        out_shapes.append(jax.ShapeDtypeStruct((B, l_out, cout_pad), act_dtype))
        out_specs.append(pl.BlockSpec((None, tl, cout_pad), lambda b, t: (b, t, 0)))

    scratch = []
    if stage:
        scratch.append(pltpu.VMEM((tl_in + halo_c, cin), jnp.float32))

    kern = functools.partial(
        _conv1d_kernel, stride=stride, ksize=ksize, tl=tl, tl_in=tl_in,
        halo_c=halo_c, use_halo=use_halo, stage=stage, cin1=cin1,
        apply_lrelu=apply_lrelu)

    outs = pl.pallas_call(
        kern,
        grid=(B, n_t),
        in_specs=in_specs,
        out_specs=tuple(out_specs),
        out_shape=tuple(out_shapes),
        scratch_shapes=scratch,
        compiler_params=pltpu.CompilerParams(
            dimension_semantics=("parallel", "parallel"),
            vmem_limit_bytes=_VMEM_LIMIT),
    )(*inputs)

    conv = outs[0]
    if cout_pad != cout:
        conv = conv[:, :, :cout]
    if apply_lrelu:
        return conv, outs[1]
    return conv


# ------------------------------ model glue -----------------------------------
def _pack_conv(w_oik, b_o):
    """PyTorch Conv1d weight (Cout, Cin, K) -> kernel layout (K*Cin, Cout_pad)."""
    c_out, c_in, k = w_oik.shape
    c_out_pad = _round_up(c_out, 128)
    w = jnp.transpose(w_oik, (2, 1, 0)).reshape(k * c_in, c_out)
    if c_out_pad != c_out:
        w = jnp.pad(w, ((0, 0), (0, c_out_pad - c_out)))
    b = jnp.pad(b_o, (0, c_out_pad - c_out)).reshape(1, c_out_pad).astype(jnp.float32)
    w = w.astype(jnp.bfloat16 if c_in > 1 else jnp.float32)
    return w, b


def pack_layer(layer):
    c_out, c_in, k = layer["w"].shape
    w, b = _pack_conv(layer["w"], layer["b"])
    return dict(w=w, b=b, cin=c_in, cout=c_out, k=k,
                stride=layer["stride"], padding=layer["padding"], lrelu=layer["lrelu"])


# AvgPool1d(4, 2, padding=2, count_include_pad default) == conv with 0.25 taps.
_POOL_W_RAW = np.full((1, 1, 4), 0.25, np.float32)
_POOL_B_RAW = np.zeros((1,), np.float32)


def make_pool_params():
    w, b = _pack_conv(jnp.asarray(_POOL_W_RAW), jnp.asarray(_POOL_B_RAW))
    return dict(w=w, b=b)


def avg_pool_pallas(x_bl1, pool_params):
    return conv1d_pallas(x_bl1, pool_params["w"], pool_params["b"],
                         cin=1, cout=1, ksize=4, stride=2, padding=2,
                         apply_lrelu=False, out_dtype=jnp.float32)


def scale_discriminator_forward(x_bl1, packed_layers):
    """Returns the 15 per-layer features in kernel layout (B, L, C)."""
    feats = []
    h = x_bl1
    for lyr in packed_layers:
        if lyr["lrelu"]:
            conv, act = conv1d_pallas(
                h, lyr["w"], lyr["b"], cin=lyr["cin"], cout=lyr["cout"], ksize=lyr["k"],
                stride=lyr["stride"], padding=lyr["padding"], apply_lrelu=True)
            feats.append(conv)   # Conv1d output
            feats.append(act)    # LeakyReLU output (also next layer's input, bf16)
            h = act
        else:
            conv = conv1d_pallas(
                h, lyr["w"], lyr["b"], cin=lyr["cin"], cout=lyr["cout"], ksize=lyr["k"],
                stride=lyr["stride"], padding=lyr["padding"], apply_lrelu=False)
            feats.append(conv)
            h = conv
    return feats


def multi_scale_discriminator_forward(x_bct, all_packed, pool_params):
    """x_bct: (B, 1, T) PyTorch NCL waveform.  Returns a list (per scale) of 15
    feature maps each, kept in (B, L, C) kernel layout."""
    x = jnp.transpose(x_bct, (0, 2, 1))     # single tiny transpose of the waveform
    results = []
    for i, disc in enumerate(all_packed):
        if i > 0:
            x = avg_pool_pallas(x, pool_params)
        results.append(scale_discriminator_forward(x, disc))
    return results


# ------------------------- deterministic parameters --------------------------
def init_scale_discriminator(key):
    channels = [128, 128, 256, 512, 1024, 1024, 1024]
    kernels = [15, 3, 3, 3, 3, 3, 3]
    strides = [1, 2, 2, 4, 4, 1, 1]
    paddings = [7, 6, 6, 18, 18, 0, 0]
    layers = []
    in_ch = 1
    for ch, k, s, p in zip(channels, kernels, strides, paddings):
        key, kw, kb = jax.random.split(key, 3)
        bound = 1.0 / float(np.sqrt(in_ch * k))
        w = jax.random.uniform(kw, (ch, in_ch, k), jnp.float32, -bound, bound)
        b = jax.random.uniform(kb, (ch,), jnp.float32, -bound, bound)
        layers.append(dict(w=w, b=b, stride=s, padding=p, lrelu=True))
        in_ch = ch
    key, kw, kb = jax.random.split(key, 3)
    bound = 1.0 / float(np.sqrt(in_ch * 3))
    w = jax.random.uniform(kw, (1, in_ch, 3), jnp.float32, -bound, bound)
    b = jax.random.uniform(kb, (1,), jnp.float32, -bound, bound)
    layers.append(dict(w=w, b=b, stride=1, padding=1, lrelu=False))
    return layers


# ------------------------------ pure-JAX reference ---------------------------
def _conv1d_ref(x_bct, w, b, stride, padding, quantize):
    if quantize:   # mirror the kernel's bf16 MXU operands (accumulation stays f32)
        x_bct = x_bct.astype(jnp.bfloat16).astype(jnp.float32)
        w = w.astype(jnp.bfloat16).astype(jnp.float32)
    out = lax.conv_general_dilated(
        x_bct, w, window_strides=(stride,), padding=[(padding, padding)],
        dimension_numbers=("NCH", "OIH", "NCH"), precision=lax.Precision.HIGHEST)
    return out + b[None, :, None]


def multi_scale_ref(x_bct, all_raw):
    pool_w = jnp.asarray(_POOL_W_RAW)
    pool_b = jnp.asarray(_POOL_B_RAW)
    results = []
    x = x_bct
    for i, disc in enumerate(all_raw):
        if i > 0:
            x = _conv1d_ref(x, pool_w, pool_b, 2, 2, quantize=False)
        feats = []
        h = x
        for layer in disc:
            c_in = layer["w"].shape[1]
            conv = _conv1d_ref(h, layer["w"], layer["b"], layer["stride"],
                               layer["padding"], quantize=(c_in > 1))
            feats.append(conv)
            if layer["lrelu"]:
                act = jnp.where(conv >= 0, conv, _LRELU_SLOPE * conv)
                feats.append(act)
                h = act
            else:
                h = conv
        results.append(feats)
    return results


# ----------------------------------- main -------------------------------------
if __name__ == "__main__":
    key = jax.random.PRNGKey(0)
    k_in, k0, k1, k2 = jax.random.split(key, 4)

    # long enough to exercise the time-tiled halo path and the strided no-halo path
    B, T = 2, 4000
    x = jax.random.normal(k_in, (B, 1, T), jnp.float32)   # PyTorch (B, 1, T) layout

    raw_params = [init_scale_discriminator(k) for k in (k0, k1, k2)]
    packed_params = [[pack_layer(l) for l in d] for d in raw_params]
    pool_params = make_pool_params()

    results = multi_scale_discriminator_forward(x, packed_params, pool_params)
    results = jax.block_until_ready(results)

    # correctness check vs. a pure-JAX reference (mirrors the bf16 MXU-operand rounding)
    ref = multi_scale_ref(x, raw_params)
    for feats, rfeats in zip(results, ref):
        assert len(feats) == 15, len(feats)
        for f, rf in zip(feats, rfeats):
            rf_t = jnp.transpose(rf, (0, 2, 1))   # ref is NCL, kernel features are NLC
            assert f.shape == rf_t.shape, (f.shape, rf_t.shape)
            np.testing.assert_allclose(np.asarray(f).astype(np.float32),
                                       np.asarray(rf_t), rtol=2e-2, atol=2e-2)

    print("KERNEL_OK")
</pallas_src>

<mosaic_0001>
module attributes {stable_mosaic.version = 11 : i64} {
  func.func @_conv1d_kernel(%arg0: i32, %arg1: i32, %arg2: memref<1x256x1xf32, #tpu.memory_space<vmem>>, %arg3: memref<1x16x1xf32, #tpu.memory_space<vmem>>, %arg4: memref<15x128xf32, #tpu.memory_space<vmem>>, %arg5: memref<1x128xf32, #tpu.memory_space<vmem>>, %arg6: memref<1x256x128xbf16, #tpu.memory_space<vmem>>, %arg7: memref<1x256x128xbf16, #tpu.memory_space<vmem>>, %arg8: memref<272x1xf32, #tpu.memory_space<vmem>>) attributes {dimension_semantics = [#tpu.dimension_semantics<parallel>, #tpu.dimension_semantics<parallel>], iteration_bounds = array<i64: 2, 16>, scalar_prefetch = 0 : i64, scratch_operands = 1 : i64, tpu.core_type = #tpu.core_type<tc>, window_params = [{transform_indices = @transform_0, window_bounds = array<i64: 1, 256, 1>}, {transform_indices = @transform_1, window_bounds = array<i64: 1, 16, 1>}, {pipeline_mode = #tpu.pipeline_mode<synchronous>, transform_indices = @transform_2, window_bounds = array<i64: 15, 128>}, {pipeline_mode = #tpu.pipeline_mode<synchronous>, transform_indices = @transform_3, window_bounds = array<i64: 1, 128>}, {transform_indices = @transform_4, window_bounds = array<i64: 1, 256, 128>}, {transform_indices = @transform_5, window_bounds = array<i64: 1, 256, 128>}]} {
    %c0 = arith.constant 0 : index
    %c0_0 = arith.constant 0 : index
    %c0_1 = arith.constant 0 : index
    %0 = vector.load %arg2[%c0, %c0_0, %c0_1] : memref<1x256x1xf32, #tpu.memory_space<vmem>>, vector<1x256x1xf32>
    %1 = vector.shape_cast %0 : vector<1x256x1xf32> to vector<256x1xf32>
    %c0_2 = arith.constant 0 : index
    %c0_3 = arith.constant 0 : index
    %2 = vector.load %arg8[%c0_2, %c0_3] : memref<272x1xf32, #tpu.memory_space<vmem>>, vector<256x1xf32>
    tpu.vector_store %arg8[%c0_2, %c0_3], %1 {strides = array<i32>} : memref<272x1xf32, #tpu.memory_space<vmem>>, vector<256x1xf32>,
    %c0_4 = arith.constant 0 : index
    %c0_5 = arith.constant 0 : index
    %c0_6 = arith.constant 0 : index
    %3 = vector.load %arg3[%c0_4, %c0_5, %c0_6] : memref<1x16x1xf32, #tpu.memory_space<vmem>>, vector<1x16x1xf32>
    %4 = vector.shape_cast %3 : vector<1x16x1xf32> to vector<16x1xf32>
    %c256 = arith.constant 256 : index
    %c0_7 = arith.constant 0 : index
    %5 = vector.load %arg8[%c256, %c0_7] : memref<272x1xf32, #tpu.memory_space<vmem>>, vector<16x1xf32>
    tpu.vector_store %arg8[%c256, %c0_7], %4 {strides = array<i32>} : memref<272x1xf32, #tpu.memory_space<vmem>>, vector<16x1xf32>,
    %cst = arith.constant 0.000000e+00 : f32
    %6 = vector.broadcast %cst : f32 to vector<256x128xf32>
    %c0_8 = arith.constant 0 : index
    %c0_9 = arith.constant 0 : index
    %7 = vector.load %arg8[%c0_8, %c0_9] : memref<272x1xf32, #tpu.memory_space<vmem>>, vector<256x1xf32>
    %c0_10 = arith.constant 0 : index
    %c0_11 = arith.constant 0 : index
    %8 = vector.load %arg4[%c0_10, %c0_11] : memref<15x128xf32, #tpu.memory_space<vmem>>, vector<1x128xf32>
    %9 = vector.broadcast %7 : vector<256x1xf32> to vector<256x128xf32>
    %10 = vector.broadcast %8 : vector<1x128xf32> to vector<256x128xf32>
    %11 = arith.mulf %9, %10 : vector<256x128xf32>
    %12 = arith.addf %6, %11 : vector<256x128xf32>
    %c1 = arith.constant 1 : index
    %c0_12 = arith.constant 0 : index
    %13 = vector.load %arg8[%c1, %c0_12] : memref<272x1xf32, #tpu.memory_space<vmem>>, vector<256x1xf32>
    %c1_13 = arith.constant 1 : index
    %c0_14 = arith.constant 0 : index
    %14 = vector.load %arg4[%c1_13, %c0_14] : memref<15x128xf32, #tpu.memory_space<vmem>>, vector<1x128xf32>
    %15 = vector.broadcast %13 : vector<256x1xf32> to vector<256x128xf32>
    %16 = vector.broadcast %14 : vector<1x128xf32> to vector<256x128xf32>
    %17 = arith.mulf %15, %16 : vector<256x128xf32>
    %18 = arith.addf %12, %17 : vector<256x128xf32>
    %c2 = arith.constant 2 : index
    %c0_15 = arith.constant 0 : index
    %19 = vector.load %arg8[%c2, %c0_15] : memref<272x1xf32, #tpu.memory_space<vmem>>, vector<256x1xf32>
    %c2_16 = arith.constant 2 : index
    %c0_17 = arith.constant 0 : index
    %20 = vector.load %arg4[%c2_16, %c0_17] : memref<15x128xf32, #tpu.memory_space<vmem>>, vector<1x128xf32>
    %21 = vector.broadcast %19 : vector<256x1xf32> to vector<256x128xf32>
    %22 = vector.broadcast %20 : vector<1x128xf32> to vector<256x128xf32>
    %23 = arith.mulf %21, %22 : vector<256x128xf32>
    %24 = arith.addf %18, %23 : vector<256x128xf32>
    %c3 = arith.constant 3 : index
    %c0_18 = arith.constant 0 : index
    %25 = vector.load %arg8[%c3, %c0_18] : memref<272x1xf32, #tpu.memory_space<vmem>>, vector<256x1xf32>
    %c3_19 = arith.constant 3 : index
    %c0_20 = arith.constant 0 : index
    %26 = vector.load %arg4[%c3_19, %c0_20] : memref<15x128xf32, #tpu.memory_space<vmem>>, vector<1x128xf32>
    %27 = vector.broadcast %25 : vector<256x1xf32> to vector<256x128xf32>
    %28 = vector.broadcast %26 : vector<1x128xf32> to vector<256x128xf32>
    %29 = arith.mulf %27, %28 : vector<256x128xf32>
    %30 = arith.addf %24, %29 : vector<256x128xf32>
    %c4 = arith.constant 4 : index
    %c0_21 = arith.constant 0 : index
    %31 = vector.load %arg8[%c4, %c0_21] : memref<272x1xf32, #tpu.memory_space<vmem>>, vector<256x1xf32>
    %c4_22 = arith.constant 4 : index
    %c0_23 = arith.constant 0 : index
    %32 = vector.load %arg4[%c4_22, %c0_23] : memref<15x128xf32, #tpu.memory_space<vmem>>, vector<1x128xf32>
    %33 = vector.broadcast %31 : vector<256x1xf32> to vector<256x128xf32>
    %34 = vector.broadcast %32 : vector<1x128xf32> to vector<256x128xf32>
    %35 = arith.mulf %33, %34 : vector<256x128xf32>
    %36 = arith.addf %30, %35 : vector<256x128xf32>
    %c5 = arith.constant 5 : index
    %c0_24 = arith.constant 0 : index
    %37 = vector.load %arg8[%c5, %c0_24] : memref<272x1xf32, #tpu.memory_space<vmem>>, vector<256x1xf32>
    %c5_25 = arith.constant 5 : index
    %c0_26 = arith.constant 0 : index
    %38 = vector.load %arg4[%c5_25, %c0_26] : memref<15x128xf32, #tpu.memory_space<vmem>>, vector<1x128xf32>
    %39 = vector.broadcast %37 : vector<256x1xf32> to vector<256x128xf32>
    %40 = vector.broadcast %38 : vector<1x128xf32> to vector<256x128xf32>
    %41 = arith.mulf %39, %40 : vector<256x128xf32>
    %42 = arith.addf %36, %41 : vector<256x128xf32>
    %c6 = arith.constant 6 : index
    %c0_27 = arith.constant 0 : index
    %43 = vector.load %arg8[%c6, %c0_27] : memref<272x1xf32, #tpu.memory_space<vmem>>, vector<256x1xf32>
    %c6_28 = arith.constant 6 : index
    %c0_29 = arith.constant 0 : index
    %44 = vector.load %arg4[%c6_28, %c0_29] : memref<15x128xf32, #tpu.memory_space<vmem>>, vector<1x128xf32>
    %45 = vector.broadcast %43 : vector<256x1xf32> to vector<256x128xf32>
    %46 = vector.broadcast %44 : vector<1x128xf32> to vector<256x128xf32>
    %47 = arith.mulf %45, %46 : vector<256x128xf32>
    %48 = arith.addf %42, %47 : vector<256x128xf32>
    %c7 = arith.constant 7 : index
    %c0_30 = arith.constant 0 : index
    %49 = vector.load %arg8[%c7, %c0_30] : memref<272x1xf32, #tpu.memory_space<vmem>>, vector<256x1xf32>
    %c7_31 = arith.constant 7 : index
    %c0_32 = arith.constant 0 : index
    %50 = vector.load %arg4[%c7_31, %c0_32] : memref<15x128xf32, #tpu.memory_space<vmem>>, vector<1x128xf32>
    %51 = vector.broadcast %49 : vector<256x1xf32> to vector<256x128xf32>
    %52 = vector.broadcast %50 : vector<1x128xf32> to vector<256x128xf32>
    %53 = arith.mulf %51, %52 : vector<256x128xf32>
    %54 = arith.addf %48, %53 : vector<256x128xf32>
    %c8 = arith.constant 8 : index
    %c0_33 = arith.constant 0 : index
    %55 = vector.load %arg8[%c8, %c0_33] : memref<272x1xf32, #tpu.memory_space<vmem>>, vector<256x1xf32>
    %c8_34 = arith.constant 8 : index
    %c0_35 = arith.constant 0 : index
    %56 = vector.load %arg4[%c8_34, %c0_35] : memref<15x128xf32, #tpu.memory_space<vmem>>, vector<1x128xf32>
    %57 = vector.broadcast %55 : vector<256x1xf32> to vector<256x128xf32>
    %58 = vector.broadcast %56 : vector<1x128xf32> to vector<256x128xf32>
    %59 = arith.mulf %57, %58 : vector<256x128xf32>
    %60 = arith.addf %54, %59 : vector<256x128xf32>
    %c9 = arith.constant 9 : index
    %c0_36 = arith.constant 0 : index
    %61 = vector.load %arg8[%c9, %c0_36] : memref<272x1xf32, #tpu.memory_space<vmem>>, vector<256x1xf32>
    %c9_37 = arith.constant 9 : index
    %c0_38 = arith.constant 0 : index
    %62 = vector.load %arg4[%c9_37, %c0_38] : memref<15x128xf32, #tpu.memory_space<vmem>>, vector<1x128xf32>
    %63 = vector.broadcast %61 : vector<256x1xf32> to vector<256x128xf32>
    %64 = vector.broadcast %62 : vector<1x128xf32> to vector<256x128xf32>
    %65 = arith.mulf %63, %64 : vector<256x128xf32>
    %66 = arith.addf %60, %65 : vector<256x128xf32>
    %c10 = arith.constant 10 : index
    %c0_39 = arith.constant 0 : index
    %67 = vector.load %arg8[%c10, %c0_39] : memref<272x1xf32, #tpu.memory_space<vmem>>, vector<256x1xf32>
    %c10_40 = arith.constant 10 : index
    %c0_41 = arith.constant 0 : index
    %68 = vector.load %arg4[%c10_40, %c0_41] : memref<15x128xf32, #tpu.memory_space<vmem>>, vector<1x128xf32>
    %69 = vector.broadcast %67 : vector<256x1xf32> to vector<256x128xf32>
    %70 = vector.broadcast %68 : vector<1x128xf32> to vector<256x128xf32>
    %71 = arith.mulf %69, %70 : vector<256x128xf32>
    %72 = arith.addf %66, %71 : vector<256x128xf32>
    %c11 = arith.constant 11 : index
    %c0_42 = arith.constant 0 : index
    %73 = vector.load %arg8[%c11, %c0_42] : memref<272x1xf32, #tpu.memory_space<vmem>>, vector<256x1xf32>
    %c11_43 = arith.constant 11 : index
    %c0_44 = arith.constant 0 : index
    %74 = vector.load %arg4[%c11_43, %c0_44] : memref<15x128xf32, #tpu.memory_space<vmem>>, vector<1x128xf32>
    %75 = vector.broadcast %73 : vector<256x1xf32> to vector<256x128xf32>
    %76 = vector.broadcast %74 : vector<1x128xf32> to vector<256x128xf32>
    %77 = arith.mulf %75, %76 : vector<256x128xf32>
    %78 = arith.addf %72, %77 : vector<256x128xf32>
    %c12 = arith.constant 12 : index
    %c0_45 = arith.constant 0 : index
    %79 = vector.load %arg8[%c12, %c0_45] : memref<272x1xf32, #tpu.memory_space<vmem>>, vector<256x1xf32>
    %c12_46 = arith.constant 12 : index
    %c0_47 = arith.constant 0 : index
    %80 = vector.load %arg4[%c12_46, %c0_47] : memref<15x128xf32, #tpu.memory_space<vmem>>, vector<1x128xf32>
    %81 = vector.broadcast %79 : vector<256x1xf32> to vector<256x128xf32>
    %82 = vector.broadcast %80 : vector<1x128xf32> to vector<256x128xf32>
    %83 = arith.mulf %81, %82 : vector<256x128xf32>
    %84 = arith.addf %78, %83 : vector<256x128xf32>
    %c13 = arith.constant 13 : index
    %c0_48 = arith.constant 0 : index
    %85 = vector.load %arg8[%c13, %c0_48] : memref<272x1xf32, #tpu.memory_space<vmem>>, vector<256x1xf32>
    %c13_49 = arith.constant 13 : index
    %c0_50 = arith.constant 0 : index
    %86 = vector.load %arg4[%c13_49, %c0_50] : memref<15x128xf32, #tpu.memory_space<vmem>>, vector<1x128xf32>
    %87 = vector.broadcast %85 : vector<256x1xf32> to vector<256x128xf32>
    %88 = vector.broadcast %86 : vector<1x128xf32> to vector<256x128xf32>
    %89 = arith.mulf %87, %88 : vector<256x128xf32>
    %90 = arith.addf %84, %89 : vector<256x128xf32>
    %c14 = arith.constant 14 : index
    %c0_51 = arith.constant 0 : index
    %91 = vector.load %arg8[%c14, %c0_51] : memref<272x1xf32, #tpu.memory_space<vmem>>, vector<256x1xf32>
    %c14_52 = arith.constant 14 : index
    %c0_53 = arith.constant 0 : index
    %92 = vector.load %arg4[%c14_52, %c0_53] : memref<15x128xf32, #tpu.memory_space<vmem>>, vector<1x128xf32>
    %93 = vector.broadcast %91 : vector<256x1xf32> to vector<256x128xf32>
    %94 = vector.broadcast %92 : vector<1x128xf32> to vector<256x128xf32>
    %95 = arith.mulf %93, %94 : vector<256x128xf32>
    %96 = arith.addf %90, %95 : vector<256x128xf32>
    %c0_54 = arith.constant 0 : index
    %c0_55 = arith.constant 0 : index
    %97 = vector.load %arg5[%c0_54, %c0_55] : memref<1x128xf32, #tpu.memory_space<vmem>>, vector<1x128xf32>
    %98 = vector.broadcast %97 : vector<1x128xf32> to vector<256x128xf32>
    %99 = arith.addf %96, %98 : vector<256x128xf32>
    %100 = arith.truncf %99 : vector<256x128xf32> to vector<256x128xbf16>
    %c0_56 = arith.constant 0 : index
    %c0_57 = arith.constant 0 : index
    %c0_58 = arith.constant 0 : index
    %101 = vector.load %arg6[%c0_56, %c0_57, %c0_58] : memref<1x256x128xbf16, #tpu.memory_space<vmem>>, vector<1x256x128xbf16>
    %102 = vector.shape_cast %101 : vector<1x256x128xbf16> to vector<256x128xbf16>
    %103 = vector.shape_cast %100 : vector<256x128xbf16> to vector<1x256x128xbf16>
    tpu.vector_store %arg6[%c0_56, %c0_57, %c0_58], %103 {strides = array<i32>} : memref<1x256x128xbf16, #tpu.memory_space<vmem>>, vector<1x256x128xbf16>,
    %cst_59 = arith.constant 0.000000e+00 : f32
    %104 = vector.broadcast %cst_59 : f32 to vector<256x128xf32>
    %105 = arith.cmpf oge, %99, %104 : vector<256x128xf32>
    %cst_60 = arith.constant 1.000000e-01 : f32
    %106 = vector.broadcast %cst_60 : f32 to vector<256x128xf32>
    %107 = arith.mulf %106, %99 : vector<256x128xf32>
    %108 = arith.select %105, %99, %107 : vector<256x128xi1>, vector<256x128xf32>
    %109 = arith.truncf %108 : vector<256x128xf32> to vector<256x128xbf16>
    %c0_61 = arith.constant 0 : index
    %c0_62 = arith.constant 0 : index
    %c0_63 = arith.constant 0 : index
    %110 = vector.load %arg7[%c0_61, %c0_62, %c0_63] : memref<1x256x128xbf16, #tpu.memory_space<vmem>>, vector<1x256x128xbf16>
    %111 = vector.shape_cast %110 : vector<1x256x128xbf16> to vector<256x128xbf16>
    %112 = vector.shape_cast %109 : vector<256x128xbf16> to vector<1x256x128xbf16>
    tpu.vector_store %arg7[%c0_61, %c0_62, %c0_63], %112 {strides = array<i32>} : memref<1x256x128xbf16, #tpu.memory_space<vmem>>, vector<1x256x128xbf16>,
    return
  }
  func.func @transform_0(%arg0: i32, %arg1: i32) -> (i32, i32, i32) {
    %c0_i32 = arith.constant 0 : i32
    %c0_i32_0 = arith.constant 0 : i32
    return %arg0, %arg1, %c0_i32 : i32, i32, i32
  }
  func.func @transform_1(%arg0: i32, %arg1: i32) -> (i32, i32, i32) {
    %c1_i32 = arith.constant 1 : i32
    %0 = arith.addi %arg1, %c1_i32 : i32
    %c16_i32 = arith.constant 16 : i32
    %1 = arith.muli %0, %c16_i32 : i32
    %c250_i32 = arith.constant 250 : i32
    %2 = arith.minsi %1, %c250_i32 : i32
    %c0_i32 = arith.constant 0 : i32
    %c0_i32_0 = arith.constant 0 : i32
    return %arg0, %2, %c0_i32 : i32, i32, i32
  }
  func.func @transform_2(%arg0: i32, %arg1: i32) -> (i32, i32) {
    %c0_i32 = arith.constant 0 : i32
    %c0_i32_0 = arith.constant 0 : i32
    %c0_i32_1 = arith.constant 0 : i32
    return %c0_i32, %c0_i32_0 : i32, i32
  }
  func.func @transform_3(%arg0: i32, %arg1: i32) -> (i32, i32) {
    %c0_i32 = arith.constant 0 : i32
    %c0_i32_0 = arith.constant 0 : i32
    %c0_i32_1 = arith.constant 0 : i32
    return %c0_i32, %c0_i32_0 : i32, i32
  }
  func.func @transform_4(%arg0: i32, %arg1: i32) -> (i32, i32, i32) {
    %c0_i32 = arith.constant 0 : i32
    %c0_i32_0 = arith.constant 0 : i32
    return %arg0, %arg1, %c0_i32 : i32, i32, i32
  }
  func.func @transform_5(%arg0: i32, %arg1: i32) -> (i32, i32, i32) {
    %c0_i32 = arith.constant 0 : i32
    %c0_i32_0 = arith.constant 0 : i32
    return %arg0, %arg1, %c0_i32 : i32, i32, i32
  }
}

</mosaic_0001>

<bundles_post_ra>
// kernel: tpu_custom_call.1
= control target key start
LH: loop header
LB: loop body
LE: loop exit
PB: predicated region body
PF: predicated region fallthrough
CT: control target
= control target key end

     0   :  { %s8842_s0 = inlined_call_operand.vmem [shape: f32[2,4014,1], index: 0, kind: input, shape index: {}]   ;;  %s8843_s1 = inlined_call_operand.vmem [shape: f32[2,4014,1], index: 1, kind: input, shape index: {}]   ;;  %s8844_s2 = inlined_call_operand.vmem [shape: f32[15,128], index: 2, kind: input, shape index: {}]   ;;  %s8845_s3 = inlined_call_operand.vmem [shape: f32[1,128], index: 3, kind: input, shape index: {}]   ;;  %s8846_s4 = inlined_call_operand.hbm [shape: bf16[2,4000,128], index: 4, kind: output, shape index: {0}]   ;;  %s8847_s5 = inlined_call_operand.hbm [shape: bf16[2,4000,128], index: 5, kind: output, shape index: {1}]  }
   0x1   :  { %8849 = sst [smem:[#allocation307_spill]] %s8842_s0 }
   0x2   :  { %8850 = sst [smem:[#allocation308_spill]] %s8843_s1 }
   0x3   :  { %11 = vsyncpa [#allocation4], 0 }
   0x4   :  { %13 = vsyncpa [#allocation4 + $0x1], 0 }
   0x5   :  { %14 = vsyncpa [#allocation6], 0 }
   0x6   :  { %16 = vsyncpa [#allocation6 + $0x1], 0  ;;  %s5601_s18 = smov 0   ;;  %s5603_s19 = smov 0  }
   0x7   :  { %s5605_s20 = smov 0   ;;  %s5607_s21 = smov 0  }
   0x8   :  { %s5609_s22 = smov 0   ;;  %s5611_s23 = smov 0  }
   0x9   :  { %s5613_s24 = smov 0   ;;  %s5615_s25 = smov 0  }
   0xa LB: > { %s4985_s26 = sadd.s32 4294967295, %s5562_s25   ;;  %s4986_s27 = sadd.s32 4294967294, %s5562_s25   ;;  %s5562_s25 = sphi %s5615_s25, %s22_s25   ;;  %s5558_s24 = sphi %s5613_s24, %s9599_s24   ;;  %s5554_s23 = sphi %s5611_s23, %s9598_s23   ;;  %s5550_s22 = sphi %s5609_s22, %s9597_s22   ;;  %s5546_s21 = sphi %s5607_s21, %s9596_s21   ;;  %s5542_s20 = sphi %s5605_s20, %s9595_s20   ;;  %s5538_s19 = sphi %s5603_s19, %s9594_s19   ;;  %s5534_s18 = sphi %s5601_s18, %s9593_s18  }
   0xb   : > { %s31_s28 = sadd.s32 1, %s5554_s23  ;;  %s34_s29 = sadd.s32 1, %s5558_s24 }
   0xc   : > { %p32_p0 = scmp.ge.s32.totalorder %s31_s28, 16  ;;  %p159_p1 = scmp.ne.s32.totalorder %s5542_s20, %s5538_s19 }
   0xd   : > { %p160_p2 = scmp.eq.s32.totalorder %s4985_s26, 31  ;;  %p165_p5 = scmp.ne.s32.totalorder %s5538_s19, %s5534_s18 }
   0xe   : > { %s9601_s28 = smov (%p32_p0, %s31_s28), 0  ;;  %s9603_s29 = smov (!%p32_p0, %s34_s29), %s5558_s24 }
   0xf   : > { %s145_s30 = ssub.s32 %s5554_s23, %s9601_s28  ;;  %p5652_p3 = por %p160_p2, %p159_p1 }
  0x10   : > { %p36_p4 = scmp.ge.s32.totalorder %s9603_s29, 2  ;;  %p166_p6 = scmp.eq.s32.totalorder %s4986_s27, 31 }
  0x11   : > { %p4991_p7 = scmp.ge.s32.totalorder %s5562_s25, 1  ;;  %p260_p9 = scmp.lt.s32.totalorder %s5562_s25, 33 }
  0x12   : > { %s9605_s29 = smov (%p36_p4, %s9603_s29), 0  ;;  %p5661_p8 = por %p166_p6, %p165_p5 }
  0x13   : > { %s144_s8 = ssub.s32 %s5558_s24, %s9605_s29  ;;  %s149_s9 = sadd.s32 1, %s5542_s20 }
  0x14   : > { %s146_s10 = sor.u32 %s145_s30, %s144_s8  ;;  %p261_p10 = pnand %p4991_p7, %p260_p9 }
  0x15   : > { %p147_p11 = scmp.eq.s32.totalorder %s146_s10, 0 }
  0x16   : > { %264 = sbr.rel (%p261_p10) target bundleno = 1210 (0x4ba), region = 36 }
  0x17   : > { %s5670_s11 = scalar_select %p147_p11, %s5542_s20, %s149_s9  }
  0x1b   : > { %s5673_s12 = sshll.u32 %s5546_s21, 5  ;;  %p319_p12 = scmp.lt.s32.totalorder %s5550_s22, 1  ;;  %v5564_v0 = vmov 0   ;;  %vm392_vm0 = vcmask 7168  }
  0x1c   : > { %5438 = vset.pattern.permute.xlu1 %v5564_v0  ;;  %5437 = vset.pattern.permute.xlu0 %v5564_v0  ;;  %p321_p13 = scmp.lt.s32.totalorder %s5673_s12, 501  ;;  %s5099_s17 = sshll.u32 %s5546_s21, 4 }
  0x1d   : > { %s5678_s13 = scalar_select %p319_p12, %s5550_s22, 1 }
  0x1e   : > { %s322_s14 = scalar_select %p321_p13, %s5673_s12, 501 }
  0x1f   : > { %s5355_s15 = smul.u32 502, %s5678_s13  ;;  %s8853_s0 = sld [smem:[#allocation307_spill]] }
  0x20   : > { %s5693_s21 = sadd.s32 16, %s5099_s17  ;;  %s8855_s1 = sld [smem:[#allocation308_spill]] }
  0x21   : > { %s324_s16 = sadd.s32 %s5355_s15, %s322_s14  ;;  %p334_p0 = scmp.lt.s32.totalorder %s5693_s21, 250 }
  0x22   : > { %s4995_s26 = sshll.u32 %s324_s16, 3  ;;  %s7527_s30 = sand.u32 1, %s5538_s19  }
  0x23   : > { %s9607_s21 = smov (!%p334_p0, %s5693_s21), 250  ;;  %s4813_s10 = ssub.s32 (%p5652_p3), 500, %s5673_s12 }
  0x24   : > { %s4997_s9 = sshll.u32 %s9607_s21, 1  ;;  %s8848_s21 = scalar_lea.sflag [#allocation4], %s7527_s30 }
  0x25   : > { %s5688_s8 = scalar_lea.vmem %s8853_s0, %s4995_s26  ;;  %p5747_p1 = scmp.lt.s32.totalorder %s4997_s9, 501 }
  0x26   : > { %v362_v1 = vld [vmem:[%s5688_s8 + $0x10] sm:$0xff]  ;;  %v360_v2 = vld [vmem:[%s5688_s8] sm:$0xff]  ;;  %v363_v3 = vld [vmem:[%s5688_s8 + $0x18] sm:$0xff]  ;;  %s4992_s26 = sshll.u32 %s7527_s30, 7  ;;  %p4814_p2 = scmp.lt.s32.totalorder (%p5652_p3), %s4813_s10, 32 }
  0x27   : > { %395 = vst.msk [vmem:[#allocation2 + $0x10] sm:$0xff] %vm392_vm0, %v362_v1  ;;  %393 = vst.msk [vmem:[#allocation2] sm:$0xff] %vm392_vm0, %v360_v2  ;;  %v361_v4 = vld [vmem:[%s5688_s8 + $0x8] sm:$0xff]  ;;  %v364_v6 = vld [vmem:[%s5688_s8 + $0x20] sm:$0xff]  ;;  %s9609_s9 = smov (!%p5747_p1, %s4997_s9), 501  ;;  %s8578_s13 = scalar_lea.vmem [#allocation5], %s4992_s26 }
  0x28   : > { %396 = vst.msk [vmem:[#allocation2 + $0x18] sm:$0xff] %vm392_vm0, %v363_v3  ;;  %v365_v5 = vld [vmem:[%s5688_s8 + $0x28] sm:$0xff]  ;;  %394 = vst.msk [vmem:[#allocation2 + $0x8] sm:$0xff] %vm392_vm0, %v361_v4  ;;  %v367_v7 = vld [vmem:[%s5688_s8 + $0x38] sm:$0xff]  ;;  %s342_s14 = sadd.s32 %s5355_s15, %s9609_s9 }
  0x29   : > { %398 = vst.msk [vmem:[#allocation2 + $0x28] sm:$0xff] %vm392_vm0, %v365_v5  ;;  %397 = vst.msk [vmem:[#allocation2 + $0x20] sm:$0xff] %vm392_vm0, %v364_v6  ;;  %v366_v8 = vld [vmem:[%s5688_s8 + $0x30] sm:$0xff]  ;;  %v369_v9 = vld [vmem:[%s5688_s8 + $0x48] sm:$0xff]  ;;  %s4998_s16 = sshll.u32 %s342_s14, 3 }
  0x2a   : > { %400 = vst.msk [vmem:[#allocation2 + $0x38] sm:$0xff] %vm392_vm0, %v367_v7  ;;  %399 = vst.msk [vmem:[#allocation2 + $0x30] sm:$0xff] %vm392_vm0, %v366_v8  ;;  %v368_v10 = vld [vmem:[%s5688_s8 + $0x40] sm:$0xff]  ;;  %v371_v11 = vld [vmem:[%s5688_s8 + $0x58] sm:$0xff]  ;;  %s5774_s27 = scalar_lea.vmem %s8855_s1, %s4998_s16 }
  0x2b   : > { %402 = vst.msk [vmem:[#allocation2 + $0x48] sm:$0xff] %vm392_vm0, %v369_v9  ;;  %v370_v12 = vld [vmem:[%s5688_s8 + $0x50] sm:$0xff]  ;;  %401 = vst.msk [vmem:[#allocation2 + $0x40] sm:$0xff] %vm392_vm0, %v368_v10  ;;  %v373_v13 = vld [vmem:[%s5688_s8 + $0x68] sm:$0xff] }
  0x2c   : > { %404 = vst.msk [vmem:[#allocation2 + $0x58] sm:$0xff] %vm392_vm0, %v371_v11  ;;  %403 = vst.msk [vmem:[#allocation2 + $0x50] sm:$0xff] %vm392_vm0, %v370_v12  ;;  %v372_v14 = vld [vmem:[%s5688_s8 + $0x60] sm:$0xff]  ;;  %v375_v15 = vld [vmem:[%s5688_s8 + $0x78] sm:$0xff] }
  0x2d   : > { %406 = vst.msk [vmem:[#allocation2 + $0x68] sm:$0xff] %vm392_vm0, %v373_v13  ;;  %405 = vst.msk [vmem:[#allocation2 + $0x60] sm:$0xff] %vm392_vm0, %v372_v14  ;;  %v374_v16 = vld [vmem:[%s5688_s8 + $0x70] sm:$0xff]  ;;  %v377_v17 = vld [vmem:[%s5688_s8 + $0x88] sm:$0xff] }
  0x2e   : > { %408 = vst.msk [vmem:[#allocation2 + $0x78] sm:$0xff] %vm392_vm0, %v375_v15  ;;  %v376_v18 = vld [vmem:[%s5688_s8 + $0x80] sm:$0xff]  ;;  %407 = vst.msk [vmem:[#allocation2 + $0x70] sm:$0xff] %vm392_vm0, %v374_v16  ;;  %v379_v19 = vld [vmem:[%s5688_s8 + $0x98] sm:$0xff] }
  0x2f   : > { %410 = vst.msk [vmem:[#allocation2 + $0x88] sm:$0xff] %vm392_vm0, %v377_v17  ;;  %409 = vst.msk [vmem:[#allocation2 + $0x80] sm:$0xff] %vm392_vm0, %v376_v18  ;;  %v378_v20 = vld [vmem:[%s5688_s8 + $0x90] sm:$0xff]  ;;  %v381_v21 = vld [vmem:[%s5688_s8 + $0xa8] sm:$0xff] }
  0x30   : > { %412 = vst.msk [vmem:[#allocation2 + $0x98] sm:$0xff] %vm392_vm0, %v379_v19  ;;  %411 = vst.msk [vmem:[#allocation2 + $0x90] sm:$0xff] %vm392_vm0, %v378_v20  ;;  %v380_v22 = vld [vmem:[%s5688_s8 + $0xa0] sm:$0xff]  ;;  %v383_v23 = vld [vmem:[%s5688_s8 + $0xb8] sm:$0xff] }
  0x31   : > { %414 = vst.msk [vmem:[#allocation2 + $0xa8] sm:$0xff] %vm392_vm0, %v381_v21  ;;  %v382_v24 = vld [vmem:[%s5688_s8 + $0xb0] sm:$0xff]  ;;  %v429_v26 = vld [vmem:[#allocation2] sm:$0xff]  ;;  %413 = vst.msk [vmem:[#allocation2 + $0xa0] sm:$0xff] %vm392_vm0, %v380_v22 }
  0x32   : > { %v431_v25 = vld [vmem:[#allocation2 + $0x10] sm:$0xff]  ;;  %416 = vst.msk [vmem:[#allocation2 + $0xb8] sm:$0xff] %vm392_vm0, %v383_v23  ;;  %415 = vst.msk [vmem:[#allocation2 + $0xb0] sm:$0xff] %vm392_vm0, %v382_v24  ;;  %464 = vperm.xlu0 %5437, %v429_v26   ;;  %v432_v27 = vld [vmem:[#allocation2 + $0x18] sm:$0xff] }
  0x33   : > { %474 = vperm.xlu1 %5438, %v431_v25   ;;  %v430_v28 = vld [vmem:[#allocation2 + $0x8] sm:$0xff]  ;;  %v433_v30 = vld [vmem:[#allocation2 + $0x20] sm:$0xff]  ;;  %v436_v31 = vld [vmem:[#allocation2 + $0x38] sm:$0xff] }
  0x34   : > { %v434_v29 = vld [vmem:[#allocation2 + $0x28] sm:$0xff]  ;;  %v384_v33 = vld [vmem:[%s5688_s8 + $0xc0] sm:$0xff]  ;;  %v387_v34 = vld [vmem:[%s5688_s8 + $0xd8] sm:$0xff] }
  0x35   : > { %v385_v32 = vld [vmem:[%s5688_s8 + $0xc8] sm:$0xff]  ;;  %417 = vst.msk [vmem:[#allocation2 + $0xc0] sm:$0xff] %vm392_vm0, %v384_v33  ;;  %420 = vst.msk [vmem:[#allocation2 + $0xd8] sm:$0xff] %vm392_vm0, %v387_v34  ;;  %v386_v35 = vld [vmem:[%s5688_s8 + $0xd0] sm:$0xff] }
  0x36   : > { %469 = vperm.xlu0 %5437, %v430_v28   ;;  %418 = vst.msk [vmem:[#allocation2 + $0xc8] sm:$0xff] %vm392_vm0, %v385_v32  ;;  %v389_v36 = vld [vmem:[%s5688_s8 + $0xe8] sm:$0xff]  ;;  %v388_v37 = vld [vmem:[%s5688_s8 + $0xe0] sm:$0xff]  ;;  %v435_v38 = vld [vmem:[#allocation2 + $0x30] sm:$0xff] }
  0x37   : > { %479 = vperm.xlu1 %5438, %v432_v27   ;;  %419 = vst.msk [vmem:[#allocation2 + $0xd0] sm:$0xff] %vm392_vm0, %v386_v35  ;;  %422 = vst.msk [vmem:[#allocation2 + $0xe8] sm:$0xff] %vm392_vm0, %v389_v36  ;;  %v391_v39 = vld [vmem:[%s5688_s8 + $0xf8] sm:$0xff]  ;;  %v390_v40 = vld [vmem:[%s5688_s8 + $0xf0] sm:$0xff] }
  0x38   : > { %421 = vst.msk [vmem:[#allocation2 + $0xe0] sm:$0xff] %vm392_vm0, %v388_v37  ;;  %424 = vst.msk [vmem:[#allocation2 + $0xf8] sm:$0xff] %vm392_vm0, %v391_v39  ;;  %v438_v41 = vld [vmem:[#allocation2 + $0x48] sm:$0xff]  ;;  %v437_v42 = vld [vmem:[#allocation2 + $0x40] sm:$0xff] }
  0x39   : > { %423 = vst.msk [vmem:[#allocation2 + $0xf0] sm:$0xff] %vm392_vm0, %v390_v40  ;;  %v440_v43 = vld [vmem:[#allocation2 + $0x58] sm:$0xff]  ;;  %v439_v44 = vld [vmem:[#allocation2 + $0x50] sm:$0xff]  ;;  %v442_v45 = vld [vmem:[#allocation2 + $0x68] sm:$0xff] }
  0x3a   : > { %484 = vperm.xlu0 %5437, %v433_v30   ;;  %v441_v46 = vld [vmem:[#allocation2 + $0x60] sm:$0xff]  ;;  %v444_v48 = vld [vmem:[#allocation2 + $0x78] sm:$0xff]  ;;  %v443_v49 = vld [vmem:[#allocation2 + $0x70] sm:$0xff] }
  0x3b   : > { %489 = vperm.xlu1 %5438, %v434_v29   ;;  %v425_v47 = vld [vmem:[%s5774_s27] sm:$0xff]  ;;  %v446_v50 = vld [vmem:[#allocation2 + $0x88] sm:$0xff]  ;;  %v448_v52 = vld [vmem:[#allocation2 + $0x98] sm:$0xff] }
  0x3c   : > { %427 = vst.msk [vmem:[#allocation2 + $0x100] sm:$0xff] %vm392_vm0, %v425_v47  ;;  %v445_v51 = vld [vmem:[#allocation2 + $0x80] sm:$0xff]  ;;  %v447_v53 = vld [vmem:[#allocation2 + $0x90] sm:$0xff]  ;;  %v450_v54 = vld [vmem:[#allocation2 + $0xa8] sm:$0xff] }
  0x3d   : > { %v449_v55 = vld [vmem:[#allocation2 + $0xa0] sm:$0xff]  ;;  %v452_v56 = vld [vmem:[#allocation2 + $0xb8] sm:$0xff]  ;;  %v451_v57 = vld [vmem:[#allocation2 + $0xb0] sm:$0xff] }
  0x3e   : > { %494 = vperm.xlu0 %5437, %v435_v38   ;;  %v454_v58 = vld [vmem:[#allocation2 + $0xc8] sm:$0xff]  ;;  %v453_v59 = vld [vmem:[#allocation2 + $0xc0] sm:$0xff]  ;;  %v456_v60 = vld [vmem:[#allocation2 + $0xd8] sm:$0xff] }
  0x3f   : > { %499 = vperm.xlu1 %5438, %v436_v31   ;;  %v455_v61 = vld [vmem:[#allocation2 + $0xd0] sm:$0xff]  ;;  %v458_v62 = vld [vmem:[#allocation2 + $0xe8] sm:$0xff]  ;;  %v457_v63 = vld [vmem:[#allocation2 + $0xe0] sm:$0xff] }
  0x40   : > { %v460_v0 = vld [vmem:[#allocation2 + $0xf8] sm:$0xff]  ;;  %v459_v1 = vld [vmem:[#allocation2 + $0xf0] sm:$0xff]  ;;  %v690_v3 = vld [vmem:[#allocation2 + $0x1] sm:$0xff] }
  0x41   : > { %v691_v2 = vld [vmem:[#allocation2 + $0x9] sm:$0xff]  ;;  %v693_v4 = vld [vmem:[#allocation2 + $0x19] sm:$0xff]  ;;  %v692_v5 = vld [vmem:[#allocation2 + $0x11] sm:$0xff] }
  0x42   : > { %504 = vperm.xlu0 %5437, %v437_v42   ;;  %v695_v6 = vld [vmem:[#allocation2 + $0x29] sm:$0xff]  ;;  %v694_v7 = vld [vmem:[#allocation2 + $0x21] sm:$0xff]  ;;  %v697_v8 = vld [vmem:[#allocation2 + $0x39] sm:$0xff] }
  0x43   : > { %509 = vperm.xlu1 %5438, %v438_v41   ;;  %v696_v9 = vld [vmem:[#allocation2 + $0x31] sm:$0xff]  ;;  %v699_v10 = vld [vmem:[#allocation2 + $0x49] sm:$0xff]  ;;  %v698_v11 = vld [vmem:[#allocation2 + $0x41] sm:$0xff] }
  0x44   : > { %v701_v12 = vld [vmem:[#allocation2 + $0x59] sm:$0xff]  ;;  %v700_v13 = vld [vmem:[#allocation2 + $0x51] sm:$0xff]  ;;  %v703_v14 = vld [vmem:[#allocation2 + $0x69] sm:$0xff] }
  0x45   : > { %v702_v15 = vld [vmem:[#allocation2 + $0x61] sm:$0xff]  ;;  %v705_v16 = vld [vmem:[#allocation2 + $0x79] sm:$0xff]  ;;  %v704_v17 = vld [vmem:[#allocation2 + $0x71] sm:$0xff] }
  0x46   : > { %514 = vperm.xlu0 %5437, %v439_v44   ;;  %v707_v18 = vld [vmem:[#allocation2 + $0x89] sm:$0xff]  ;;  %v706_v19 = vld [vmem:[#allocation2 + $0x81] sm:$0xff]  ;;  %v709_v20 = vld [vmem:[#allocation2 + $0x99] sm:$0xff] }
  0x47   : > { %519 = vperm.xlu1 %5438, %v440_v43   ;;  %v708_v21 = vld [vmem:[#allocation2 + $0x91] sm:$0xff]  ;;  %v711_v22 = vld [vmem:[#allocation2 + $0xa9] sm:$0xff]  ;;  %v710_v23 = vld [vmem:[#allocation2 + $0xa1] sm:$0xff] }
  0x48   : > { %v713_v24 = vld [vmem:[#allocation2 + $0xb9] sm:$0xff]  ;;  %v712_v25 = vld [vmem:[#allocation2 + $0xb1] sm:$0xff]  ;;  %v715_v26 = vld [vmem:[#allocation2 + $0xc9] sm:$0xff] }
  0x49   : > { %v714_v27 = vld [vmem:[#allocation2 + $0xc1] sm:$0xff]  ;;  %v717_v28 = vld [vmem:[#allocation2 + $0xd9] sm:$0xff]  ;;  %v716_v29 = vld [vmem:[#allocation2 + $0xd1] sm:$0xff] }
  0x4a   : > { %524 = vperm.xlu0 %5437, %v441_v46   ;;  %v719_v30 = vld [vmem:[#allocation2 + $0xe9] sm:$0xff]  ;;  %v718_v31 = vld [vmem:[#allocation2 + $0xe1] sm:$0xff]  ;;  %v721_v32 = vld [vmem:[#allocation2 + $0xf9] sm:$0xff] }
  0x4b   : > { %529 = vperm.xlu1 %5438, %v442_v45   ;;  %v720_v33 = vld [vmem:[#allocation2 + $0xf1] sm:$0xff]  ;;  %v951_v37 = vld [vmem:[#allocation2 + $0x2] sm:$0xff]  ;;  %v954_v40 = vld [vmem:[#allocation2 + $0x1a] sm:$0xff] }
  0x4c   : > { %v952_v36 = vld [vmem:[#allocation2 + $0xa] sm:$0xff]  ;;  %v953_v41 = vld [vmem:[#allocation2 + $0x12] sm:$0xff]  ;;  %v955_v45 = vld [vmem:[#allocation2 + $0x22] sm:$0xff] }
  0x4d   : > { %v956_v44 = vld [vmem:[#allocation2 + $0x2a] sm:$0xff] }
  0x4e   : > { %534 = vperm.xlu0 %5437, %v443_v49   ;;  %v957_v49 = vld [vmem:[#allocation2 + $0x32] sm:$0xff] }
  0x4f   : > { %539 = vperm.xlu1 %5438, %v444_v48   ;;  %v958_v48 = vld [vmem:[#allocation2 + $0x3a] sm:$0xff] }
  0x52   : > { %544 = vperm.xlu0 %5437, %v445_v51  }
  0x53   : > { %549 = vperm.xlu1 %5438, %v446_v50  }
  0x56   : > { %554 = vperm.xlu0 %5437, %v447_v53   ;;  %v959_v53 = vld [vmem:[#allocation2 + $0x42] sm:$0xff] }
  0x57   : > { %559 = vperm.xlu1 %5438, %v448_v52   ;;  %v960_v52 = vld [vmem:[#allocation2 + $0x4a] sm:$0xff] }
  0x5a   : > { %564 = vperm.xlu0 %5437, %v449_v55  }
  0x5b   : > { %569 = vperm.xlu1 %5438, %v450_v54  }
  0x5e   : > { %574 = vperm.xlu0 %5437, %v451_v57   ;;  %v961_v57 = vld [vmem:[#allocation2 + $0x52] sm:$0xff] }
  0x5f   : > { %579 = vperm.xlu1 %5438, %v452_v56   ;;  %v962_v56 = vld [vmem:[#allocation2 + $0x5a] sm:$0xff] }
  0x62   : > { %584 = vperm.xlu0 %5437, %v453_v59  }
  0x63   : > { %589 = vperm.xlu1 %5438, %v454_v58  }
  0x66   : > { %594 = vperm.xlu0 %5437, %v455_v61   ;;  %v963_v61 = vld [vmem:[#allocation2 + $0x62] sm:$0xff] }
  0x67   : > { %599 = vperm.xlu1 %5438, %v456_v60   ;;  %v964_v60 = vld [vmem:[#allocation2 + $0x6a] sm:$0xff] }
  0x6a   : > { %604 = vperm.xlu0 %5437, %v457_v63  }
  0x6b   : > { %609 = vperm.xlu1 %5438, %v458_v62  }
  0x6e   : > { %614 = vperm.xlu0 %5437, %v459_v1   ;;  %v965_v1 = vld [vmem:[#allocation2 + $0x72] sm:$0xff] }
  0x6f   : > { %619 = vperm.xlu1 %5438, %v460_v0   ;;  %v966_v0 = vld [vmem:[#allocation2 + $0x7a] sm:$0xff] }
  0x72   : > { %725 = vperm.xlu0 %5437, %v690_v3  }
  0x73   : > { %730 = vperm.xlu1 %5438, %v691_v2  }
  0x76   : > { %735 = vperm.xlu0 %5437, %v692_v5   ;;  %v967_v5 = vld [vmem:[#allocation2 + $0x82] sm:$0xff] }
  0x77   : > { %740 = vperm.xlu1 %5438, %v693_v4   ;;  %v968_v4 = vld [vmem:[#allocation2 + $0x8a] sm:$0xff] }
  0x7a   : > { %745 = vperm.xlu0 %5437, %v694_v7  }
  0x7b   : > { %750 = vperm.xlu1 %5438, %v695_v6  }
  0x7e   : > { %755 = vperm.xlu0 %5437, %v696_v9   ;;  %v969_v9 = vld [vmem:[#allocation2 + $0x92] sm:$0xff] }
  0x7f   : > { %760 = vperm.xlu1 %5438, %v697_v8   ;;  %v970_v8 = vld [vmem:[#allocation2 + $0x9a] sm:$0xff] }
  0x82   : > { %765 = vperm.xlu0 %5437, %v698_v11  }
  0x83   : > { %770 = vperm.xlu1 %5438, %v699_v10  }
  0x86   : > { %775 = vperm.xlu0 %5437, %v700_v13   ;;  %v971_v13 = vld [vmem:[#allocation2 + $0xa2] sm:$0xff] }
  0x87   : > { %780 = vperm.xlu1 %5438, %v701_v12   ;;  %v972_v12 = vld [vmem:[#allocation2 + $0xaa] sm:$0xff] }
  0x8a   : > { %785 = vperm.xlu0 %5437, %v702_v15  }
  0x8b   : > { %790 = vperm.xlu1 %5438, %v703_v14  }
  0x8e   : > { %795 = vperm.xlu0 %5437, %v704_v17   ;;  %v973_v17 = vld [vmem:[#allocation2 + $0xb2] sm:$0xff] }
  0x8f   : > { %800 = vperm.xlu1 %5438, %v705_v16   ;;  %v974_v16 = vld [vmem:[#allocation2 + $0xba] sm:$0xff] }
  0x92   : > { %805 = vperm.xlu0 %5437, %v706_v19  }
  0x93   : > { %810 = vperm.xlu1 %5438, %v707_v18  }
  0x96   : > { %815 = vperm.xlu0 %5437, %v708_v21   ;;  %v975_v21 = vld [vmem:[#allocation2 + $0xc2] sm:$0xff] }
  0x97   : > { %820 = vperm.xlu1 %5438, %v709_v20   ;;  %v976_v20 = vld [vmem:[#allocation2 + $0xca] sm:$0xff] }
  0x9a   : > { %825 = vperm.xlu0 %5437, %v710_v23  }
  0x9b   : > { %830 = vperm.xlu1 %5438, %v711_v22  }
  0x9e   : > { %835 = vperm.xlu0 %5437, %v712_v25   ;;  %v977_v25 = vld [vmem:[#allocation2 + $0xd2] sm:$0xff] }
  0x9f   : > { %840 = vperm.xlu1 %5438, %v713_v24   ;;  %v978_v24 = vld [vmem:[#allocation2 + $0xda] sm:$0xff] }
  0xa2   : > { %845 = vperm.xlu0 %5437, %v714_v27  }
  0xa3   : > { %850 = vperm.xlu1 %5438, %v715_v26  }
  0xa6   : > { %855 = vperm.xlu0 %5437, %v716_v29   ;;  %v979_v29 = vld [vmem:[#allocation2 + $0xe2] sm:$0xff] }
  0xa7   : > { %860 = vperm.xlu1 %5438, %v717_v28   ;;  %v980_v28 = vld [vmem:[#allocation2 + $0xea] sm:$0xff] }
  0xaa   : > { %865 = vperm.xlu0 %5437, %v718_v31  }
  0xab   : > { %870 = vperm.xlu1 %5438, %v719_v30  }
  0xad   : > { %v5780_v35 = vpop.permute.xlu0 %464 }
  0xae   : > { %v5778_v34 = vpop.permute.xlu1 %474  ;;  %875 = vperm.xlu0 %5437, %v720_v33   ;;  %v981_v33 = vld [vmem:[#allocation2 + $0xf2] sm:$0xff] }
  0xaf   : > { %880 = vperm.xlu1 %5438, %v721_v32   ;;  %v982_v32 = vld [vmem:[#allocation2 + $0xfa] sm:$0xff] }
  0xb1   : > { %v5784_v39 = vpop.permute.xlu0 %469 }
  0xb2   : > { %v5782_v38 = vpop.permute.xlu1 %479  ;;  %986 = vperm.xlu0 %5437, %v951_v37  }
  0xb3   : > { %991 = vperm.xlu1 %5438, %v952_v36  }
  0xb5   : > { %v5788_v43 = vpop.permute.xlu0 %484 }
  0xb6   : > { %v5786_v42 = vpop.permute.xlu1 %489  ;;  %996 = vperm.xlu0 %5437, %v953_v41   ;;  %v1212_v41 = vld [vmem:[#allocation2 + $0x3] sm:$0xff] }
  0xb7   : > { %1001 = vperm.xlu1 %5438, %v954_v40   ;;  %v1213_v40 = vld [vmem:[#allocation2 + $0xb] sm:$0xff] }
  0xb9   : > { %v5792_v47 = vpop.permute.xlu0 %494 }
  0xba   : > { %v5790_v46 = vpop.permute.xlu1 %499  ;;  %1006 = vperm.xlu0 %5437, %v955_v45  }
  0xbb   : > { %1011 = vperm.xlu1 %5438, %v956_v44  }
  0xbd   : > { %v5796_v51 = vpop.permute.xlu0 %504 }
  0xbe   : > { %v5794_v50 = vpop.permute.xlu1 %509  ;;  %1016 = vperm.xlu0 %5437, %v957_v49   ;;  %v1214_v49 = vld [vmem:[#allocation2 + $0x13] sm:$0xff] }
  0xbf   : > { %1021 = vperm.xlu1 %5438, %v958_v48   ;;  %v1215_v48 = vld [vmem:[#allocation2 + $0x1b] sm:$0xff] }
  0xc1   : > { %v5800_v55 = vpop.permute.xlu0 %514 }
  0xc2   : > { %v5798_v54 = vpop.permute.xlu1 %519  ;;  %1026 = vperm.xlu0 %5437, %v959_v53  }
  0xc3   : > { %1031 = vperm.xlu1 %5438, %v960_v52  }
  0xc5   : > { %v5804_v59 = vpop.permute.xlu0 %524 }
  0xc6   : > { %v5802_v58 = vpop.permute.xlu1 %529  ;;  %1036 = vperm.xlu0 %5437, %v961_v57   ;;  %v1216_v57 = vld [vmem:[#allocation2 + $0x23] sm:$0xff] }
  0xc7   : > { %1041 = vperm.xlu1 %5438, %v962_v56   ;;  %v1217_v56 = vld [vmem:[#allocation2 + $0x2b] sm:$0xff] }
  0xc9   : > { %v5808_v63 = vpop.permute.xlu0 %534 }
  0xca   : > { %v5806_v62 = vpop.permute.xlu1 %539  ;;  %1046 = vperm.xlu0 %5437, %v963_v61  }
  0xcb   : > { %1051 = vperm.xlu1 %5438, %v964_v60  }
  0xcd   : > { %v5812_v3 = vpop.permute.xlu0 %544 }
  0xce   : > { %v5810_v2 = vpop.permute.xlu1 %549  ;;  %1056 = vperm.xlu0 %5437, %v965_v1   ;;  %v1218_v1 = vld [vmem:[#allocation2 + $0x33] sm:$0xff] }
  0xcf   : > { %1061 = vperm.xlu1 %5438, %v966_v0   ;;  %v1219_v0 = vld [vmem:[#allocation2 + $0x3b] sm:$0xff] }
  0xd1   : > { %v5816_v7 = vpop.permute.xlu0 %554 }
  0xd2   : > { %v5814_v6 = vpop.permute.xlu1 %559  ;;  %1066 = vperm.xlu0 %5437, %v967_v5  }
  0xd3   : > { %1071 = vperm.xlu1 %5438, %v968_v4  }
  0xd5   : > { %v5820_v11 = vpop.permute.xlu0 %564 }
  0xd6   : > { %v5818_v10 = vpop.permute.xlu1 %569  ;;  %1076 = vperm.xlu0 %5437, %v969_v9   ;;  %v1220_v9 = vld [vmem:[#allocation2 + $0x43] sm:$0xff] }
  0xd7   : > { %1081 = vperm.xlu1 %5438, %v970_v8   ;;  %v1221_v8 = vld [vmem:[#allocation2 + $0x4b] sm:$0xff] }
  0xd9   : > { %v5824_v15 = vpop.permute.xlu0 %574 }
  0xda   : > { %v5822_v14 = vpop.permute.xlu1 %579  ;;  %1086 = vperm.xlu0 %5437, %v971_v13  }
  0xdb   : > { %1091 = vperm.xlu1 %5438, %v972_v12  }
  0xdd   : > { %v5828_v19 = vpop.permute.xlu0 %584 }
  0xde   : > { %v5826_v18 = vpop.permute.xlu1 %589  ;;  %1096 = vperm.xlu0 %5437, %v973_v17   ;;  %v1222_v17 = vld [vmem:[#allocation2 + $0x53] sm:$0xff] }
  0xdf   : > { %1101 = vperm.xlu1 %5438, %v974_v16   ;;  %v1223_v16 = vld [vmem:[#allocation2 + $0x5b] sm:$0xff] }
  0xe1   : > { %v5832_v23 = vpop.permute.xlu0 %594 }
  0xe2   : > { %v5830_v22 = vpop.permute.xlu1 %599  ;;  %1106 = vperm.xlu0 %5437, %v975_v21  }
  0xe3   : > { %1111 = vperm.xlu1 %5438, %v976_v20  }
  0xe5   : > { %v5836_v27 = vpop.permute.xlu0 %604 }
  0xe6   : > { %v5834_v26 = vpop.permute.xlu1 %609  ;;  %1116 = vperm.xlu0 %5437, %v977_v25   ;;  %v1224_v25 = vld [vmem:[#allocation2 + $0x63] sm:$0xff] }
  0xe7   : > { %1121 = vperm.xlu1 %5438, %v978_v24   ;;  %v1225_v24 = vld [vmem:[#allocation2 + $0x6b] sm:$0xff] }
  0xe9   : > { %v5840_v31 = vpop.permute.xlu0 %614 }
  0xea   : > { %v5838_v30 = vpop.permute.xlu1 %619  ;;  %1126 = vperm.xlu0 %5437, %v979_v29  }
  0xeb   : > { %1131 = vperm.xlu1 %5438, %v980_v28  }
  0xed   : > { %v5844_v37 = vpop.permute.xlu0 %725 }
  0xee   : > { %v5842_v36 = vpop.permute.xlu1 %730  ;;  %1136 = vperm.xlu0 %5437, %v981_v33   ;;  %v1226_v33 = vld [vmem:[#allocation2 + $0x73] sm:$0xff] }
  0xef   : > { %1141 = vperm.xlu1 %5438, %v982_v32   ;;  %v1227_v32 = vld [vmem:[#allocation2 + $0x7b] sm:$0xff] }
  0xf1   : > { %v5848_v45 = vpop.permute.xlu0 %735 }
  0xf2   : > { %v5846_v44 = vpop.permute.xlu1 %740  ;;  %1247 = vperm.xlu0 %5437, %v1212_v41  }
  0xf3   : > { %1252 = vperm.xlu1 %5438, %v1213_v40  }
  0xf5   : > { %v5852_v53 = vpop.permute.xlu0 %745 }
  0xf6   : > { %v5850_v52 = vpop.permute.xlu1 %750  ;;  %1257 = vperm.xlu0 %5437, %v1214_v49   ;;  %v1228_v49 = vld [vmem:[#allocation2 + $0x83] sm:$0xff] }
  0xf7   : > { %1262 = vperm.xlu1 %5438, %v1215_v48   ;;  %v1229_v48 = vld [vmem:[#allocation2 + $0x8b] sm:$0xff] }
  0xf9   : > { %v5856_v61 = vpop.permute.xlu0 %755 }
  0xfa   : > { %v5854_v60 = vpop.permute.xlu1 %760  ;;  %1267 = vperm.xlu0 %5437, %v1216_v57  }
  0xfb   : > { %1272 = vperm.xlu1 %5438, %v1217_v56  }
  0xfd   : > { %v5860_v5 = vpop.permute.xlu0 %765 }
  0xfe   : > { %v5858_v4 = vpop.permute.xlu1 %770  ;;  %1277 = vperm.xlu0 %5437, %v1218_v1   ;;  %v1230_v1 = vld [vmem:[#allocation2 + $0x93] sm:$0xff] }
  0xff   : > { %1282 = vperm.xlu1 %5438, %v1219_v0   ;;  %v1231_v0 = vld [vmem:[#allocation2 + $0x9b] sm:$0xff] }
 0x101   : > { %v5864_v13 = vpop.permute.xlu0 %775 }
 0x102   : > { %v5862_v12 = vpop.permute.xlu1 %780  ;;  %1287 = vperm.xlu0 %5437, %v1220_v9  }
 0x103   : > { %1292 = vperm.xlu1 %5438, %v1221_v8  }
 0x105   : > { %v5868_v21 = vpop.permute.xlu0 %785 }
 0x106   : > { %v5866_v20 = vpop.permute.xlu1 %790  ;;  %1297 = vperm.xlu0 %5437, %v1222_v17   ;;  %v1232_v17 = vld [vmem:[#allocation2 + $0xa3] sm:$0xff] }
 0x107   : > { %1302 = vperm.xlu1 %5438, %v1223_v16   ;;  %v1233_v16 = vld [vmem:[#allocation2 + $0xab] sm:$0xff] }
 0x109   : > { %v5872_v29 = vpop.permute.xlu0 %795 }
 0x10a   : > { %v5870_v28 = vpop.permute.xlu1 %800  ;;  %1307 = vperm.xlu0 %5437, %v1224_v25  }
 0x10b   : > { %1312 = vperm.xlu1 %5438, %v1225_v24  }
 0x10d   : > { %v5876_v41 = vpop.permute.xlu0 %805 }
 0x10e   : > { %v5874_v40 = vpop.permute.xlu1 %810  ;;  %1317 = vperm.xlu0 %5437, %v1226_v33   ;;  %v1234_v33 = vld [vmem:[#allocation2 + $0xb3] sm:$0xff] }
 0x10f   : > { %1322 = vperm.xlu1 %5438, %v1227_v32   ;;  %v1235_v32 = vld [vmem:[#allocation2 + $0xbb] sm:$0xff] }
 0x111   : > { %v5880_v57 = vpop.permute.xlu0 %815 }
 0x112   : > { %v5878_v56 = vpop.permute.xlu1 %820  ;;  %8856 = vst [vmem:[#allocation9_spill] sm:$0xff] %v5880_v57  ;;  %1327 = vperm.xlu0 %5437, %v1228_v49   ;;  %v426_v57 = vld [vmem:[%s5774_s27 + $0x8] sm:$0xff]  ;;  %s8564_s27 = scalar_lea.vmem [#allocation3], %s4992_s26 }
 0x113   : > { %1332 = vperm.xlu1 %5438, %v1229_v48   ;;  %428 = vst.msk [vmem:[#allocation2 + $0x108] sm:$0xff] %vm392_vm0, %v426_v57 }
 0x115   : > { %v5884_v9 = vpop.permute.xlu0 %825 }
 0x116   : > { %v5882_v8 = vpop.permute.xlu1 %830  ;;  %8858 = vst [vmem:[#allocation11_spill] sm:$0xff] %v5884_v9  ;;  %1337 = vperm.xlu0 %5437, %v1230_v1   ;;  %v1236_v9 = vld [vmem:[#allocation2 + $0xc3] sm:$0xff] }
 0x117   : > { %8857 = vst [vmem:[#allocation10_spill] sm:$0xff] %v5882_v8  ;;  %1342 = vperm.xlu1 %5438, %v1231_v0   ;;  %v1237_v8 = vld [vmem:[#allocation2 + $0xcb] sm:$0xff] }
 0x119   : > { %v5888_v25 = vpop.permute.xlu0 %835 }
 0x11a   : > { %v5886_v24 = vpop.permute.xlu1 %840  ;;  %8860 = vst [vmem:[#allocation13_spill] sm:$0xff] %v5888_v25  ;;  %1347 = vperm.xlu0 %5437, %v1232_v17   ;;  %v1238_v25 = vld [vmem:[#allocation2 + $0xd3] sm:$0xff] }
 0x11b   : > { %8859 = vst [vmem:[#allocation12_spill] sm:$0xff] %v5886_v24  ;;  %1352 = vperm.xlu1 %5438, %v1233_v16   ;;  %v1239_v24 = vld [vmem:[#allocation2 + $0xdb] sm:$0xff] }
 0x11d   : > { %v5892_v49 = vpop.permute.xlu0 %845 }
 0x11e   : > { %v5890_v48 = vpop.permute.xlu1 %850  ;;  %8862 = vst [vmem:[#allocation15_spill] sm:$0xff] %v5892_v49  ;;  %1357 = vperm.xlu0 %5437, %v1234_v33   ;;  %v1240_v49 = vld [vmem:[#allocation2 + $0xe3] sm:$0xff] }
 0x11f   : > { %8861 = vst [vmem:[#allocation14_spill] sm:$0xff] %v5890_v48  ;;  %1362 = vperm.xlu1 %5438, %v1235_v32   ;;  %v1241_v48 = vld [vmem:[#allocation2 + $0xeb] sm:$0xff] }
 0x121   : > { %v5896_v1 = vpop.permute.xlu0 %855 }
 0x122   : > { %v5894_v0 = vpop.permute.xlu1 %860  ;;  %8864 = vst [vmem:[#allocation17_spill] sm:$0xff] %v5896_v1  ;;  %1367 = vperm.xlu0 %5437, %v1236_v9   ;;  %v1242_v1 = vld [vmem:[#allocation2 + $0xf3] sm:$0xff] }
 0x123   : > { %8863 = vst [vmem:[#allocation16_spill] sm:$0xff] %v5894_v0  ;;  %1372 = vperm.xlu1 %5438, %v1237_v8   ;;  %v1243_v0 = vld [vmem:[#allocation2 + $0xfb] sm:$0xff] }
 0x125   : > { %v5900_v17 = vpop.permute.xlu0 %865 }
 0x126   : > { %v5898_v16 = vpop.permute.xlu1 %870  ;;  %8866 = vst [vmem:[#allocation19_spill] sm:$0xff] %v5900_v17  ;;  %1377 = vperm.xlu0 %5437, %v1238_v25   ;;  %v1473_v17 = vld [vmem:[#allocation2 + $0x4] sm:$0xff] }
 0x127   : > { %8865 = vst [vmem:[#allocation18_spill] sm:$0xff] %v5898_v16  ;;  %1382 = vperm.xlu1 %5438, %v1239_v24   ;;  %v1474_v16 = vld [vmem:[#allocation2 + $0xc] sm:$0xff] }
 0x129   : > { %v5904_v33 = vpop.permute.xlu0 %875 }
 0x12a   : > { %v5902_v32 = vpop.permute.xlu1 %880  ;;  %8868 = vst [vmem:[#allocation21_spill] sm:$0xff] %v5904_v33  ;;  %1387 = vperm.xlu0 %5437, %v1240_v49   ;;  %v1475_v33 = vld [vmem:[#allocation2 + $0x14] sm:$0xff] }
 0x12b   : > { %8867 = vst [vmem:[#allocation20_spill] sm:$0xff] %v5902_v32  ;;  %1392 = vperm.xlu1 %5438, %v1241_v48   ;;  %v1476_v32 = vld [vmem:[#allocation2 + $0x1c] sm:$0xff] }
 0x12d   : > { %v5908_v9 = vpop.permute.xlu0 %986 }
 0x12e   : > { %v5906_v8 = vpop.permute.xlu1 %991  ;;  %8870 = vst [vmem:[#allocation23_spill] sm:$0xff] %v5908_v9  ;;  %1397 = vperm.xlu0 %5437, %v1242_v1   ;;  %v1477_v9 = vld [vmem:[#allocation2 + $0x24] sm:$0xff] }
 0x12f   : > { %8869 = vst [vmem:[#allocation22_spill] sm:$0xff] %v5906_v8  ;;  %1402 = vperm.xlu1 %5438, %v1243_v0   ;;  %v1478_v8 = vld [vmem:[#allocation2 + $0x2c] sm:$0xff] }
 0x131   : > { %v5912_v25 = vpop.permute.xlu0 %996 }
 0x132   : > { %v5910_v24 = vpop.permute.xlu1 %1001  ;;  %8872 = vst [vmem:[#allocation25_spill] sm:$0xff] %v5912_v25  ;;  %1508 = vperm.xlu0 %5437, %v1473_v17   ;;  %v1479_v25 = vld [vmem:[#allocation2 + $0x34] sm:$0xff] }
 0x133   : > { %8871 = vst [vmem:[#allocation24_spill] sm:$0xff] %v5910_v24  ;;  %1513 = vperm.xlu1 %5438, %v1474_v16   ;;  %v1480_v24 = vld [vmem:[#allocation2 + $0x3c] sm:$0xff] }
 0x135   : > { %v5916_v49 = vpop.permute.xlu0 %1006 }
 0x136   : > { %v5914_v48 = vpop.permute.xlu1 %1011  ;;  %8874 = vst [vmem:[#allocation27_spill] sm:$0xff] %v5916_v49  ;;  %1518 = vperm.xlu0 %5437, %v1475_v33   ;;  %v1481_v49 = vld [vmem:[#allocation2 + $0x44] sm:$0xff] }
 0x137   : > { %8873 = vst [vmem:[#allocation26_spill] sm:$0xff] %v5914_v48  ;;  %1523 = vperm.xlu1 %5438, %v1476_v32   ;;  %v1482_v48 = vld [vmem:[#allocation2 + $0x4c] sm:$0xff] }
 0x139   : > { %v5920_v1 = vpop.permute.xlu0 %1016 }
 0x13a   : > { %v5918_v0 = vpop.permute.xlu1 %1021  ;;  %8876 = vst [vmem:[#allocation29_spill] sm:$0xff] %v5920_v1  ;;  %1528 = vperm.xlu0 %5437, %v1477_v9   ;;  %v1483_v1 = vld [vmem:[#allocation2 + $0x54] sm:$0xff] }
 0x13b   : > { %8875 = vst [vmem:[#allocation28_spill] sm:$0xff] %v5918_v0  ;;  %1533 = vperm.xlu1 %5438, %v1478_v8   ;;  %v1484_v0 = vld [vmem:[#allocation2 + $0x5c] sm:$0xff] }
 0x13d   : > { %v5924_v17 = vpop.permute.xlu0 %1026 }
 0x13e   : > { %v5922_v16 = vpop.permute.xlu1 %1031  ;;  %8878 = vst [vmem:[#allocation31_spill] sm:$0xff] %v5924_v17  ;;  %1538 = vperm.xlu0 %5437, %v1479_v25   ;;  %v1485_v17 = vld [vmem:[#allocation2 + $0x64] sm:$0xff] }
 0x13f   : > { %8877 = vst [vmem:[#allocation30_spill] sm:$0xff] %v5922_v16  ;;  %1543 = vperm.xlu1 %5438, %v1480_v24   ;;  %v1486_v16 = vld [vmem:[#allocation2 + $0x6c] sm:$0xff] }
 0x141   : > { %v5928_v33 = vpop.permute.xlu0 %1036 }
 0x142   : > { %v5926_v32 = vpop.permute.xlu1 %1041  ;;  %8880 = vst [vmem:[#allocation33_spill] sm:$0xff] %v5928_v33  ;;  %1548 = vperm.xlu0 %5437, %v1481_v49   ;;  %v1487_v33 = vld [vmem:[#allocation2 + $0x74] sm:$0xff] }
 0x143   : > { %8879 = vst [vmem:[#allocation32_spill] sm:$0xff] %v5926_v32  ;;  %1553 = vperm.xlu1 %5438, %v1482_v48   ;;  %v1488_v32 = vld [vmem:[#allocation2 + $0x7c] sm:$0xff] }
 0x145   : > { %v5932_v9 = vpop.permute.xlu0 %1046 }
 0x146   : > { %v5930_v8 = vpop.permute.xlu1 %1051  ;;  %8882 = vst [vmem:[#allocation35_spill] sm:$0xff] %v5932_v9  ;;  %1558 = vperm.xlu0 %5437, %v1483_v1   ;;  %v1489_v9 = vld [vmem:[#allocation2 + $0x84] sm:$0xff] }
 0x147   : > { %8881 = vst [vmem:[#allocation34_spill] sm:$0xff] %v5930_v8  ;;  %1563 = vperm.xlu1 %5438, %v1484_v0   ;;  %v1490_v8 = vld [vmem:[#allocation2 + $0x8c] sm:$0xff] }
 0x149   : > { %v5936_v25 = vpop.permute.xlu0 %1056 }
 0x14a   : > { %v5934_v24 = vpop.permute.xlu1 %1061  ;;  %8884 = vst [vmem:[#allocation37_spill] sm:$0xff] %v5936_v25  ;;  %1568 = vperm.xlu0 %5437, %v1485_v17   ;;  %v1491_v25 = vld [vmem:[#allocation2 + $0x94] sm:$0xff] }
 0x14b   : > { %8883 = vst [vmem:[#allocation36_spill] sm:$0xff] %v5934_v24  ;;  %1573 = vperm.xlu1 %5438, %v1486_v16   ;;  %v1492_v24 = vld [vmem:[#allocation2 + $0x9c] sm:$0xff] }
 0x14d   : > { %v5940_v49 = vpop.permute.xlu0 %1066 }
 0x14e   : > { %v5938_v48 = vpop.permute.xlu1 %1071  ;;  %8886 = vst [vmem:[#allocation39_spill] sm:$0xff] %v5940_v49  ;;  %1578 = vperm.xlu0 %5437, %v1487_v33   ;;  %v1493_v49 = vld [vmem:[#allocation2 + $0xa4] sm:$0xff] }
 0x14f   : > { %8885 = vst [vmem:[#allocation38_spill] sm:$0xff] %v5938_v48  ;;  %1583 = vperm.xlu1 %5438, %v1488_v32   ;;  %v1494_v48 = vld [vmem:[#allocation2 + $0xac] sm:$0xff] }
 0x151   : > { %v5944_v1 = vpop.permute.xlu0 %1076 }
 0x152   : > { %v5942_v0 = vpop.permute.xlu1 %1081  ;;  %8888 = vst [vmem:[#allocation41_spill] sm:$0xff] %v5944_v1  ;;  %1588 = vperm.xlu0 %5437, %v1489_v9   ;;  %v1495_v1 = vld [vmem:[#allocation2 + $0xb4] sm:$0xff] }
 0x153   : > { %8887 = vst [vmem:[#allocation40_spill] sm:$0xff] %v5942_v0  ;;  %1593 = vperm.xlu1 %5438, %v1490_v8   ;;  %v1496_v0 = vld [vmem:[#allocation2 + $0xbc] sm:$0xff] }
 0x155   : > { %v5948_v17 = vpop.permute.xlu0 %1086 }
 0x156   : > { %v5946_v16 = vpop.permute.xlu1 %1091  ;;  %8890 = vst [vmem:[#allocation43_spill] sm:$0xff] %v5948_v17  ;;  %1598 = vperm.xlu0 %5437, %v1491_v25   ;;  %v1497_v17 = vld [vmem:[#allocation2 + $0xc4] sm:$0xff] }
 0x157   : > { %8889 = vst [vmem:[#allocation42_spill] sm:$0xff] %v5946_v16  ;;  %1603 = vperm.xlu1 %5438, %v1492_v24   ;;  %v1498_v16 = vld [vmem:[#allocation2 + $0xcc] sm:$0xff] }
 0x159   : > { %v5952_v33 = vpop.permute.xlu0 %1096 }
 0x15a   : > { %v5950_v32 = vpop.permute.xlu1 %1101  ;;  %8892 = vst [vmem:[#allocation45_spill] sm:$0xff] %v5952_v33  ;;  %1608 = vperm.xlu0 %5437, %v1493_v49   ;;  %v1499_v33 = vld [vmem:[#allocation2 + $0xd4] sm:$0xff] }
 0x15b   : > { %8891 = vst [vmem:[#allocation44_spill] sm:$0xff] %v5950_v32  ;;  %1613 = vperm.xlu1 %5438, %v1494_v48   ;;  %v1500_v32 = vld [vmem:[#allocation2 + $0xdc] sm:$0xff] }
 0x15d   : > { %v5956_v9 = vpop.permute.xlu0 %1106 }
 0x15e   : > { %v5954_v8 = vpop.permute.xlu1 %1111  ;;  %8894 = vst [vmem:[#allocation47_spill] sm:$0xff] %v5956_v9  ;;  %1618 = vperm.xlu0 %5437, %v1495_v1   ;;  %v1501_v9 = vld [vmem:[#allocation2 + $0xe4] sm:$0xff] }
 0x15f   : > { %8893 = vst [vmem:[#allocation46_spill] sm:$0xff] %v5954_v8  ;;  %1623 = vperm.xlu1 %5438, %v1496_v0   ;;  %v1502_v8 = vld [vmem:[#allocation2 + $0xec] sm:$0xff] }
 0x161   : > { %v5960_v25 = vpop.permute.xlu0 %1116 }
 0x162   : > { %v5958_v24 = vpop.permute.xlu1 %1121  ;;  %8896 = vst [vmem:[#allocation49_spill] sm:$0xff] %v5960_v25  ;;  %1628 = vperm.xlu0 %5437, %v1497_v17   ;;  %v1503_v25 = vld [vmem:[#allocation2 + $0xf4] sm:$0xff] }
 0x163   : > { %8895 = vst [vmem:[#allocation48_spill] sm:$0xff] %v5958_v24  ;;  %1633 = vperm.xlu1 %5438, %v1498_v16   ;;  %v1504_v24 = vld [vmem:[#allocation2 + $0xfc] sm:$0xff] }
 0x165   : > { %v5964_v49 = vpop.permute.xlu0 %1126 }
 0x166   : > { %v5962_v48 = vpop.permute.xlu1 %1131  ;;  %8898 = vst [vmem:[#allocation51_spill] sm:$0xff] %v5964_v49  ;;  %1638 = vperm.xlu0 %5437, %v1499_v33   ;;  %v1734_v49 = vld [vmem:[#allocation2 + $0x5] sm:$0xff] }
 0x167   : > { %8897 = vst [vmem:[#allocation50_spill] sm:$0xff] %v5962_v48  ;;  %1643 = vperm.xlu1 %5438, %v1500_v32   ;;  %v1735_v48 = vld [vmem:[#allocation2 + $0xd] sm:$0xff] }
 0x169   : > { %v5968_v1 = vpop.permute.xlu0 %1136 }
 0x16a   : > { %v5966_v0 = vpop.permute.xlu1 %1141  ;;  %8900 = vst [vmem:[#allocation53_spill] sm:$0xff] %v5968_v1  ;;  %1648 = vperm.xlu0 %5437, %v1501_v9   ;;  %v1736_v1 = vld [vmem:[#allocation2 + $0x15] sm:$0xff] }
 0x16b   : > { %8899 = vst [vmem:[#allocation52_spill] sm:$0xff] %v5966_v0  ;;  %1653 = vperm.xlu1 %5438, %v1502_v8   ;;  %v1737_v0 = vld [vmem:[#allocation2 + $0x1d] sm:$0xff] }
 0x16d   : > { %v5972_v17 = vpop.permute.xlu0 %1247 }
 0x16e   : > { %v5970_v16 = vpop.permute.xlu1 %1252  ;;  %8902 = vst [vmem:[#allocation55_spill] sm:$0xff] %v5972_v17  ;;  %1658 = vperm.xlu0 %5437, %v1503_v25   ;;  %v1738_v17 = vld [vmem:[#allocation2 + $0x25] sm:$0xff] }
 0x16f   : > { %8901 = vst [vmem:[#allocation54_spill] sm:$0xff] %v5970_v16  ;;  %1663 = vperm.xlu1 %5438, %v1504_v24   ;;  %v1739_v16 = vld [vmem:[#allocation2 + $0x2d] sm:$0xff] }
 0x171   : > { %v5976_v33 = vpop.permute.xlu0 %1257 }
 0x172   : > { %v5974_v32 = vpop.permute.xlu1 %1262  ;;  %8904 = vst [vmem:[#allocation57_spill] sm:$0xff] %v5976_v33  ;;  %1769 = vperm.xlu0 %5437, %v1734_v49   ;;  %v1740_v33 = vld [vmem:[#allocation2 + $0x35] sm:$0xff] }
 0x173   : > { %8903 = vst [vmem:[#allocation56_spill] sm:$0xff] %v5974_v32  ;;  %1774 = vperm.xlu1 %5438, %v1735_v48   ;;  %v1741_v32 = vld [vmem:[#allocation2 + $0x3d] sm:$0xff] }
 0x175   : > { %v5980_v9 = vpop.permute.xlu0 %1267 }
 0x176   : > { %v5978_v8 = vpop.permute.xlu1 %1272  ;;  %8906 = vst [vmem:[#allocation59_spill] sm:$0xff] %v5980_v9  ;;  %1779 = vperm.xlu0 %5437, %v1736_v1   ;;  %v1742_v9 = vld [vmem:[#allocation2 + $0x45] sm:$0xff] }
 0x177   : > { %8905 = vst [vmem:[#allocation58_spill] sm:$0xff] %v5978_v8  ;;  %1784 = vperm.xlu1 %5438, %v1737_v0   ;;  %v1743_v8 = vld [vmem:[#allocation2 + $0x4d] sm:$0xff] }
 0x179   : > { %v5984_v25 = vpop.permute.xlu0 %1277 }
 0x17a   : > { %v5982_v24 = vpop.permute.xlu1 %1282  ;;  %8908 = vst [vmem:[#allocation61_spill] sm:$0xff] %v5984_v25  ;;  %1789 = vperm.xlu0 %5437, %v1738_v17   ;;  %v1744_v25 = vld [vmem:[#allocation2 + $0x55] sm:$0xff] }
 0x17b   : > { %8907 = vst [vmem:[#allocation60_spill] sm:$0xff] %v5982_v24  ;;  %1794 = vperm.xlu1 %5438, %v1739_v16   ;;  %v1745_v24 = vld [vmem:[#allocation2 + $0x5d] sm:$0xff] }
 0x17d   : > { %v5988_v49 = vpop.permute.xlu0 %1287 }
 0x17e   : > { %v5986_v48 = vpop.permute.xlu1 %1292  ;;  %8910 = vst [vmem:[#allocation63_spill] sm:$0xff] %v5988_v49  ;;  %1799 = vperm.xlu0 %5437, %v1740_v33   ;;  %v1746_v49 = vld [vmem:[#allocation2 + $0x65] sm:$0xff] }
 0x17f   : > { %8909 = vst [vmem:[#allocation62_spill] sm:$0xff] %v5986_v48  ;;  %1804 = vperm.xlu1 %5438, %v1741_v32   ;;  %v1747_v48 = vld [vmem:[#allocation2 + $0x6d] sm:$0xff] }
 0x181   : > { %v5992_v1 = vpop.permute.xlu0 %1297 }
 0x182   : > { %v5990_v0 = vpop.permute.xlu1 %1302  ;;  %8912 = vst [vmem:[#allocation65_spill] sm:$0xff] %v5992_v1  ;;  %1809 = vperm.xlu0 %5437, %v1742_v9   ;;  %v1748_v1 = vld [vmem:[#allocation2 + $0x75] sm:$0xff] }
 0x183   : > { %8911 = vst [vmem:[#allocation64_spill] sm:$0xff] %v5990_v0  ;;  %1814 = vperm.xlu1 %5438, %v1743_v8   ;;  %v1749_v0 = vld [vmem:[#allocation2 + $0x7d] sm:$0xff] }
 0x185   : > { %v5996_v17 = vpop.permute.xlu0 %1307 }
 0x186   : > { %v5994_v16 = vpop.permute.xlu1 %1312  ;;  %8914 = vst [vmem:[#allocation67_spill] sm:$0xff] %v5996_v17  ;;  %1819 = vperm.xlu0 %5437, %v1744_v25   ;;  %v1750_v17 = vld [vmem:[#allocation2 + $0x85] sm:$0xff] }
 0x187   : > { %8913 = vst [vmem:[#allocation66_spill] sm:$0xff] %v5994_v16  ;;  %1824 = vperm.xlu1 %5438, %v1745_v24   ;;  %v1751_v16 = vld [vmem:[#allocation2 + $0x8d] sm:$0xff] }
 0x189   : > { %v6000_v33 = vpop.permute.xlu0 %1317 }
 0x18a   : > { %v5998_v32 = vpop.permute.xlu1 %1322  ;;  %8916 = vst [vmem:[#allocation69_spill] sm:$0xff] %v6000_v33  ;;  %1829 = vperm.xlu0 %5437, %v1746_v49   ;;  %v1752_v33 = vld [vmem:[#allocation2 + $0x95] sm:$0xff] }
 0x18b   : > { %8915 = vst [vmem:[#allocation68_spill] sm:$0xff] %v5998_v32  ;;  %1834 = vperm.xlu1 %5438, %v1747_v48   ;;  %v1753_v32 = vld [vmem:[#allocation2 + $0x9d] sm:$0xff] }
 0x18d   : > { %v6004_v9 = vpop.permute.xlu0 %1327 }
 0x18e   : > { %v6002_v8 = vpop.permute.xlu1 %1332  ;;  %8918 = vst [vmem:[#allocation71_spill] sm:$0xff] %v6004_v9  ;;  %1839 = vperm.xlu0 %5437, %v1748_v1   ;;  %v1754_v9 = vld [vmem:[#allocation2 + $0xa5] sm:$0xff] }
 0x18f   : > { %8917 = vst [vmem:[#allocation70_spill] sm:$0xff] %v6002_v8  ;;  %1844 = vperm.xlu1 %5438, %v1749_v0   ;;  %v1755_v8 = vld [vmem:[#allocation2 + $0xad] sm:$0xff] }
 0x191   : > { %v6008_v25 = vpop.permute.xlu0 %1337 }
 0x192   : > { %v6006_v24 = vpop.permute.xlu1 %1342  ;;  %8920 = vst [vmem:[#allocation73_spill] sm:$0xff] %v6008_v25  ;;  %1849 = vperm.xlu0 %5437, %v1750_v17   ;;  %v1756_v25 = vld [vmem:[#allocation2 + $0xb5] sm:$0xff] }
 0x193   : > { %8919 = vst [vmem:[#allocation72_spill] sm:$0xff] %v6006_v24  ;;  %1854 = vperm.xlu1 %5438, %v1751_v16   ;;  %v1757_v24 = vld [vmem:[#allocation2 + $0xbd] sm:$0xff] }
 0x195   : > { %v6012_v49 = vpop.permute.xlu0 %1347 }
 0x196   : > { %v6010_v48 = vpop.permute.xlu1 %1352  ;;  %8922 = vst [vmem:[#allocation75_spill] sm:$0xff] %v6012_v49  ;;  %1859 = vperm.xlu0 %5437, %v1752_v33   ;;  %v1758_v49 = vld [vmem:[#allocation2 + $0xc5] sm:$0xff] }
 0x197   : > { %8921 = vst [vmem:[#allocation74_spill] sm:$0xff] %v6010_v48  ;;  %1864 = vperm.xlu1 %5438, %v1753_v32   ;;  %v1759_v48 = vld [vmem:[#allocation2 + $0xcd] sm:$0xff] }
 0x199   : > { %v6016_v1 = vpop.permute.xlu0 %1357 }
 0x19a   : > { %v6014_v0 = vpop.permute.xlu1 %1362  ;;  %8924 = vst [vmem:[#allocation77_spill] sm:$0xff] %v6016_v1  ;;  %1869 = vperm.xlu0 %5437, %v1754_v9   ;;  %v1760_v1 = vld [vmem:[#allocation2 + $0xd5] sm:$0xff] }
 0x19b   : > { %8923 = vst [vmem:[#allocation76_spill] sm:$0xff] %v6014_v0  ;;  %1874 = vperm.xlu1 %5438, %v1755_v8   ;;  %v1761_v0 = vld [vmem:[#allocation2 + $0xdd] sm:$0xff] }
 0x19d   : > { %v6020_v17 = vpop.permute.xlu0 %1367 }
 0x19e   : > { %v6018_v16 = vpop.permute.xlu1 %1372  ;;  %8926 = vst [vmem:[#allocation79_spill] sm:$0xff] %v6020_v17  ;;  %1879 = vperm.xlu0 %5437, %v1756_v25   ;;  %v1762_v17 = vld [vmem:[#allocation2 + $0xe5] sm:$0xff] }
 0x19f   : > { %8925 = vst [vmem:[#allocation78_spill] sm:$0xff] %v6018_v16  ;;  %1884 = vperm.xlu1 %5438, %v1757_v24   ;;  %v1763_v16 = vld [vmem:[#allocation2 + $0xed] sm:$0xff] }
 0x1a1   : > { %v6024_v33 = vpop.permute.xlu0 %1377 }
 0x1a2   : > { %v6022_v32 = vpop.permute.xlu1 %1382  ;;  %8928 = vst [vmem:[#allocation81_spill] sm:$0xff] %v6024_v33  ;;  %1889 = vperm.xlu0 %5437, %v1758_v49   ;;  %v1764_v33 = vld [vmem:[#allocation2 + $0xf5] sm:$0xff] }
 0x1a3   : > { %8927 = vst [vmem:[#allocation80_spill] sm:$0xff] %v6022_v32  ;;  %1894 = vperm.xlu1 %5438, %v1759_v48   ;;  %v1765_v32 = vld [vmem:[#allocation2 + $0xfd] sm:$0xff] }
 0x1a5   : > { %v6028_v9 = vpop.permute.xlu0 %1387 }
 0x1a6   : > { %v6026_v8 = vpop.permute.xlu1 %1392  ;;  %8930 = vst [vmem:[#allocation83_spill] sm:$0xff] %v6028_v9  ;;  %1899 = vperm.xlu0 %5437, %v1760_v1   ;;  %v1995_v9 = vld [vmem:[#allocation2 + $0x6] sm:$0xff] }
 0x1a7   : > { %8929 = vst [vmem:[#allocation82_spill] sm:$0xff] %v6026_v8  ;;  %1904 = vperm.xlu1 %5438, %v1761_v0   ;;  %v1996_v8 = vld [vmem:[#allocation2 + $0xe] sm:$0xff] }
 0x1a9   : > { %v6032_v25 = vpop.permute.xlu0 %1397 }
 0x1aa   : > { %v6030_v24 = vpop.permute.xlu1 %1402  ;;  %8932 = vst [vmem:[#allocation85_spill] sm:$0xff] %v6032_v25  ;;  %1909 = vperm.xlu0 %5437, %v1762_v17   ;;  %v1997_v25 = vld [vmem:[#allocation2 + $0x16] sm:$0xff] }
 0x1ab   : > { %8931 = vst [vmem:[#allocation84_spill] sm:$0xff] %v6030_v24  ;;  %1914 = vperm.xlu1 %5438, %v1763_v16   ;;  %v1998_v24 = vld [vmem:[#allocation2 + $0x1e] sm:$0xff] }
 0x1ad   : > { %v6036_v49 = vpop.permute.xlu0 %1508 }
 0x1ae   : > { %v6034_v48 = vpop.permute.xlu1 %1513  ;;  %8934 = vst [vmem:[#allocation87_spill] sm:$0xff] %v6036_v49  ;;  %1919 = vperm.xlu0 %5437, %v1764_v33   ;;  %v1999_v49 = vld [vmem:[#allocation2 + $0x26] sm:$0xff] }
 0x1af   : > { %8933 = vst [vmem:[#allocation86_spill] sm:$0xff] %v6034_v48  ;;  %1924 = vperm.xlu1 %5438, %v1765_v32   ;;  %v2000_v48 = vld [vmem:[#allocation2 + $0x2e] sm:$0xff] }
 0x1b1   : > { %v6040_v1 = vpop.permute.xlu0 %1518 }
 0x1b2   : > { %v6038_v0 = vpop.permute.xlu1 %1523  ;;  %8936 = vst [vmem:[#allocation89_spill] sm:$0xff] %v6040_v1  ;;  %2030 = vperm.xlu0 %5437, %v1995_v9   ;;  %v2001_v1 = vld [vmem:[#allocation2 + $0x36] sm:$0xff] }
 0x1b3   : > { %8935 = vst [vmem:[#allocation88_spill] sm:$0xff] %v6038_v0  ;;  %2035 = vperm.xlu1 %5438, %v1996_v8   ;;  %v2002_v0 = vld [vmem:[#allocation2 + $0x3e] sm:$0xff] }
 0x1b5   : > { %v6044_v17 = vpop.permute.xlu0 %1528 }
 0x1b6   : > { %v6042_v16 = vpop.permute.xlu1 %1533  ;;  %8938 = vst [vmem:[#allocation91_spill] sm:$0xff] %v6044_v17  ;;  %2040 = vperm.xlu0 %5437, %v1997_v25   ;;  %v2003_v17 = vld [vmem:[#allocation2 + $0x46] sm:$0xff] }
 0x1b7   : > { %8937 = vst [vmem:[#allocation90_spill] sm:$0xff] %v6042_v16  ;;  %2045 = vperm.xlu1 %5438, %v1998_v24   ;;  %v2004_v16 = vld [vmem:[#allocation2 + $0x4e] sm:$0xff] }
 0x1b9   : > { %v6048_v33 = vpop.permute.xlu0 %1538 }
 0x1ba   : > { %v6046_v32 = vpop.permute.xlu1 %1543  ;;  %8940 = vst [vmem:[#allocation93_spill] sm:$0xff] %v6048_v33  ;;  %2050 = vperm.xlu0 %5437, %v1999_v49   ;;  %v2005_v33 = vld [vmem:[#allocation2 + $0x56] sm:$0xff] }
 0x1bb   : > { %8939 = vst [vmem:[#allocation92_spill] sm:$0xff] %v6046_v32  ;;  %2055 = vperm.xlu1 %5438, %v2000_v48   ;;  %v2006_v32 = vld [vmem:[#allocation2 + $0x5e] sm:$0xff] }
 0x1bd   : > { %v6052_v9 = vpop.permute.xlu0 %1548 }
 0x1be   : > { %v6050_v8 = vpop.permute.xlu1 %1553  ;;  %8942 = vst [vmem:[#allocation95_spill] sm:$0xff] %v6052_v9  ;;  %2060 = vperm.xlu0 %5437, %v2001_v1   ;;  %v2007_v9 = vld [vmem:[#allocation2 + $0x66] sm:$0xff] }
 0x1bf   : > { %8941 = vst [vmem:[#allocation94_spill] sm:$0xff] %v6050_v8  ;;  %2065 = vperm.xlu1 %5438, %v2002_v0   ;;  %v2008_v8 = vld [vmem:[#allocation2 + $0x6e] sm:$0xff] }
 0x1c1   : > { %v6056_v25 = vpop.permute.xlu0 %1558 }
 0x1c2   : > { %v6054_v24 = vpop.permute.xlu1 %1563  ;;  %8944 = vst [vmem:[#allocation97_spill] sm:$0xff] %v6056_v25  ;;  %2070 = vperm.xlu0 %5437, %v2003_v17   ;;  %v2009_v25 = vld [vmem:[#allocation2 + $0x76] sm:$0xff] }
 0x1c3   : > { %8943 = vst [vmem:[#allocation96_spill] sm:$0xff] %v6054_v24  ;;  %2075 = vperm.xlu1 %5438, %v2004_v16   ;;  %v2010_v24 = vld [vmem:[#allocation2 + $0x7e] sm:$0xff] }
 0x1c5   : > { %v6060_v49 = vpop.permute.xlu0 %1568 }
 0x1c6   : > { %v6058_v48 = vpop.permute.xlu1 %1573  ;;  %8946 = vst [vmem:[#allocation99_spill] sm:$0xff] %v6060_v49  ;;  %2080 = vperm.xlu0 %5437, %v2005_v33   ;;  %v2011_v49 = vld [vmem:[#allocation2 + $0x86] sm:$0xff] }
 0x1c7   : > { %8945 = vst [vmem:[#allocation98_spill] sm:$0xff] %v6058_v48  ;;  %2085 = vperm.xlu1 %5438, %v2006_v32   ;;  %v2012_v48 = vld [vmem:[#allocation2 + $0x8e] sm:$0xff] }
 0x1c9   : > { %v6064_v1 = vpop.permute.xlu0 %1578 }
 0x1ca   : > { %v6062_v0 = vpop.permute.xlu1 %1583  ;;  %8948 = vst [vmem:[#allocation101_spill] sm:$0xff] %v6064_v1  ;;  %2090 = vperm.xlu0 %5437, %v2007_v9   ;;  %v2013_v1 = vld [vmem:[#allocation2 + $0x96] sm:$0xff] }
 0x1cb   : > { %8947 = vst [vmem:[#allocation100_spill] sm:$0xff] %v6062_v0  ;;  %2095 = vperm.xlu1 %5438, %v2008_v8   ;;  %v2014_v0 = vld [vmem:[#allocation2 + $0x9e] sm:$0xff] }
 0x1cd   : > { %v6068_v17 = vpop.permute.xlu0 %1588 }
 0x1ce   : > { %v6066_v16 = vpop.permute.xlu1 %1593  ;;  %8950 = vst [vmem:[#allocation103_spill] sm:$0xff] %v6068_v17  ;;  %2100 = vperm.xlu0 %5437, %v2009_v25   ;;  %v2015_v17 = vld [vmem:[#allocation2 + $0xa6] sm:$0xff] }
 0x1cf   : > { %8949 = vst [vmem:[#allocation102_spill] sm:$0xff] %v6066_v16  ;;  %2105 = vperm.xlu1 %5438, %v2010_v24   ;;  %v2016_v16 = vld [vmem:[#allocation2 + $0xae] sm:$0xff] }
 0x1d1   : > { %v6072_v33 = vpop.permute.xlu0 %1598 }
 0x1d2   : > { %v6070_v32 = vpop.permute.xlu1 %1603  ;;  %8952 = vst [vmem:[#allocation105_spill] sm:$0xff] %v6072_v33  ;;  %2110 = vperm.xlu0 %5437, %v2011_v49   ;;  %v2017_v33 = vld [vmem:[#allocation2 + $0xb6] sm:$0xff] }
 0x1d3   : > { %8951 = vst [vmem:[#allocation104_spill] sm:$0xff] %v6070_v32  ;;  %2115 = vperm.xlu1 %5438, %v2012_v48   ;;  %v2018_v32 = vld [vmem:[#allocation2 + $0xbe] sm:$0xff] }
 0x1d5   : > { %v6076_v9 = vpop.permute.xlu0 %1608 }
 0x1d6   : > { %v6074_v8 = vpop.permute.xlu1 %1613  ;;  %8954 = vst [vmem:[#allocation107_spill] sm:$0xff] %v6076_v9  ;;  %2120 = vperm.xlu0 %5437, %v2013_v1   ;;  %v2019_v9 = vld [vmem:[#allocation2 + $0xc6] sm:$0xff] }
 0x1d7   : > { %8953 = vst [vmem:[#allocation106_spill] sm:$0xff] %v6074_v8  ;;  %2125 = vperm.xlu1 %5438, %v2014_v0   ;;  %v2020_v8 = vld [vmem:[#allocation2 + $0xce] sm:$0xff] }
 0x1d9   : > { %v6080_v25 = vpop.permute.xlu0 %1618 }
 0x1da   : > { %v6078_v24 = vpop.permute.xlu1 %1623  ;;  %8956 = vst [vmem:[#allocation109_spill] sm:$0xff] %v6080_v25  ;;  %2130 = vperm.xlu0 %5437, %v2015_v17   ;;  %v2021_v25 = vld [vmem:[#allocation2 + $0xd6] sm:$0xff] }
 0x1db   : > { %8955 = vst [vmem:[#allocation108_spill] sm:$0xff] %v6078_v24  ;;  %2135 = vperm.xlu1 %5438, %v2016_v16   ;;  %v2022_v24 = vld [vmem:[#allocation2 + $0xde] sm:$0xff] }
 0x1dd   : > { %v6084_v49 = vpop.permute.xlu0 %1628 }
 0x1de   : > { %v6082_v48 = vpop.permute.xlu1 %1633  ;;  %8958 = vst [vmem:[#allocation111_spill] sm:$0xff] %v6084_v49  ;;  %2140 = vperm.xlu0 %5437, %v2017_v33   ;;  %v2023_v49 = vld [vmem:[#allocation2 + $0xe6] sm:$0xff] }
 0x1df   : > { %8957 = vst [vmem:[#allocation110_spill] sm:$0xff] %v6082_v48  ;;  %2145 = vperm.xlu1 %5438, %v2018_v32   ;;  %v2024_v48 = vld [vmem:[#allocation2 + $0xee] sm:$0xff] }
 0x1e1   : > { %v6088_v1 = vpop.permute.xlu0 %1638 }
 0x1e2   : > { %v6086_v0 = vpop.permute.xlu1 %1643  ;;  %8960 = vst [vmem:[#allocation113_spill] sm:$0xff] %v6088_v1  ;;  %2150 = vperm.xlu0 %5437, %v2019_v9   ;;  %v2025_v1 = vld [vmem:[#allocation2 + $0xf6] sm:$0xff] }
 0x1e3   : > { %8959 = vst [vmem:[#allocation112_spill] sm:$0xff] %v6086_v0  ;;  %2155 = vperm.xlu1 %5438, %v2020_v8   ;;  %v2026_v0 = vld [vmem:[#allocation2 + $0xfe] sm:$0xff] }
 0x1e5   : > { %v6092_v17 = vpop.permute.xlu0 %1648 }
 0x1e6   : > { %v6090_v16 = vpop.permute.xlu1 %1653  ;;  %8962 = vst [vmem:[#allocation115_spill] sm:$0xff] %v6092_v17  ;;  %2160 = vperm.xlu0 %5437, %v2021_v25   ;;  %v2256_v17 = vld [vmem:[#allocation2 + $0x7] sm:$0xff] }
 0x1e7   : > { %8961 = vst [vmem:[#allocation114_spill] sm:$0xff] %v6090_v16  ;;  %2165 = vperm.xlu1 %5438, %v2022_v24   ;;  %v2257_v16 = vld [vmem:[#allocation2 + $0xf] sm:$0xff] }
 0x1e9   : > { %v6096_v33 = vpop.permute.xlu0 %1658 }
 0x1ea   : > { %v6094_v32 = vpop.permute.xlu1 %1663  ;;  %8964 = vst [vmem:[#allocation117_spill] sm:$0xff] %v6096_v33  ;;  %2170 = vperm.xlu0 %5437, %v2023_v49   ;;  %v2258_v33 = vld [vmem:[#allocation2 + $0x17] sm:$0xff] }
 0x1eb   : > { %8963 = vst [vmem:[#allocation116_spill] sm:$0xff] %v6094_v32  ;;  %2175 = vperm.xlu1 %5438, %v2024_v48   ;;  %v2259_v32 = vld [vmem:[#allocation2 + $0x1f] sm:$0xff] }
 0x1ed   : > { %v6100_v9 = vpop.permute.xlu0 %1769 }
 0x1ee   : > { %v6098_v8 = vpop.permute.xlu1 %1774  ;;  %8966 = vst [vmem:[#allocation119_spill] sm:$0xff] %v6100_v9  ;;  %2180 = vperm.xlu0 %5437, %v2025_v1   ;;  %v2260_v9 = vld [vmem:[#allocation2 + $0x27] sm:$0xff] }
 0x1ef   : > { %8965 = vst [vmem:[#allocation118_spill] sm:$0xff] %v6098_v8  ;;  %2185 = vperm.xlu1 %5438, %v2026_v0   ;;  %v2261_v8 = vld [vmem:[#allocation2 + $0x2f] sm:$0xff] }
 0x1f1   : > { %v6104_v25 = vpop.permute.xlu0 %1779 }
 0x1f2   : > { %v6102_v24 = vpop.permute.xlu1 %1784  ;;  %8968 = vst [vmem:[#allocation121_spill] sm:$0xff] %v6104_v25  ;;  %2291 = vperm.xlu0 %5437, %v2256_v17   ;;  %v2262_v25 = vld [vmem:[#allocation2 + $0x37] sm:$0xff] }
 0x1f3   : > { %8967 = vst [vmem:[#allocation120_spill] sm:$0xff] %v6102_v24  ;;  %2296 = vperm.xlu1 %5438, %v2257_v16   ;;  %v2263_v24 = vld [vmem:[#allocation2 + $0x3f] sm:$0xff] }
 0x1f5   : > { %v6108_v49 = vpop.permute.xlu0 %1789 }
 0x1f6   : > { %v6106_v48 = vpop.permute.xlu1 %1794  ;;  %8970 = vst [vmem:[#allocation123_spill] sm:$0xff] %v6108_v49  ;;  %2301 = vperm.xlu0 %5437, %v2258_v33   ;;  %v2264_v49 = vld [vmem:[#allocation2 + $0x47] sm:$0xff] }
 0x1f7   : > { %8969 = vst [vmem:[#allocation122_spill] sm:$0xff] %v6106_v48  ;;  %2306 = vperm.xlu1 %5438, %v2259_v32   ;;  %v2265_v48 = vld [vmem:[#allocation2 + $0x4f] sm:$0xff] }
 0x1f9   : > { %v6112_v1 = vpop.permute.xlu0 %1799 }
 0x1fa   : > { %v6110_v0 = vpop.permute.xlu1 %1804  ;;  %8972 = vst [vmem:[#allocation125_spill] sm:$0xff] %v6112_v1  ;;  %2311 = vperm.xlu0 %5437, %v2260_v9   ;;  %v2266_v1 = vld [vmem:[#allocation2 + $0x57] sm:$0xff] }
 0x1fb   : > { %8971 = vst [vmem:[#allocation124_spill] sm:$0xff] %v6110_v0  ;;  %2316 = vperm.xlu1 %5438, %v2261_v8   ;;  %v2267_v0 = vld [vmem:[#allocation2 + $0x5f] sm:$0xff] }
 0x1fd   : > { %v6116_v17 = vpop.permute.xlu0 %1809 }
 0x1fe   : > { %v6114_v16 = vpop.permute.xlu1 %1814  ;;  %8974 = vst [vmem:[#allocation127_spill] sm:$0xff] %v6116_v17  ;;  %2321 = vperm.xlu0 %5437, %v2262_v25   ;;  %v2268_v17 = vld [vmem:[#allocation2 + $0x67] sm:$0xff] }
 0x1ff   : > { %8973 = vst [vmem:[#allocation126_spill] sm:$0xff] %v6114_v16  ;;  %2326 = vperm.xlu1 %5438, %v2263_v24   ;;  %v2269_v16 = vld [vmem:[#allocation2 + $0x6f] sm:$0xff] }
 0x201   : > { %v6120_v33 = vpop.permute.xlu0 %1819 }
 0x202   : > { %v6118_v32 = vpop.permute.xlu1 %1824  ;;  %8976 = vst [vmem:[#allocation129_spill] sm:$0xff] %v6120_v33  ;;  %2331 = vperm.xlu0 %5437, %v2264_v49   ;;  %v2270_v33 = vld [vmem:[#allocation2 + $0x77] sm:$0xff] }
 0x203   : > { %8975 = vst [vmem:[#allocation128_spill] sm:$0xff] %v6118_v32  ;;  %2336 = vperm.xlu1 %5438, %v2265_v48   ;;  %v2271_v32 = vld [vmem:[#allocation2 + $0x7f] sm:$0xff] }
 0x205   : > { %v6124_v9 = vpop.permute.xlu0 %1829 }
 0x206   : > { %v6122_v8 = vpop.permute.xlu1 %1834  ;;  %8978 = vst [vmem:[#allocation131_spill] sm:$0xff] %v6124_v9  ;;  %2341 = vperm.xlu0 %5437, %v2266_v1   ;;  %v2272_v9 = vld [vmem:[#allocation2 + $0x87] sm:$0xff] }
 0x207   : > { %8977 = vst [vmem:[#allocation130_spill] sm:$0xff] %v6122_v8  ;;  %2346 = vperm.xlu1 %5438, %v2267_v0   ;;  %v2273_v8 = vld [vmem:[#allocation2 + $0x8f] sm:$0xff] }
 0x209   : > { %v6128_v25 = vpop.permute.xlu0 %1839 }
 0x20a   : > { %v6126_v24 = vpop.permute.xlu1 %1844  ;;  %8980 = vst [vmem:[#allocation133_spill] sm:$0xff] %v6128_v25  ;;  %2351 = vperm.xlu0 %5437, %v2268_v17   ;;  %v2274_v25 = vld [vmem:[#allocation2 + $0x97] sm:$0xff] }
 0x20b   : > { %8979 = vst [vmem:[#allocation132_spill] sm:$0xff] %v6126_v24  ;;  %2356 = vperm.xlu1 %5438, %v2269_v16   ;;  %v2275_v24 = vld [vmem:[#allocation2 + $0x9f] sm:$0xff] }
 0x20d   : > { %v6132_v49 = vpop.permute.xlu0 %1849 }
 0x20e   : > { %v6130_v48 = vpop.permute.xlu1 %1854  ;;  %8982 = vst [vmem:[#allocation135_spill] sm:$0xff] %v6132_v49  ;;  %2361 = vperm.xlu0 %5437, %v2270_v33   ;;  %v2276_v49 = vld [vmem:[#allocation2 + $0xa7] sm:$0xff] }
 0x20f   : > { %8981 = vst [vmem:[#allocation134_spill] sm:$0xff] %v6130_v48  ;;  %2366 = vperm.xlu1 %5438, %v2271_v32   ;;  %v2277_v48 = vld [vmem:[#allocation2 + $0xaf] sm:$0xff] }
 0x211   : > { %v6136_v1 = vpop.permute.xlu0 %1859 }
 0x212   : > { %v6134_v0 = vpop.permute.xlu1 %1864  ;;  %8984 = vst [vmem:[#allocation137_spill] sm:$0xff] %v6136_v1  ;;  %2371 = vperm.xlu0 %5437, %v2272_v9  }
 0x213   : > { %8983 = vst [vmem:[#allocation136_spill] sm:$0xff] %v6134_v0  ;;  %2376 = vperm.xlu1 %5438, %v2273_v8   ;;  %v2279_v0 = vld [vmem:[#allocation2 + $0xbf] sm:$0xff]  ;;  %v2278_v8 = vld [vmem:[#allocation2 + $0xb7] sm:$0xff] }
 0x215   : > { %v6140_v17 = vpop.permute.xlu0 %1869 }
 0x216   : > { %v6138_v16 = vpop.permute.xlu1 %1874  ;;  %8986 = vst [vmem:[#allocation139_spill] sm:$0xff] %v6140_v17  ;;  %2381 = vperm.xlu0 %5437, %v2274_v25   ;;  %v2281_v17 = vld [vmem:[#allocation2 + $0xcf] sm:$0xff] }
 0x217   : > { %8985 = vst [vmem:[#allocation138_spill] sm:$0xff] %v6138_v16  ;;  %2386 = vperm.xlu1 %5438, %v2275_v24   ;;  %v2280_v24 = vld [vmem:[#allocation2 + $0xc7] sm:$0xff] }
 0x219   : > { %v6144_v33 = vpop.permute.xlu0 %1879 }
 0x21a   : > { %v6142_v32 = vpop.permute.xlu1 %1884  ;;  %8988 = vst [vmem:[#allocation141_spill] sm:$0xff] %v6144_v33  ;;  %2391 = vperm.xlu0 %5437, %v2276_v49   ;;  %v2283_v33 = vld [vmem:[#allocation2 + $0xdf] sm:$0xff] }
 0x21b   : > { %8987 = vst [vmem:[#allocation140_spill] sm:$0xff] %v6142_v32  ;;  %2396 = vperm.xlu1 %5438, %v2277_v48   ;;  %v2282_v48 = vld [vmem:[#allocation2 + $0xd7] sm:$0xff] }
 0x21d   : > { %v6148_v1 = vpop.permute.xlu0 %1889 }
 0x21e   : > { %v6146_v9 = vpop.permute.xlu1 %1894  ;;  %8989 = vst [vmem:[#allocation142_spill] sm:$0xff] %v6148_v1  ;;  %2401 = vperm.xlu0 %5437, %v2278_v8   ;;  %v2284_v8 = vld [vmem:[#allocation2 + $0xe7] sm:$0xff] }
 0x21f   : > { %2406 = vperm.xlu1 %5438, %v2279_v0   ;;  %v2285_v0 = vld [vmem:[#allocation2 + $0xef] sm:$0xff] }
 0x221   : > { %v6152_v16 = vpop.permute.xlu0 %1899 }
 0x222   : > { %v6150_v25 = vpop.permute.xlu1 %1904  ;;  %8991 = vst [vmem:[#allocation144_spill] sm:$0xff] %v6152_v16  ;;  %2411 = vperm.xlu0 %5437, %v2280_v24   ;;  %v2286_v24 = vld [vmem:[#allocation2 + $0xf7] sm:$0xff] }
 0x223   : > { %8990 = vst [vmem:[#allocation143_spill] sm:$0xff] %v6150_v25  ;;  %2416 = vperm.xlu1 %5438, %v2281_v17   ;;  %v2287_v17 = vld [vmem:[#allocation2 + $0xff] sm:$0xff] }
 0x225   : > { %v6156_v32 = vpop.permute.xlu0 %1909 }
 0x226   : > { %v6154_v49 = vpop.permute.xlu1 %1914  ;;  %8993 = vst [vmem:[#allocation146_spill] sm:$0xff] %v6156_v32  ;;  %2421 = vperm.xlu0 %5437, %v2282_v48   ;;  %v2517_v48 = vld [vmem:[#allocation2 + $0x8] sm:$0xff] }
 0x227   : > { %8992 = vst [vmem:[#allocation145_spill] sm:$0xff] %v6154_v49  ;;  %2426 = vperm.xlu1 %5438, %v2283_v33   ;;  %v2518_v33 = vld [vmem:[#allocation2 + $0x10] sm:$0xff] }
 0x229   : > { %v6162_v25 = vpop.permute.xlu0 %1919 }
 0x22a   : > { %v6160_v1 = vpop.permute.xlu1 %1924  ;;  %8995 = vst [vmem:[#allocation148_spill] sm:$0xff] %v6162_v25  ;;  %2431 = vperm.xlu0 %5437, %v2284_v8   ;;  %v2519_v25 = vld [vmem:[#allocation2 + $0x18] sm:$0xff] }
 0x22b   : > { %8994 = vst [vmem:[#allocation147_spill] sm:$0xff] %v6160_v1  ;;  %2436 = vperm.xlu1 %5438, %v2285_v0   ;;  %v2520_v1 = vld [vmem:[#allocation2 + $0x20] sm:$0xff] }
 0x22d   : > { %v6166_v49 = vpop.permute.xlu0 %2030 }
 0x22e   : > { %v6164_v16 = vpop.permute.xlu1 %2035  ;;  %8997 = vst [vmem:[#allocation150_spill] sm:$0xff] %v6166_v49  ;;  %2441 = vperm.xlu0 %5437, %v2286_v24   ;;  %v2521_v49 = vld [vmem:[#allocation2 + $0x28] sm:$0xff] }
 0x22f   : > { %8996 = vst [vmem:[#allocation149_spill] sm:$0xff] %v6164_v16  ;;  %2446 = vperm.xlu1 %5438, %v2287_v17   ;;  %v2522_v16 = vld [vmem:[#allocation2 + $0x30] sm:$0xff] }
 0x231   : > { %v6170_v57 = vpop.permute.xlu0 %2040 }
 0x232   : > { %v6168_v32 = vpop.permute.xlu1 %2045  ;;  %8999 = vst [vmem:[#allocation152_spill] sm:$0xff] %v6170_v57  ;;  %2552 = vperm.xlu0 %5437, %v2517_v48   ;;  %v2523_v57 = vld [vmem:[#allocation2 + $0x38] sm:$0xff] }
 0x233   : > { %8998 = vst [vmem:[#allocation151_spill] sm:$0xff] %v6168_v32  ;;  %2557 = vperm.xlu1 %5438, %v2518_v33   ;;  %v2524_v32 = vld [vmem:[#allocation2 + $0x40] sm:$0xff] }
 0x235   : > { %v6174_v8 = vpop.permute.xlu0 %2050 }
 0x236   : > { %v6172_v0 = vpop.permute.xlu1 %2055  ;;  %9001 = vst [vmem:[#allocation154_spill] sm:$0xff] %v6174_v8  ;;  %2562 = vperm.xlu0 %5437, %v2519_v25   ;;  %v2525_v8 = vld [vmem:[#allocation2 + $0x48] sm:$0xff] }
 0x237   : > { %9000 = vst [vmem:[#allocation153_spill] sm:$0xff] %v6172_v0  ;;  %2567 = vperm.xlu1 %5438, %v2520_v1   ;;  %v2526_v0 = vld [vmem:[#allocation2 + $0x50] sm:$0xff] }
 0x239   : > { %v6178_v24 = vpop.permute.xlu0 %2060 }
 0x23a   : > { %v6176_v17 = vpop.permute.xlu1 %2065  ;;  %9003 = vst [vmem:[#allocation156_spill] sm:$0xff] %v6178_v24  ;;  %2572 = vperm.xlu0 %5437, %v2521_v49   ;;  %v2527_v24 = vld [vmem:[#allocation2 + $0x58] sm:$0xff] }
 0x23b   : > { %9002 = vst [vmem:[#allocation155_spill] sm:$0xff] %v6176_v17  ;;  %2577 = vperm.xlu1 %5438, %v2522_v16   ;;  %v2528_v17 = vld [vmem:[#allocation2 + $0x60] sm:$0xff] }
 0x23d   : > { %v6182_v48 = vpop.permute.xlu0 %2070 }
 0x23e   : > { %v6180_v33 = vpop.permute.xlu1 %2075  ;;  %9005 = vst [vmem:[#allocation158_spill] sm:$0xff] %v6182_v48  ;;  %2582 = vperm.xlu0 %5437, %v2523_v57   ;;  %v2529_v48 = vld [vmem:[#allocation2 + $0x68] sm:$0xff] }
 0x23f   : > { %9004 = vst [vmem:[#allocation157_spill] sm:$0xff] %v6180_v33  ;;  %2587 = vperm.xlu1 %5438, %v2524_v32   ;;  %v2530_v33 = vld [vmem:[#allocation2 + $0x70] sm:$0xff] }
 0x241   : > { %v6186_v25 = vpop.permute.xlu0 %2080 }
 0x242   : > { %v6184_v1 = vpop.permute.xlu1 %2085  ;;  %9007 = vst [vmem:[#allocation160_spill] sm:$0xff] %v6186_v25  ;;  %2592 = vperm.xlu0 %5437, %v2525_v8   ;;  %v2531_v25 = vld [vmem:[#allocation2 + $0x78] sm:$0xff] }
 0x243   : > { %9006 = vst [vmem:[#allocation159_spill] sm:$0xff] %v6184_v1  ;;  %2597 = vperm.xlu1 %5438, %v2526_v0   ;;  %v2532_v1 = vld [vmem:[#allocation2 + $0x80] sm:$0xff] }
 0x245   : > { %v6190_v49 = vpop.permute.xlu0 %2090 }
 0x246   : > { %v6188_v16 = vpop.permute.xlu1 %2095  ;;  %9009 = vst [vmem:[#allocation162_spill] sm:$0xff] %v6190_v49  ;;  %2602 = vperm.xlu0 %5437, %v2527_v24   ;;  %v2533_v49 = vld [vmem:[#allocation2 + $0x88] sm:$0xff] }
 0x247   : > { %9008 = vst [vmem:[#allocation161_spill] sm:$0xff] %v6188_v16  ;;  %2607 = vperm.xlu1 %5438, %v2528_v17   ;;  %v2534_v16 = vld [vmem:[#allocation2 + $0x90] sm:$0xff] }
 0x249   : > { %v6194_v57 = vpop.permute.xlu0 %2100 }
 0x24a   : > { %v6192_v32 = vpop.permute.xlu1 %2105  ;;  %9011 = vst [vmem:[#allocation164_spill] sm:$0xff] %v6194_v57  ;;  %2612 = vperm.xlu0 %5437, %v2529_v48   ;;  %v2535_v57 = vld [vmem:[#allocation2 + $0x98] sm:$0xff] }
 0x24b   : > { %9010 = vst [vmem:[#allocation163_spill] sm:$0xff] %v6192_v32  ;;  %2617 = vperm.xlu1 %5438, %v2530_v33   ;;  %v2536_v32 = vld [vmem:[#allocation2 + $0xa0] sm:$0xff] }
 0x24d   : > { %v6198_v8 = vpop.permute.xlu0 %2110 }
 0x24e   : > { %v6196_v0 = vpop.permute.xlu1 %2115  ;;  %9013 = vst [vmem:[#allocation166_spill] sm:$0xff] %v6198_v8  ;;  %2622 = vperm.xlu0 %5437, %v2531_v25   ;;  %v2537_v8 = vld [vmem:[#allocation2 + $0xa8] sm:$0xff] }
 0x24f   : > { %9012 = vst [vmem:[#allocation165_spill] sm:$0xff] %v6196_v0  ;;  %2627 = vperm.xlu1 %5438, %v2532_v1   ;;  %v2538_v0 = vld [vmem:[#allocation2 + $0xb0] sm:$0xff] }
 0x251   : > { %v6202_v24 = vpop.permute.xlu0 %2120 }
 0x252   : > { %v6200_v17 = vpop.permute.xlu1 %2125  ;;  %9015 = vst [vmem:[#allocation168_spill] sm:$0xff] %v6202_v24  ;;  %2632 = vperm.xlu0 %5437, %v2533_v49   ;;  %v2539_v24 = vld [vmem:[#allocation2 + $0xb8] sm:$0xff] }
 0x253   : > { %9014 = vst [vmem:[#allocation167_spill] sm:$0xff] %v6200_v17  ;;  %2637 = vperm.xlu1 %5438, %v2534_v16   ;;  %v2540_v17 = vld [vmem:[#allocation2 + $0xc0] sm:$0xff] }
 0x255   : > { %v6206_v48 = vpop.permute.xlu0 %2130 }
 0x256   : > { %v6204_v33 = vpop.permute.xlu1 %2135  ;;  %9017 = vst [vmem:[#allocation170_spill] sm:$0xff] %v6206_v48  ;;  %2642 = vperm.xlu0 %5437, %v2535_v57   ;;  %v2541_v48 = vld [vmem:[#allocation2 + $0xc8] sm:$0xff] }
 0x257   : > { %9016 = vst [vmem:[#allocation169_spill] sm:$0xff] %v6204_v33  ;;  %2647 = vperm.xlu1 %5438, %v2536_v32   ;;  %v2542_v33 = vld [vmem:[#allocation2 + $0xd0] sm:$0xff] }
 0x259   : > { %v6210_v25 = vpop.permute.xlu0 %2140 }
 0x25a   : > { %v6208_v1 = vpop.permute.xlu1 %2145  ;;  %9019 = vst [vmem:[#allocation172_spill] sm:$0xff] %v6210_v25  ;;  %2652 = vperm.xlu0 %5437, %v2537_v8   ;;  %v2543_v25 = vld [vmem:[#allocation2 + $0xd8] sm:$0xff] }
 0x25b   : > { %9018 = vst [vmem:[#allocation171_spill] sm:$0xff] %v6208_v1  ;;  %2657 = vperm.xlu1 %5438, %v2538_v0   ;;  %v2544_v1 = vld [vmem:[#allocation2 + $0xe0] sm:$0xff] }
 0x25d   : > { %v6214_v49 = vpop.permute.xlu0 %2150 }
 0x25e   : > { %v6212_v16 = vpop.permute.xlu1 %2155  ;;  %9021 = vst [vmem:[#allocation174_spill] sm:$0xff] %v6214_v49  ;;  %2662 = vperm.xlu0 %5437, %v2539_v24   ;;  %v2545_v49 = vld [vmem:[#allocation2 + $0xe8] sm:$0xff] }
 0x25f   : > { %9020 = vst [vmem:[#allocation173_spill] sm:$0xff] %v6212_v16  ;;  %2667 = vperm.xlu1 %5438, %v2540_v17   ;;  %v2546_v16 = vld [vmem:[#allocation2 + $0xf0] sm:$0xff] }
 0x261   : > { %v6218_v57 = vpop.permute.xlu0 %2160 }
 0x262   : > { %v6216_v32 = vpop.permute.xlu1 %2165  ;;  %9023 = vst [vmem:[#allocation176_spill] sm:$0xff] %v6218_v57  ;;  %2672 = vperm.xlu0 %5437, %v2541_v48   ;;  %v2547_v57 = vld [vmem:[#allocation2 + $0xf8] sm:$0xff] }
 0x263   : > { %9022 = vst [vmem:[#allocation175_spill] sm:$0xff] %v6216_v32  ;;  %2677 = vperm.xlu1 %5438, %v2542_v33   ;;  %v2548_v32 = vld [vmem:[#allocation2 + $0x100] sm:$0xff] }
 0x265   : > { %v6222_v8 = vpop.permute.xlu0 %2170 }
 0x266   : > { %v6220_v0 = vpop.permute.xlu1 %2175  ;;  %9025 = vst [vmem:[#allocation178_spill] sm:$0xff] %v6222_v8  ;;  %2682 = vperm.xlu0 %5437, %v2543_v25   ;;  %v2778_v8 = vld [vmem:[#allocation2 + $0x9] sm:$0xff] }
 0x267   : > { %9024 = vst [vmem:[#allocation177_spill] sm:$0xff] %v6220_v0  ;;  %2687 = vperm.xlu1 %5438, %v2544_v1   ;;  %v2779_v0 = vld [vmem:[#allocation2 + $0x11] sm:$0xff] }
 0x269   : > { %v6226_v24 = vpop.permute.xlu0 %2180 }
 0x26a   : > { %v6224_v17 = vpop.permute.xlu1 %2185  ;;  %9027 = vst [vmem:[#allocation180_spill] sm:$0xff] %v6226_v24  ;;  %2692 = vperm.xlu0 %5437, %v2545_v49   ;;  %v2780_v24 = vld [vmem:[#allocation2 + $0x19] sm:$0xff] }
 0x26b   : > { %9026 = vst [vmem:[#allocation179_spill] sm:$0xff] %v6224_v17  ;;  %2697 = vperm.xlu1 %5438, %v2546_v16   ;;  %v2781_v17 = vld [vmem:[#allocation2 + $0x21] sm:$0xff] }
 0x26d   : > { %v6230_v48 = vpop.permute.xlu0 %2291 }
 0x26e   : > { %v6228_v33 = vpop.permute.xlu1 %2296  ;;  %9029 = vst [vmem:[#allocation182_spill] sm:$0xff] %v6230_v48  ;;  %2702 = vperm.xlu0 %5437, %v2547_v57   ;;  %v2782_v48 = vld [vmem:[#allocation2 + $0x29] sm:$0xff] }
 0x26f   : > { %9028 = vst [vmem:[#allocation181_spill] sm:$0xff] %v6228_v33  ;;  %2707 = vperm.xlu1 %5438, %v2548_v32   ;;  %v2783_v33 = vld [vmem:[#allocation2 + $0x31] sm:$0xff] }
 0x271   : > { %v6234_v25 = vpop.permute.xlu0 %2301 }
 0x272   : > { %v6232_v1 = vpop.permute.xlu1 %2306  ;;  %9031 = vst [vmem:[#allocation184_spill] sm:$0xff] %v6234_v25  ;;  %2813 = vperm.xlu0 %5437, %v2778_v8   ;;  %v2784_v25 = vld [vmem:[#allocation2 + $0x39] sm:$0xff] }
 0x273   : > { %9030 = vst [vmem:[#allocation183_spill] sm:$0xff] %v6232_v1  ;;  %2818 = vperm.xlu1 %5438, %v2779_v0   ;;  %v2785_v1 = vld [vmem:[#allocation2 + $0x41] sm:$0xff] }
 0x275   : > { %v6238_v49 = vpop.permute.xlu0 %2311 }
 0x276   : > { %v6236_v16 = vpop.permute.xlu1 %2316  ;;  %9033 = vst [vmem:[#allocation186_spill] sm:$0xff] %v6238_v49  ;;  %2823 = vperm.xlu0 %5437, %v2780_v24   ;;  %v2786_v49 = vld [vmem:[#allocation2 + $0x49] sm:$0xff] }
 0x277   : > { %9032 = vst [vmem:[#allocation185_spill] sm:$0xff] %v6236_v16  ;;  %2828 = vperm.xlu1 %5438, %v2781_v17   ;;  %v2787_v16 = vld [vmem:[#allocation2 + $0x51] sm:$0xff] }
 0x279   : > { %v6242_v57 = vpop.permute.xlu0 %2321 }
 0x27a   : > { %v6240_v32 = vpop.permute.xlu1 %2326  ;;  %9035 = vst [vmem:[#allocation188_spill] sm:$0xff] %v6242_v57  ;;  %2833 = vperm.xlu0 %5437, %v2782_v48   ;;  %v2788_v57 = vld [vmem:[#allocation2 + $0x59] sm:$0xff] }
 0x27b   : > { %9034 = vst [vmem:[#allocation187_spill] sm:$0xff] %v6240_v32  ;;  %2838 = vperm.xlu1 %5438, %v2783_v33   ;;  %v2789_v32 = vld [vmem:[#allocation2 + $0x61] sm:$0xff] }
 0x27d   : > { %v6246_v8 = vpop.permute.xlu0 %2331 }
 0x27e   : > { %v6244_v0 = vpop.permute.xlu1 %2336  ;;  %9037 = vst [vmem:[#allocation190_spill] sm:$0xff] %v6246_v8  ;;  %2843 = vperm.xlu0 %5437, %v2784_v25   ;;  %v2790_v8 = vld [vmem:[#allocation2 + $0x69] sm:$0xff] }
 0x27f   : > { %9036 = vst [vmem:[#allocation189_spill] sm:$0xff] %v6244_v0  ;;  %2848 = vperm.xlu1 %5438, %v2785_v1   ;;  %v2791_v0 = vld [vmem:[#allocation2 + $0x71] sm:$0xff] }
 0x281   : > { %v6250_v24 = vpop.permute.xlu0 %2341 }
 0x282   : > { %v6248_v17 = vpop.permute.xlu1 %2346  ;;  %9039 = vst [vmem:[#allocation192_spill] sm:$0xff] %v6250_v24  ;;  %2853 = vperm.xlu0 %5437, %v2786_v49   ;;  %v2792_v24 = vld [vmem:[#allocation2 + $0x79] sm:$0xff] }
 0x283   : > { %9038 = vst [vmem:[#allocation191_spill] sm:$0xff] %v6248_v17  ;;  %2858 = vperm.xlu1 %5438, %v2787_v16   ;;  %v2793_v17 = vld [vmem:[#allocation2 + $0x81] sm:$0xff] }
 0x285   : > { %v6254_v48 = vpop.permute.xlu0 %2351 }
 0x286   : > { %v6252_v33 = vpop.permute.xlu1 %2356  ;;  %9041 = vst [vmem:[#allocation194_spill] sm:$0xff] %v6254_v48  ;;  %2863 = vperm.xlu0 %5437, %v2788_v57   ;;  %v2794_v48 = vld [vmem:[#allocation2 + $0x89] sm:$0xff] }
 0x287   : > { %9040 = vst [vmem:[#allocation193_spill] sm:$0xff] %v6252_v33  ;;  %2868 = vperm.xlu1 %5438, %v2789_v32   ;;  %v2795_v33 = vld [vmem:[#allocation2 + $0x91] sm:$0xff] }
 0x289   : > { %v6258_v25 = vpop.permute.xlu0 %2361 }
 0x28a   : > { %v6256_v1 = vpop.permute.xlu1 %2366  ;;  %9043 = vst [vmem:[#allocation196_spill] sm:$0xff] %v6258_v25  ;;  %2873 = vperm.xlu0 %5437, %v2790_v8   ;;  %v2796_v25 = vld [vmem:[#allocation2 + $0x99] sm:$0xff] }
 0x28b   : > { %9042 = vst [vmem:[#allocation195_spill] sm:$0xff] %v6256_v1  ;;  %2878 = vperm.xlu1 %5438, %v2791_v0   ;;  %v2797_v1 = vld [vmem:[#allocation2 + $0xa1] sm:$0xff] }
 0x28d   : > { %v6262_v49 = vpop.permute.xlu0 %2371 }
 0x28e   : > { %v6260_v16 = vpop.permute.xlu1 %2376  ;;  %9045 = vst [vmem:[#allocation198_spill] sm:$0xff] %v6262_v49  ;;  %2883 = vperm.xlu0 %5437, %v2792_v24   ;;  %v2798_v49 = vld [vmem:[#allocation2 + $0xa9] sm:$0xff] }
 0x28f   : > { %9044 = vst [vmem:[#allocation197_spill] sm:$0xff] %v6260_v16  ;;  %2888 = vperm.xlu1 %5438, %v2793_v17   ;;  %v2799_v16 = vld [vmem:[#allocation2 + $0xb1] sm:$0xff] }
 0x291   : > { %v6266_v57 = vpop.permute.xlu0 %2381 }
 0x292   : > { %v6264_v32 = vpop.permute.xlu1 %2386  ;;  %9047 = vst [vmem:[#allocation200_spill] sm:$0xff] %v6266_v57  ;;  %2893 = vperm.xlu0 %5437, %v2794_v48   ;;  %v2800_v57 = vld [vmem:[#allocation2 + $0xb9] sm:$0xff] }
 0x293   : > { %9046 = vst [vmem:[#allocation199_spill] sm:$0xff] %v6264_v32  ;;  %2898 = vperm.xlu1 %5438, %v2795_v33   ;;  %v2801_v32 = vld [vmem:[#allocation2 + $0xc1] sm:$0xff] }
 0x295   : > { %v6270_v8 = vpop.permute.xlu0 %2391 }
 0x296   : > { %v6268_v0 = vpop.permute.xlu1 %2396  ;;  %9049 = vst [vmem:[#allocation202_spill] sm:$0xff] %v6270_v8  ;;  %2903 = vperm.xlu0 %5437, %v2796_v25   ;;  %v2802_v8 = vld [vmem:[#allocation2 + $0xc9] sm:$0xff] }
 0x297   : > { %9048 = vst [vmem:[#allocation201_spill] sm:$0xff] %v6268_v0  ;;  %2908 = vperm.xlu1 %5438, %v2797_v1   ;;  %v2803_v0 = vld [vmem:[#allocation2 + $0xd1] sm:$0xff] }
 0x299   : > { %v6274_v24 = vpop.permute.xlu0 %2401 }
 0x29a   : > { %v6272_v17 = vpop.permute.xlu1 %2406  ;;  %9051 = vst [vmem:[#allocation204_spill] sm:$0xff] %v6274_v24  ;;  %2913 = vperm.xlu0 %5437, %v2798_v49   ;;  %v2804_v24 = vld [vmem:[#allocation2 + $0xd9] sm:$0xff] }
 0x29b   : > { %9050 = vst [vmem:[#allocation203_spill] sm:$0xff] %v6272_v17  ;;  %2918 = vperm.xlu1 %5438, %v2799_v16   ;;  %v2805_v17 = vld [vmem:[#allocation2 + $0xe1] sm:$0xff] }
 0x29d   : > { %v6278_v48 = vpop.permute.xlu0 %2411 }
 0x29e   : > { %v6276_v33 = vpop.permute.xlu1 %2416  ;;  %9053 = vst [vmem:[#allocation206_spill] sm:$0xff] %v6278_v48  ;;  %2923 = vperm.xlu0 %5437, %v2800_v57   ;;  %v2806_v48 = vld [vmem:[#allocation2 + $0xe9] sm:$0xff] }
 0x29f   : > { %9052 = vst [vmem:[#allocation205_spill] sm:$0xff] %v6276_v33  ;;  %2928 = vperm.xlu1 %5438, %v2801_v32   ;;  %v2807_v33 = vld [vmem:[#allocation2 + $0xf1] sm:$0xff] }
 0x2a1   : > { %v6282_v25 = vpop.permute.xlu0 %2421 }
 0x2a2   : > { %v6280_v1 = vpop.permute.xlu1 %2426  ;;  %9055 = vst [vmem:[#allocation208_spill] sm:$0xff] %v6282_v25  ;;  %2933 = vperm.xlu0 %5437, %v2802_v8   ;;  %v2808_v25 = vld [vmem:[#allocation2 + $0xf9] sm:$0xff] }
 0x2a3   : > { %9054 = vst [vmem:[#allocation207_spill] sm:$0xff] %v6280_v1  ;;  %2938 = vperm.xlu1 %5438, %v2803_v0   ;;  %v2809_v1 = vld [vmem:[#allocation2 + $0x101] sm:$0xff] }
 0x2a5   : > { %v6286_v49 = vpop.permute.xlu0 %2431 }
 0x2a6   : > { %v6284_v16 = vpop.permute.xlu1 %2436  ;;  %9057 = vst [vmem:[#allocation210_spill] sm:$0xff] %v6286_v49  ;;  %2943 = vperm.xlu0 %5437, %v2804_v24   ;;  %v3039_v49 = vld [vmem:[#allocation2 + $0xa] sm:$0xff] }
 0x2a7   : > { %9056 = vst [vmem:[#allocation209_spill] sm:$0xff] %v6284_v16  ;;  %2948 = vperm.xlu1 %5438, %v2805_v17   ;;  %v3040_v16 = vld [vmem:[#allocation2 + $0x12] sm:$0xff] }
 0x2a9   : > { %v6290_v57 = vpop.permute.xlu0 %2441 }
 0x2aa   : > { %v6288_v32 = vpop.permute.xlu1 %2446  ;;  %9059 = vst [vmem:[#allocation212_spill] sm:$0xff] %v6290_v57  ;;  %2953 = vperm.xlu0 %5437, %v2806_v48   ;;  %v3041_v57 = vld [vmem:[#allocation2 + $0x1a] sm:$0xff] }
 0x2ab   : > { %9058 = vst [vmem:[#allocation211_spill] sm:$0xff] %v6288_v32  ;;  %2958 = vperm.xlu1 %5438, %v2807_v33   ;;  %v3042_v32 = vld [vmem:[#allocation2 + $0x22] sm:$0xff] }
 0x2ad   : > { %v6294_v8 = vpop.permute.xlu0 %2552 }
 0x2ae   : > { %v6292_v0 = vpop.permute.xlu1 %2557  ;;  %9061 = vst [vmem:[#allocation214_spill] sm:$0xff] %v6294_v8  ;;  %2963 = vperm.xlu0 %5437, %v2808_v25   ;;  %v3043_v8 = vld [vmem:[#allocation2 + $0x2a] sm:$0xff] }
 0x2af   : > { %9060 = vst [vmem:[#allocation213_spill] sm:$0xff] %v6292_v0  ;;  %2968 = vperm.xlu1 %5438, %v2809_v1   ;;  %v3044_v0 = vld [vmem:[#allocation2 + $0x32] sm:$0xff] }
 0x2b1   : > { %v6298_v24 = vpop.permute.xlu0 %2562 }
 0x2b2   : > { %v6296_v17 = vpop.permute.xlu1 %2567  ;;  %9063 = vst [vmem:[#allocation216_spill] sm:$0xff] %v6298_v24  ;;  %3074 = vperm.xlu0 %5437, %v3039_v49   ;;  %v3045_v24 = vld [vmem:[#allocation2 + $0x3a] sm:$0xff] }
 0x2b3   : > { %9062 = vst [vmem:[#allocation215_spill] sm:$0xff] %v6296_v17  ;;  %3079 = vperm.xlu1 %5438, %v3040_v16   ;;  %v3046_v17 = vld [vmem:[#allocation2 + $0x42] sm:$0xff] }
 0x2b5   : > { %v6302_v48 = vpop.permute.xlu0 %2572 }
 0x2b6   : > { %v6300_v33 = vpop.permute.xlu1 %2577  ;;  %9065 = vst [vmem:[#allocation218_spill] sm:$0xff] %v6302_v48  ;;  %3084 = vperm.xlu0 %5437, %v3041_v57   ;;  %v3047_v48 = vld [vmem:[#allocation2 + $0x4a] sm:$0xff] }
 0x2b7   : > { %9064 = vst [vmem:[#allocation217_spill] sm:$0xff] %v6300_v33  ;;  %3089 = vperm.xlu1 %5438, %v3042_v32   ;;  %v3048_v33 = vld [vmem:[#allocation2 + $0x52] sm:$0xff] }
 0x2b9   : > { %v6306_v25 = vpop.permute.xlu0 %2582 }
 0x2ba   : > { %v6304_v1 = vpop.permute.xlu1 %2587  ;;  %9067 = vst [vmem:[#allocation220_spill] sm:$0xff] %v6306_v25  ;;  %3094 = vperm.xlu0 %5437, %v3043_v8   ;;  %v3049_v25 = vld [vmem:[#allocation2 + $0x5a] sm:$0xff] }
 0x2bb   : > { %9066 = vst [vmem:[#allocation219_spill] sm:$0xff] %v6304_v1  ;;  %3099 = vperm.xlu1 %5438, %v3044_v0   ;;  %v3050_v1 = vld [vmem:[#allocation2 + $0x62] sm:$0xff] }
 0x2bd   : > { %v6310_v49 = vpop.permute.xlu0 %2592 }
 0x2be   : > { %v6308_v16 = vpop.permute.xlu1 %2597  ;;  %9069 = vst [vmem:[#allocation222_spill] sm:$0xff] %v6310_v49  ;;  %3104 = vperm.xlu0 %5437, %v3045_v24   ;;  %v3051_v49 = vld [vmem:[#allocation2 + $0x6a] sm:$0xff] }
 0x2bf   : > { %9068 = vst [vmem:[#allocation221_spill] sm:$0xff] %v6308_v16  ;;  %3109 = vperm.xlu1 %5438, %v3046_v17   ;;  %v3052_v16 = vld [vmem:[#allocation2 + $0x72] sm:$0xff] }
 0x2c1   : > { %v6314_v57 = vpop.permute.xlu0 %2602 }
 0x2c2   : > { %v6312_v32 = vpop.permute.xlu1 %2607  ;;  %9071 = vst [vmem:[#allocation224_spill] sm:$0xff] %v6314_v57  ;;  %3114 = vperm.xlu0 %5437, %v3047_v48   ;;  %v3053_v57 = vld [vmem:[#allocation2 + $0x7a] sm:$0xff] }
 0x2c3   : > { %9070 = vst [vmem:[#allocation223_spill] sm:$0xff] %v6312_v32  ;;  %3119 = vperm.xlu1 %5438, %v3048_v33   ;;  %v3054_v32 = vld [vmem:[#allocation2 + $0x82] sm:$0xff] }
 0x2c5   : > { %v6318_v8 = vpop.permute.xlu0 %2612 }
 0x2c6   : > { %v6316_v0 = vpop.permute.xlu1 %2617  ;;  %9073 = vst [vmem:[#allocation226_spill] sm:$0xff] %v6318_v8  ;;  %3124 = vperm.xlu0 %5437, %v3049_v25   ;;  %v3055_v8 = vld [vmem:[#allocation2 + $0x8a] sm:$0xff] }
 0x2c7   : > { %9072 = vst [vmem:[#allocation225_spill] sm:$0xff] %v6316_v0  ;;  %3129 = vperm.xlu1 %5438, %v3050_v1   ;;  %v3056_v0 = vld [vmem:[#allocation2 + $0x92] sm:$0xff] }
 0x2c9   : > { %v6322_v24 = vpop.permute.xlu0 %2622 }
 0x2ca   : > { %v6320_v17 = vpop.permute.xlu1 %2627  ;;  %9075 = vst [vmem:[#allocation228_spill] sm:$0xff] %v6322_v24  ;;  %3134 = vperm.xlu0 %5437, %v3051_v49   ;;  %v3057_v24 = vld [vmem:[#allocation2 + $0x9a] sm:$0xff] }
 0x2cb   : > { %9074 = vst [vmem:[#allocation227_spill] sm:$0xff] %v6320_v17  ;;  %3139 = vperm.xlu1 %5438, %v3052_v16   ;;  %v3058_v17 = vld [vmem:[#allocation2 + $0xa2] sm:$0xff] }
 0x2cd   : > { %v6326_v48 = vpop.permute.xlu0 %2632 }
 0x2ce   : > { %v6324_v33 = vpop.permute.xlu1 %2637  ;;  %9077 = vst [vmem:[#allocation230_spill] sm:$0xff] %v6326_v48  ;;  %3144 = vperm.xlu0 %5437, %v3053_v57   ;;  %v3059_v48 = vld [vmem:[#allocation2 + $0xaa] sm:$0xff] }
 0x2cf   : > { %9076 = vst [vmem:[#allocation229_spill] sm:$0xff] %v6324_v33  ;;  %3149 = vperm.xlu1 %5438, %v3054_v32   ;;  %v3060_v33 = vld [vmem:[#allocation2 + $0xb2] sm:$0xff] }
 0x2d1   : > { %v6330_v25 = vpop.permute.xlu0 %2642 }
 0x2d2   : > { %v6328_v1 = vpop.permute.xlu1 %2647  ;;  %9079 = vst [vmem:[#allocation232_spill] sm:$0xff] %v6330_v25  ;;  %3154 = vperm.xlu0 %5437, %v3055_v8   ;;  %v3061_v25 = vld [vmem:[#allocation2 + $0xba] sm:$0xff] }
 0x2d3   : > { %9078 = vst [vmem:[#allocation231_spill] sm:$0xff] %v6328_v1  ;;  %3159 = vperm.xlu1 %5438, %v3056_v0   ;;  %v3062_v1 = vld [vmem:[#allocation2 + $0xc2] sm:$0xff] }
 0x2d5   : > { %v6334_v49 = vpop.permute.xlu0 %2652 }
 0x2d6   : > { %v6332_v16 = vpop.permute.xlu1 %2657  ;;  %9081 = vst [vmem:[#allocation234_spill] sm:$0xff] %v6334_v49  ;;  %3164 = vperm.xlu0 %5437, %v3057_v24   ;;  %v3063_v49 = vld [vmem:[#allocation2 + $0xca] sm:$0xff] }
 0x2d7   : > { %9080 = vst [vmem:[#allocation233_spill] sm:$0xff] %v6332_v16  ;;  %3169 = vperm.xlu1 %5438, %v3058_v17   ;;  %v3064_v16 = vld [vmem:[#allocation2 + $0xd2] sm:$0xff] }
 0x2d9   : > { %v6338_v57 = vpop.permute.xlu0 %2662 }
 0x2da   : > { %v6336_v32 = vpop.permute.xlu1 %2667  ;;  %9083 = vst [vmem:[#allocation236_spill] sm:$0xff] %v6338_v57  ;;  %3174 = vperm.xlu0 %5437, %v3059_v48   ;;  %v3065_v57 = vld [vmem:[#allocation2 + $0xda] sm:$0xff] }
 0x2db   : > { %9082 = vst [vmem:[#allocation235_spill] sm:$0xff] %v6336_v32  ;;  %3179 = vperm.xlu1 %5438, %v3060_v33   ;;  %v3066_v32 = vld [vmem:[#allocation2 + $0xe2] sm:$0xff] }
 0x2dd   : > { %v6342_v8 = vpop.permute.xlu0 %2672 }
 0x2de   : > { %v6340_v0 = vpop.permute.xlu1 %2677  ;;  %9085 = vst [vmem:[#allocation238_spill] sm:$0xff] %v6342_v8  ;;  %3184 = vperm.xlu0 %5437, %v3061_v25   ;;  %v3067_v8 = vld [vmem:[#allocation2 + $0xea] sm:$0xff] }
 0x2df   : > { %9084 = vst [vmem:[#allocation237_spill] sm:$0xff] %v6340_v0  ;;  %3189 = vperm.xlu1 %5438, %v3062_v1   ;;  %v3068_v0 = vld [vmem:[#allocation2 + $0xf2] sm:$0xff] }
 0x2e1   : > { %v6346_v24 = vpop.permute.xlu0 %2682 }
 0x2e2   : > { %v6344_v17 = vpop.permute.xlu1 %2687  ;;  %9087 = vst [vmem:[#allocation240_spill] sm:$0xff] %v6346_v24  ;;  %3194 = vperm.xlu0 %5437, %v3063_v49   ;;  %v3069_v24 = vld [vmem:[#allocation2 + $0xfa] sm:$0xff] }
 0x2e3   : > { %9086 = vst [vmem:[#allocation239_spill] sm:$0xff] %v6344_v17  ;;  %3199 = vperm.xlu1 %5438, %v3064_v16   ;;  %v3070_v17 = vld [vmem:[#allocation2 + $0x102] sm:$0xff] }
 0x2e5   : > { %v6350_v48 = vpop.permute.xlu0 %2692 }
 0x2e6   : > { %v6348_v33 = vpop.permute.xlu1 %2697  ;;  %9089 = vst [vmem:[#allocation242_spill] sm:$0xff] %v6350_v48  ;;  %3204 = vperm.xlu0 %5437, %v3065_v57   ;;  %v3300_v48 = vld [vmem:[#allocation2 + $0xb] sm:$0xff] }
 0x2e7   : > { %9088 = vst [vmem:[#allocation241_spill] sm:$0xff] %v6348_v33  ;;  %3209 = vperm.xlu1 %5438, %v3066_v32   ;;  %v3301_v33 = vld [vmem:[#allocation2 + $0x13] sm:$0xff] }
 0x2e9   : > { %v6354_v25 = vpop.permute.xlu0 %2702 }
 0x2ea   : > { %v6352_v1 = vpop.permute.xlu1 %2707  ;;  %9091 = vst [vmem:[#allocation244_spill] sm:$0xff] %v6354_v25  ;;  %3214 = vperm.xlu0 %5437, %v3067_v8   ;;  %v3302_v25 = vld [vmem:[#allocation2 + $0x1b] sm:$0xff] }
 0x2eb   : > { %9090 = vst [vmem:[#allocation243_spill] sm:$0xff] %v6352_v1  ;;  %3219 = vperm.xlu1 %5438, %v3068_v0   ;;  %v3303_v1 = vld [vmem:[#allocation2 + $0x23] sm:$0xff] }
 0x2ed   : > { %v6358_v49 = vpop.permute.xlu0 %2813 }
 0x2ee   : > { %v6356_v16 = vpop.permute.xlu1 %2818  ;;  %9093 = vst [vmem:[#allocation246_spill] sm:$0xff] %v6358_v49  ;;  %3224 = vperm.xlu0 %5437, %v3069_v24   ;;  %v3304_v49 = vld [vmem:[#allocation2 + $0x2b] sm:$0xff] }
 0x2ef   : > { %9092 = vst [vmem:[#allocation245_spill] sm:$0xff] %v6356_v16  ;;  %3229 = vperm.xlu1 %5438, %v3070_v17   ;;  %v3305_v16 = vld [vmem:[#allocation2 + $0x33] sm:$0xff] }
 0x2f1   : > { %v6362_v57 = vpop.permute.xlu0 %2823 }
 0x2f2   : > { %v6360_v32 = vpop.permute.xlu1 %2828  ;;  %9095 = vst [vmem:[#allocation248_spill] sm:$0xff] %v6362_v57  ;;  %3335 = vperm.xlu0 %5437, %v3300_v48   ;;  %v3306_v57 = vld [vmem:[#allocation2 + $0x3b] sm:$0xff] }
 0x2f3   : > { %9094 = vst [vmem:[#allocation247_spill] sm:$0xff] %v6360_v32  ;;  %3340 = vperm.xlu1 %5438, %v3301_v33   ;;  %v3307_v32 = vld [vmem:[#allocation2 + $0x43] sm:$0xff] }
 0x2f5   : > { %v6366_v8 = vpop.permute.xlu0 %2833 }
 0x2f6   : > { %v6364_v0 = vpop.permute.xlu1 %2838  ;;  %9097 = vst [vmem:[#allocation250_spill] sm:$0xff] %v6366_v8  ;;  %3345 = vperm.xlu0 %5437, %v3302_v25   ;;  %v3308_v8 = vld [vmem:[#allocation2 + $0x4b] sm:$0xff] }
 0x2f7   : > { %9096 = vst [vmem:[#allocation249_spill] sm:$0xff] %v6364_v0  ;;  %3350 = vperm.xlu1 %5438, %v3303_v1   ;;  %v3309_v0 = vld [vmem:[#allocation2 + $0x53] sm:$0xff] }
 0x2f9   : > { %v6370_v24 = vpop.permute.xlu0 %2843 }
 0x2fa   : > { %v6368_v17 = vpop.permute.xlu1 %2848  ;;  %9099 = vst [vmem:[#allocation252_spill] sm:$0xff] %v6370_v24  ;;  %3355 = vperm.xlu0 %5437, %v3304_v49   ;;  %v3310_v24 = vld [vmem:[#allocation2 + $0x5b] sm:$0xff] }
 0x2fb   : > { %9098 = vst [vmem:[#allocation251_spill] sm:$0xff] %v6368_v17  ;;  %3360 = vperm.xlu1 %5438, %v3305_v16   ;;  %v3311_v17 = vld [vmem:[#allocation2 + $0x63] sm:$0xff] }
 0x2fd   : > { %v6374_v48 = vpop.permute.xlu0 %2853 }
 0x2fe   : > { %v6372_v33 = vpop.permute.xlu1 %2858  ;;  %9101 = vst [vmem:[#allocation254_spill] sm:$0xff] %v6374_v48  ;;  %3365 = vperm.xlu0 %5437, %v3306_v57   ;;  %v3312_v48 = vld [vmem:[#allocation2 + $0x6b] sm:$0xff] }
 0x2ff   : > { %9100 = vst [vmem:[#allocation253_spill] sm:$0xff] %v6372_v33  ;;  %3370 = vperm.xlu1 %5438, %v3307_v32   ;;  %v3313_v33 = vld [vmem:[#allocation2 + $0x73] sm:$0xff] }
 0x301   : > { %v6378_v25 = vpop.permute.xlu0 %2863 }
 0x302   : > { %v6376_v1 = vpop.permute.xlu1 %2868  ;;  %9103 = vst [vmem:[#allocation256_spill] sm:$0xff] %v6378_v25  ;;  %3375 = vperm.xlu0 %5437, %v3308_v8   ;;  %v3314_v25 = vld [vmem:[#allocation2 + $0x7b] sm:$0xff] }
 0x303   : > { %9102 = vst [vmem:[#allocation255_spill] sm:$0xff] %v6376_v1  ;;  %3380 = vperm.xlu1 %5438, %v3309_v0   ;;  %v3315_v1 = vld [vmem:[#allocation2 + $0x83] sm:$0xff] }
 0x305   : > { %v6382_v49 = vpop.permute.xlu0 %2873 }
 0x306   : > { %v6380_v16 = vpop.permute.xlu1 %2878  ;;  %9105 = vst [vmem:[#allocation258_spill] sm:$0xff] %v6382_v49  ;;  %3385 = vperm.xlu0 %5437, %v3310_v24   ;;  %v3316_v49 = vld [vmem:[#allocation2 + $0x8b] sm:$0xff] }
 0x307   : > { %9104 = vst [vmem:[#allocation257_spill] sm:$0xff] %v6380_v16  ;;  %3390 = vperm.xlu1 %5438, %v3311_v17   ;;  %v3317_v16 = vld [vmem:[#allocation2 + $0x93] sm:$0xff] }
 0x309   : > { %v6386_v57 = vpop.permute.xlu0 %2883 }
 0x30a   : > { %v6384_v32 = vpop.permute.xlu1 %2888  ;;  %9107 = vst [vmem:[#allocation260_spill] sm:$0xff] %v6386_v57  ;;  %3395 = vperm.xlu0 %5437, %v3312_v48   ;;  %v3318_v57 = vld [vmem:[#allocation2 + $0x9b] sm:$0xff] }
 0x30b   : > { %9106 = vst [vmem:[#allocation259_spill] sm:$0xff] %v6384_v32  ;;  %3400 = vperm.xlu1 %5438, %v3313_v33   ;;  %v3319_v32 = vld [vmem:[#allocation2 + $0xa3] sm:$0xff] }
 0x30d   : > { %v6390_v8 = vpop.permute.xlu0 %2893 }
 0x30e   : > { %v6388_v0 = vpop.permute.xlu1 %2898  ;;  %9109 = vst [vmem:[#allocation262_spill] sm:$0xff] %v6390_v8  ;;  %3405 = vperm.xlu0 %5437, %v3314_v25   ;;  %v3320_v8 = vld [vmem:[#allocation2 + $0xab] sm:$0xff] }
 0x30f   : > { %9108 = vst [vmem:[#allocation261_spill] sm:$0xff] %v6388_v0  ;;  %3410 = vperm.xlu1 %5438, %v3315_v1   ;;  %v3321_v0 = vld [vmem:[#allocation2 + $0xb3] sm:$0xff] }
 0x311   : > { %v6394_v24 = vpop.permute.xlu0 %2903 }
 0x312   : > { %v6392_v17 = vpop.permute.xlu1 %2908  ;;  %9111 = vst [vmem:[#allocation264_spill] sm:$0xff] %v6394_v24  ;;  %3415 = vperm.xlu0 %5437, %v3316_v49   ;;  %v3322_v24 = vld [vmem:[#allocation2 + $0xbb] sm:$0xff] }
 0x313   : > { %9110 = vst [vmem:[#allocation263_spill] sm:$0xff] %v6392_v17  ;;  %3420 = vperm.xlu1 %5438, %v3317_v16   ;;  %v3323_v17 = vld [vmem:[#allocation2 + $0xc3] sm:$0xff] }
 0x315   : > { %v6398_v48 = vpop.permute.xlu0 %2913 }
 0x316   : > { %v6396_v33 = vpop.permute.xlu1 %2918  ;;  %9113 = vst [vmem:[#allocation266_spill] sm:$0xff] %v6398_v48  ;;  %3425 = vperm.xlu0 %5437, %v3318_v57   ;;  %v3324_v48 = vld [vmem:[#allocation2 + $0xcb] sm:$0xff] }
 0x317   : > { %9112 = vst [vmem:[#allocation265_spill] sm:$0xff] %v6396_v33  ;;  %3430 = vperm.xlu1 %5438, %v3319_v32   ;;  %v3325_v33 = vld [vmem:[#allocation2 + $0xd3] sm:$0xff] }
 0x319   : > { %v6402_v25 = vpop.permute.xlu0 %2923 }
 0x31a   : > { %v6400_v1 = vpop.permute.xlu1 %2928  ;;  %9115 = vst [vmem:[#allocation268_spill] sm:$0xff] %v6402_v25  ;;  %3435 = vperm.xlu0 %5437, %v3320_v8   ;;  %v3326_v25 = vld [vmem:[#allocation2 + $0xdb] sm:$0xff] }
 0x31b   : > { %9114 = vst [vmem:[#allocation267_spill] sm:$0xff] %v6400_v1  ;;  %3440 = vperm.xlu1 %5438, %v3321_v0   ;;  %v3327_v1 = vld [vmem:[#allocation2 + $0xe3] sm:$0xff] }
 0x31d   : > { %v6406_v49 = vpop.permute.xlu0 %2933 }
 0x31e   : > { %v6404_v16 = vpop.permute.xlu1 %2938  ;;  %9117 = vst [vmem:[#allocation270_spill] sm:$0xff] %v6406_v49  ;;  %3445 = vperm.xlu0 %5437, %v3322_v24   ;;  %v3328_v49 = vld [vmem:[#allocation2 + $0xeb] sm:$0xff] }
 0x31f   : > { %9116 = vst [vmem:[#allocation269_spill] sm:$0xff] %v6404_v16  ;;  %3450 = vperm.xlu1 %5438, %v3323_v17   ;;  %v3329_v16 = vld [vmem:[#allocation2 + $0xf3] sm:$0xff] }
 0x321   : > { %v6410_v57 = vpop.permute.xlu0 %2943 }
 0x322   : > { %v6408_v32 = vpop.permute.xlu1 %2948  ;;  %9119 = vst [vmem:[#allocation272_spill] sm:$0xff] %v6410_v57  ;;  %3455 = vperm.xlu0 %5437, %v3324_v48   ;;  %v3330_v57 = vld [vmem:[#allocation2 + $0xfb] sm:$0xff] }
 0x323   : > { %9118 = vst [vmem:[#allocation271_spill] sm:$0xff] %v6408_v32  ;;  %3460 = vperm.xlu1 %5438, %v3325_v33   ;;  %v3331_v32 = vld [vmem:[#allocation2 + $0x103] sm:$0xff] }
 0x325   : > { %v6414_v8 = vpop.permute.xlu0 %2953 }
 0x326   : > { %v6412_v0 = vpop.permute.xlu1 %2958  ;;  %9121 = vst [vmem:[#allocation274_spill] sm:$0xff] %v6414_v8  ;;  %3465 = vperm.xlu0 %5437, %v3326_v25   ;;  %v3561_v8 = vld [vmem:[#allocation2 + $0xc] sm:$0xff] }
 0x327   : > { %9120 = vst [vmem:[#allocation273_spill] sm:$0xff] %v6412_v0  ;;  %3470 = vperm.xlu1 %5438, %v3327_v1   ;;  %v3562_v0 = vld [vmem:[#allocation2 + $0x14] sm:$0xff] }
 0x329   : > { %v6418_v24 = vpop.permute.xlu0 %2963 }
 0x32a   : > { %v6416_v17 = vpop.permute.xlu1 %2968  ;;  %9123 = vst [vmem:[#allocation276_spill] sm:$0xff] %v6418_v24  ;;  %3475 = vperm.xlu0 %5437, %v3328_v49   ;;  %v3563_v24 = vld [vmem:[#allocation2 + $0x1c] sm:$0xff] }
 0x32b   : > { %9122 = vst [vmem:[#allocation275_spill] sm:$0xff] %v6416_v17  ;;  %3480 = vperm.xlu1 %5438, %v3329_v16   ;;  %v3564_v17 = vld [vmem:[#allocation2 + $0x24] sm:$0xff] }
 0x32d   : > { %v6422_v48 = vpop.permute.xlu0 %3074 }
 0x32e   : > { %v6420_v33 = vpop.permute.xlu1 %3079  ;;  %9125 = vst [vmem:[#allocation278_spill] sm:$0xff] %v6422_v48  ;;  %3485 = vperm.xlu0 %5437, %v3330_v57   ;;  %v3565_v48 = vld [vmem:[#allocation2 + $0x2c] sm:$0xff] }
 0x32f   : > { %9124 = vst [vmem:[#allocation277_spill] sm:$0xff] %v6420_v33  ;;  %3490 = vperm.xlu1 %5438, %v3331_v32   ;;  %v3566_v33 = vld [vmem:[#allocation2 + $0x34] sm:$0xff] }
 0x331   : > { %v6426_v25 = vpop.permute.xlu0 %3084 }
 0x332   : > { %v6424_v1 = vpop.permute.xlu1 %3089  ;;  %9127 = vst [vmem:[#allocation280_spill] sm:$0xff] %v6426_v25  ;;  %3596 = vperm.xlu0 %5437, %v3561_v8   ;;  %v3567_v25 = vld [vmem:[#allocation2 + $0x3c] sm:$0xff] }
 0x333   : > { %9126 = vst [vmem:[#allocation279_spill] sm:$0xff] %v6424_v1  ;;  %3601 = vperm.xlu1 %5438, %v3562_v0   ;;  %v3568_v1 = vld [vmem:[#allocation2 + $0x44] sm:$0xff] }
 0x335   : > { %v6430_v49 = vpop.permute.xlu0 %3094 }
 0x336   : > { %v6428_v16 = vpop.permute.xlu1 %3099  ;;  %9129 = vst [vmem:[#allocation282_spill] sm:$0xff] %v6430_v49  ;;  %3606 = vperm.xlu0 %5437, %v3563_v24   ;;  %v3569_v49 = vld [vmem:[#allocation2 + $0x4c] sm:$0xff] }
 0x337   : > { %9128 = vst [vmem:[#allocation281_spill] sm:$0xff] %v6428_v16  ;;  %3611 = vperm.xlu1 %5438, %v3564_v17   ;;  %v3570_v16 = vld [vmem:[#allocation2 + $0x54] sm:$0xff] }
 0x339   : > { %v6434_v57 = vpop.permute.xlu0 %3104 }
 0x33a   : > { %v6432_v32 = vpop.permute.xlu1 %3109  ;;  %9131 = vst [vmem:[#allocation284_spill] sm:$0xff] %v6434_v57  ;;  %3616 = vperm.xlu0 %5437, %v3565_v48   ;;  %v3571_v57 = vld [vmem:[#allocation2 + $0x5c] sm:$0xff] }
 0x33b   : > { %9130 = vst [vmem:[#allocation283_spill] sm:$0xff] %v6432_v32  ;;  %3621 = vperm.xlu1 %5438, %v3566_v33   ;;  %v3572_v32 = vld [vmem:[#allocation2 + $0x64] sm:$0xff] }
 0x33d   : > { %v6438_v8 = vpop.permute.xlu0 %3114 }
 0x33e   : > { %v6436_v0 = vpop.permute.xlu1 %3119  ;;  %9133 = vst [vmem:[#allocation286_spill] sm:$0xff] %v6438_v8  ;;  %3626 = vperm.xlu0 %5437, %v3567_v25   ;;  %v3573_v8 = vld [vmem:[#allocation2 + $0x6c] sm:$0xff] }
 0x33f   : > { %9132 = vst [vmem:[#allocation285_spill] sm:$0xff] %v6436_v0  ;;  %3631 = vperm.xlu1 %5438, %v3568_v1   ;;  %v3574_v0 = vld [vmem:[#allocation2 + $0x74] sm:$0xff] }
 0x341   : > { %v6442_v24 = vpop.permute.xlu0 %3124 }
 0x342   : > { %v6440_v17 = vpop.permute.xlu1 %3129  ;;  %9135 = vst [vmem:[#allocation288_spill] sm:$0xff] %v6442_v24  ;;  %3636 = vperm.xlu0 %5437, %v3569_v49   ;;  %v3575_v24 = vld [vmem:[#allocation2 + $0x7c] sm:$0xff] }
 0x343   : > { %9134 = vst [vmem:[#allocation287_spill] sm:$0xff] %v6440_v17  ;;  %3641 = vperm.xlu1 %5438, %v3570_v16   ;;  %v3576_v17 = vld [vmem:[#allocation2 + $0x84] sm:$0xff] }
 0x345   : > { %v6446_v48 = vpop.permute.xlu0 %3134 }
 0x346   : > { %v6444_v33 = vpop.permute.xlu1 %3139  ;;  %9137 = vst [vmem:[#allocation290_spill] sm:$0xff] %v6446_v48  ;;  %3646 = vperm.xlu0 %5437, %v3571_v57   ;;  %v3577_v48 = vld [vmem:[#allocation2 + $0x8c] sm:$0xff] }
 0x347   : > { %9136 = vst [vmem:[#allocation289_spill] sm:$0xff] %v6444_v33  ;;  %3651 = vperm.xlu1 %5438, %v3572_v32   ;;  %v3578_v33 = vld [vmem:[#allocation2 + $0x94] sm:$0xff] }
 0x349   : > { %v6450_v25 = vpop.permute.xlu0 %3144 }
 0x34a   : > { %v6448_v1 = vpop.permute.xlu1 %3149  ;;  %9139 = vst [vmem:[#allocation292_spill] sm:$0xff] %v6450_v25  ;;  %3656 = vperm.xlu0 %5437, %v3573_v8   ;;  %v3579_v25 = vld [vmem:[#allocation2 + $0x9c] sm:$0xff] }
 0x34b   : > { %9138 = vst [vmem:[#allocation291_spill] sm:$0xff] %v6448_v1  ;;  %3661 = vperm.xlu1 %5438, %v3574_v0   ;;  %v3580_v1 = vld [vmem:[#allocation2 + $0xa4] sm:$0xff]  ;;  %v4999_v0 = vld [vmem:[%s8844_s2] ss:$0 sm:$0xff] }
 0x34d   : > { %v6454_v49 = vpop.permute.xlu0 %3154 }
 0x34e   : > { %v6452_v16 = vpop.permute.xlu1 %3159  ;;  %9141 = vst [vmem:[#allocation294_spill] sm:$0xff] %v6454_v49  ;;  %3666 = vperm.xlu0 %5437, %v3575_v24   ;;  %v3581_v24 = vld [vmem:[#allocation2 + $0xac] sm:$0xff]  ;;  %v6478_v49 = vmul.f32 %v4999_v0, %v5786_v42  ;;  %v6500_v42 = vmul.f32 %v4999_v0, %v5798_v54  ;;  %v6518_v54 = vmul.f32 %v4999_v0, %v5810_v2 }
 0x34f   : > { %9140 = vst [vmem:[#allocation293_spill] sm:$0xff] %v6452_v16  ;;  %3671 = vperm.xlu1 %5438, %v3576_v17   ;;  %v3582_v17 = vld [vmem:[#allocation2 + $0xb4] sm:$0xff]  ;;  %v6538_v2 = vmul.f32 %v4999_v0, %v5820_v11  ;;  %v6560_v11 = vmul.f32 %v4999_v0, %v5832_v23 }
 0x351   : > { %v6458_v57 = vpop.permute.xlu0 %3164 }
 0x352   : > { %v6456_v32 = vpop.permute.xlu1 %3169  ;;  %9143 = vst [vmem:[#allocation296_spill] sm:$0xff] %v6458_v57  ;;  %3676 = vperm.xlu0 %5437, %v3577_v48   ;;  %v6474_v48 = vmul.f32 %v4999_v0, %v5782_v38  ;;  %v627_v57 = vmul.f32 %v4999_v0, %v5784_v39  ;;  %v6494_v38 = vmul.f32 %v4999_v0, %v5794_v50 }
 0x353   : > { %9142 = vst [vmem:[#allocation295_spill] sm:$0xff] %v6456_v32  ;;  %3681 = vperm.xlu1 %5438, %v3578_v33   ;;  %v6468_v32 = vmul.f32 %v4999_v0, %v5778_v34  ;;  %v6471_v33 = vmul.f32 %v4999_v0, %v5780_v35  ;;  %v6487_v34 = vmul.f32 %v4999_v0, %v5792_v47 }
 0x354   : > { %v6497_v39 = vmul.f32 %v4999_v0, %v5796_v51  ;;  %v6509_v47 = vmul.f32 %v4999_v0, %v5804_v59  ;;  %v6512_v50 = vmul.f32 %v4999_v0, %v5806_v62  ;;  %v3583_v51 = vld [vmem:[#allocation2 + $0xbc] sm:$0xff]  ;;  %v6532_v62 = vmul.f32 %v4999_v0, %v5816_v7 }
 0x355   : > { %v6465_v16 = vpop.permute.xlu0 %3174  ;;  %v6529_v59 = vld [vmem:[%s8844_s2 + $0x1] ss:$0 sm:$0xff]  ;;  %v6554_v7 = vmul.f32 %v4999_v0, %v5828_v19 }
 0x356   : > { %v6463_v8 = vpop.permute.xlu1 %3179  ;;  %9145 = vst [vmem:[#allocation298_spill] sm:$0xff] %v6465_v16  ;;  %3686 = vperm.xlu0 %5437, %v3579_v25   ;;  %v6481_v16 = vmul.f32 %v4999_v0, %v5788_v43  ;;  %v6503_v43 = vmul.f32 %v4999_v0, %v5800_v55  ;;  %v6521_v55 = vmul.f32 %v4999_v0, %v5812_v3 }
 0x357   : > { %9144 = vst [vmem:[#allocation297_spill] sm:$0xff] %v6463_v8  ;;  %3691 = vperm.xlu1 %5438, %v3580_v1   ;;  %v6484_v1 = vmul.f32 %v4999_v0, %v5790_v46  ;;  %v6506_v46 = vmul.f32 %v4999_v0, %v5802_v58  ;;  %v6524_v58 = vmul.f32 %v4999_v0, %v5814_v6 }
 0x358   : > { %v6541_v3 = vmul.f32 %v4999_v0, %v5822_v14  ;;  %v6551_v8 = vmul.f32 %v4999_v0, %v5826_v18  ;;  %v6563_v14 = vmul.f32 %v4999_v0, %v5834_v26  ;;  %v3585_v18 = vld [vmem:[#allocation2 + $0xcc] sm:$0xff]  ;;  %v887_v19 = vmul.f32 %v6529_v59, %v5844_v37 }
 0x359   : > { %v6491_v35 = vpop.permute.xlu0 %3184  ;;  %v889_v23 = vmul.f32 %v6529_v59, %v5848_v45  ;;  %v6577_v26 = vmul.f32 %v4999_v0, %v5838_v30  ;;  %v893_v30 = vmul.f32 %v6529_v59, %v5856_v61  ;;  %v896_v45 = vmul.f32 %v6529_v59, %v5858_v4 }
 0x35a   : > { %v6489_v25 = vpop.permute.xlu1 %3189  ;;  %9147 = vst [vmem:[#allocation300_spill] sm:$0xff] %v6491_v35  ;;  %3696 = vperm.xlu0 %5437, %v3581_v24   ;;  %v3584_v35 = vld [vmem:[#allocation2 + $0xc4] sm:$0xff]  ;;  %v6548_v24 = vmul.f32 %v4999_v0, %v5824_v15  ;;  %v888_v15 = vmul.f32 %v6529_v59, %v5842_v36  ;;  %v892_v36 = vmul.f32 %v6529_v59, %v5850_v52 }
 0x35b   : > { %9146 = vst [vmem:[#allocation299_spill] sm:$0xff] %v6489_v25  ;;  %3701 = vperm.xlu1 %5438, %v3582_v17   ;;  %v6515_v25 = vmul.f32 %v4999_v0, %v5808_v63  ;;  %v6535_v63 = vmul.f32 %v4999_v0, %v5818_v10  ;;  %v6557_v10 = vmul.f32 %v4999_v0, %v5830_v22 }
 0x35c   : > { %v890_v22 = vmul.f32 %v6529_v59, %v5846_v44  ;;  %v6590_v44 = vmul.f32 %v4999_v0, %v5840_v31  ;;  %v6596_v52 = vadd.f32 %v888_v15, %v627_v57  ;;  %v897_v31 = vmul.f32 %v6529_v59, %v5864_v13 }
 0x35d   : > { %v6545_v6 = vpop.permute.xlu0 %3194  ;;  %v6605_v61 = vadd.f32 %v887_v19, %v6471_v33  ;;  %v6611_v57 = vadd.f32 %v889_v23, %v6468_v32  ;;  %v899_v33 = vmul.f32 %v6529_v59, %v5868_v21  ;;  %v6631_v32 = vadd.f32 %v893_v30, %v6487_v34  ;;  %v9155_v23 = vld [vmem:[#allocation10_spill] sm:$0xff] }
 0x35e   : > { %v6543_v17 = vpop.permute.xlu1 %3199  ;;  %9149 = vst [vmem:[#allocation302_spill] sm:$0xff] %v6545_v6  ;;  %3706 = vperm.xlu0 %5437, %v3583_v51   ;;  %v3586_v6 = vld [vmem:[#allocation2 + $0xd4] sm:$0xff]  ;;  %v6608_v4 = vadd.f32 %v890_v22, %v6474_v48  ;;  %v901_v34 = vmul.f32 %v6529_v59, %v5872_v29 }
 0x35f   : > { %9148 = vst [vmem:[#allocation301_spill] sm:$0xff] %v6543_v17  ;;  %3711 = vperm.xlu1 %5438, %v3584_v35   ;;  %v6568_v17 = vmul.f32 %v4999_v0, %v5836_v27  ;;  %v891_v35 = vmul.f32 %v6529_v59, %v5852_v53  ;;  %v894_v27 = vmul.f32 %v6529_v59, %v5854_v60  ;;  %v3588_v0 = vld [vmem:[#allocation2 + $0xe4] sm:$0xff]  ;;  %v9154_v22 = vld [vmem:[#allocation9_spill] sm:$0xff] }
 0x360   : > { %v895_v53 = vmul.f32 %v6529_v59, %v5860_v5  ;;  %v898_v60 = vmul.f32 %v6529_v59, %v5862_v12  ;;  %v900_v5 = vmul.f32 %v6529_v59, %v5866_v20  ;;  %v6634_v20 = vadd.f32 %v896_v45, %v6494_v38  ;;  %v3589_v38 = vld [vmem:[#allocation2 + $0xec] sm:$0xff] }
 0x361   : > { %v6587_v37 = vpop.permute.xlu0 %3204  ;;  %v6619_v12 = vadd.f32 %v891_v35, %v6481_v16  ;;  %v6622_v13 = vadd.f32 %v894_v27, %v6484_v1  ;;  %v902_v16 = vmul.f32 %v6529_v59, %v5870_v28  ;;  %v6645_v1 = vadd.f32 %v897_v31, %v6503_v43  ;;  %v9160_v31 = vld [vmem:[#allocation15_spill] sm:$0xff] }
 0x362   : > { %v6585_v51 = vpop.permute.xlu1 %3209  ;;  %9151 = vst [vmem:[#allocation304_spill] sm:$0xff] %v6587_v37  ;;  %3716 = vperm.xlu0 %5437, %v3585_v18   ;;  %v3587_v37 = vld [vmem:[#allocation2 + $0xdc] sm:$0xff]  ;;  %v6642_v21 = vadd.f32 %v898_v60, %v6500_v42  ;;  %v3590_v18 = vld [vmem:[#allocation2 + $0xf4] sm:$0xff]  ;;  %v6650_v19 = vadd.f32 %v900_v5, %v6506_v46  ;;  %v904_v28 = vmul.f32 %v6529_v59, %v5874_v40  ;;  %v9161_v5 = vld [vmem:[#allocation16_spill] sm:$0xff] }
 0x363   : > { %9150 = vst [vmem:[#allocation303_spill] sm:$0xff] %v6585_v51  ;;  %3721 = vperm.xlu1 %5438, %v3586_v6   ;;  %v6616_v6 = vadd.f32 %v892_v36, %v6478_v49  ;;  %v6639_v49 = vadd.f32 %v895_v53, %v6497_v39  ;;  %v903_v39 = vmul.f32 %v6529_v59, %v5876_v41  ;;  %v9156_v46 = vld [vmem:[#allocation11_spill] sm:$0xff]  ;;  %v9159_v53 = vld [vmem:[#allocation14_spill] sm:$0xff] }
 0x364   : > { %v906_v42 = vmul.f32 %v6529_v59, %v5878_v56  ;;  %v6659_v43 = vadd.f32 %v899_v33, %v6509_v47  ;;  %v905_v29 = vmul.f32 %v6529_v59, %v9154_v22  ;;  %v908_v36 = vmul.f32 %v6529_v59, %v9155_v23  ;;  %v9157_v56 = vld [vmem:[#allocation12_spill] sm:$0xff]  ;;  %v3836_v51 = vld [vmem:[#allocation2 + $0x7d] sm:$0xff] }
 0x365   : > { %v6628_v15 = vpop.permute.xlu0 %3214  ;;  %v907_v35 = vmul.f32 %v6529_v59, %v9156_v46  ;;  %v6672_v41 = vadd.f32 %v902_v16, %v6512_v50  ;;  %v910_v47 = vmul.f32 %v6529_v59, %v9157_v56  ;;  %v6679_v45 = vadd.f32 %v901_v34, %v6515_v25  ;;  %v3592_v33 = vld [vmem:[#allocation2 + $0x104] sm:$0xff]  ;;  %v3591_v16 = vld [vmem:[#allocation2 + $0xfc] sm:$0xff]  ;;  %v9162_v34 = vld [vmem:[#allocation17_spill] sm:$0xff] }
 0x366   : > { %v6626_v48 = vpop.permute.xlu1 %3219  ;;  %9153 = vst [vmem:[#allocation306_spill] sm:$0xff] %v6628_v15  ;;  %3726 = vperm.xlu0 %5437, %v3587_v37   ;;  %v9158_v37 = vld [vmem:[#allocation13_spill] sm:$0xff]  ;;  %v912_v60 = vmul.f32 %v6529_v59, %v9159_v53  ;;  %v914_v50 = vmul.f32 %v6529_v59, %v9161_v5  ;;  %v6688_v22 = vadd.f32 %v904_v28, %v6518_v54  ;;  %v9163_v54 = vld [vmem:[#allocation18_spill] sm:$0xff] }
 0x367   : > { %9152 = vst [vmem:[#allocation305_spill] sm:$0xff] %v6626_v48  ;;  %3731 = vperm.xlu1 %5438, %v3588_v0   ;;  %v909_v30 = vmul.f32 %v6529_v59, %v9158_v37  ;;  %v911_v0 = vmul.f32 %v6529_v59, %v9160_v31  ;;  %v6694_v25 = vadd.f32 %v906_v42, %v6524_v58  ;;  %v9167_v37 = vld [vmem:[#allocation20_spill] sm:$0xff]  ;;  %v9168_v53 = vld [vmem:[#allocation21_spill] sm:$0xff]  ;;  %v9169_v5 = vld [vmem:[#allocation22_spill] sm:$0xff] }
 0x368   : > { %v6699_v23 = vadd.f32 %v905_v29, %v6532_v62  ;;  %v6702_v46 = vadd.f32 %v908_v36, %v6535_v63  ;;  %v6705_v56 = vadd.f32 %v907_v35, %v6538_v2  ;;  %v916_v28 = vmul.f32 %v6529_v59, %v9163_v54  ;;  %v9166_v2 = vld [vmem:[#allocation19_spill] sm:$0xff]  ;;  %v9235_v48 = vld [vmem:[#allocation76_spill] sm:$0xff] }
 0x369   : > { %v6669_v40 = vpop.permute.xlu0 %3224  ;;  %v6719_v62 = vadd.f32 %v910_v47, %v6541_v3  ;;  %v6722_v63 = vadd.f32 %v909_v30, %v6548_v24  ;;  %v915_v42 = vmul.f32 %v6529_v59, %v9166_v2  ;;  %v6727_v29 = vadd.f32 %v912_v60, %v6551_v8  ;;  %v3823_v47 = vld [vmem:[#allocation2 + $0x15] sm:$0xff]  ;;  %v3822_v24 = vld [vmem:[#allocation2 + $0xd] sm:$0xff]  ;;  %v9170_v60 = vld [vmem:[#allocation23_spill] sm:$0xff] }
 0x36a   : > { %v6667_v27 = vpop.permute.xlu1 %3229  ;;  %3736 = vperm.xlu0 %5437, %v3589_v38   ;;  %v913_v38 = vmul.f32 %v6529_v59, %v9162_v34  ;;  %v6730_v36 = vadd.f32 %v911_v0, %v6554_v7  ;;  %v6733_v35 = vadd.f32 %v914_v50, %v6557_v10  ;;  %v918_v3 = vmul.f32 %v6529_v59, %v9167_v37  ;;  %v9171_v0 = vld [vmem:[#allocation24_spill] sm:$0xff]  ;;  %v9176_v2 = vld [vmem:[#allocation27_spill] sm:$0xff] }
 0x36b   : > { %3741 = vperm.xlu1 %5438, %v3590_v18   ;;  %v6691_v18 = vadd.f32 %v903_v39, %v6521_v55  ;;  %v6712_v55 = vld [vmem:[%s8844_s2 + $0x2] ss:$0 sm:$0xff]  ;;  %v917_v31 = vmul.f32 %v6529_v59, %v9168_v53  ;;  %v6747_v10 = vadd.f32 %v916_v28, %v6563_v14  ;;  %v6760_v54 = vadd.f32 %v915_v42, %v6568_v17  ;;  %v9177_v28 = vld [vmem:[#allocation28_spill] sm:$0xff] }
 0x36c   : > { %v6738_v30 = vadd.f32 %v913_v38, %v6560_v11  ;;  %v1149_v8 = vmul.f32 %v6712_v55, %v9169_v5  ;;  %v1148_v7 = vmul.f32 %v6712_v55, %v9170_v60  ;;  %v1151_v50 = vmul.f32 %v6712_v55, %v9171_v0  ;;  %v9173_v11 = vld [vmem:[#allocation26_spill] sm:$0xff]  ;;  %v9178_v5 = vld [vmem:[#allocation29_spill] sm:$0xff]  ;;  %v3825_v42 = vld [vmem:[#allocation2 + $0x25] sm:$0xff] }
 0x36d   : > { %v6716_v39 = vpop.permute.xlu0 %3335  ;;  %v1153_v34 = vmul.f32 %v6712_v55, %v9173_v11  ;;  %v1152_v14 = vmul.f32 %v6712_v55, %v9176_v2  ;;  %v1155_v37 = vmul.f32 %v6712_v55, %v9177_v28  ;;  %v6767_v53 = vadd.f32 %v918_v3, %v6577_v26  ;;  %v9179_v0 = vld [vmem:[#allocation30_spill] sm:$0xff]  ;;  %v9180_v11 = vld [vmem:[#allocation31_spill] sm:$0xff]  ;;  %v9181_v3 = vld [vmem:[#allocation32_spill] sm:$0xff] }
 0x36e   : > { %v6714_v58 = vpop.permute.xlu1 %3340  ;;  %9165 = vst [vmem:[#allocation10_spill] sm:$0xff] %v6716_v39  ;;  %3746 = vperm.xlu0 %5437, %v3591_v16   ;;  %v1154_v60 = vmul.f32 %v6712_v55, %v9178_v5  ;;  %v1156_v17 = vmul.f32 %v6712_v55, %v9180_v11  ;;  %v6776_v2 = vadd.f32 %v917_v31, %v6590_v44  ;;  %v9182_v44 = vld [vmem:[#allocation33_spill] sm:$0xff]  ;;  %v9187_v11 = vld [vmem:[#allocation36_spill] sm:$0xff]  ;;  %v3828_v39 = vld [vmem:[#allocation2 + $0x3d] sm:$0xff] }
 0x36f   : > { %9164 = vst [vmem:[#allocation9_spill] sm:$0xff] %v6714_v58  ;;  %3751 = vperm.xlu1 %5438, %v3592_v33   ;;  %v9172_v33 = vld [vmem:[#allocation25_spill] sm:$0xff]  ;;  %v6782_v26 = vadd.f32 %v1148_v7, %v6605_v61  ;;  %v6787_v28 = vadd.f32 %v1151_v50, %v6608_v4  ;;  %v1158_v31 = vmul.f32 %v6712_v55, %v9182_v44  ;;  %v9185_v4 = vld [vmem:[#allocation34_spill] sm:$0xff] }
 0x370   : > { %v1150_v16 = vmul.f32 %v6712_v55, %v9172_v33  ;;  %v1157_v33 = vmul.f32 %v6712_v55, %v9179_v0  ;;  %v6793_v0 = vadd.f32 %v1153_v34, %v6616_v6  ;;  %v6802_v61 = vadd.f32 %v1152_v14, %v6619_v12  ;;  %v9186_v34 = vld [vmem:[#allocation35_spill] sm:$0xff]  ;;  %v3827_v14 = vld [vmem:[#allocation2 + $0x35] sm:$0xff] }
 0x371   : > { %v6757_v59 = vpop.permute.xlu0 %3345  ;;  %v6805_v7 = vadd.f32 %v1155_v37, %v6622_v13  ;;  %v6810_v6 = vadd.f32 %v1154_v60, %v6631_v32  ;;  %v1160_v12 = vmul.f32 %v6712_v55, %v9186_v34  ;;  %v3826_v13 = vld [vmem:[#allocation2 + $0x2d] sm:$0xff]  ;;  %v9189_v60 = vld [vmem:[#allocation38_spill] sm:$0xff] }
 0x372   : > { %v6755_v38 = vpop.permute.xlu1 %3350  ;;  %9175 = vst [vmem:[#allocation12_spill] sm:$0xff] %v6757_v59  ;;  %3857 = vperm.xlu0 %5437, %v3822_v24   ;;  %v3824_v59 = vld [vmem:[#allocation2 + $0x1d] sm:$0xff]  ;;  %v1159_v24 = vmul.f32 %v6712_v55, %v9181_v3  ;;  %v6790_v5 = vadd.f32 %v1150_v16, %v6611_v57  ;;  %v1161_v57 = vmul.f32 %v6712_v55, %v9185_v4  ;;  %v9191_v3 = vld [vmem:[#allocation40_spill] sm:$0xff]  ;;  %v9216_v58 = vld [vmem:[#allocation61_spill] sm:$0xff] }
 0x373   : > { %9174 = vst [vmem:[#allocation11_spill] sm:$0xff] %v6755_v38  ;;  %3862 = vperm.xlu1 %5438, %v3823_v47   ;;  %v6779_v47 = vadd.f32 %v1149_v8, %v6596_v52  ;;  %v6813_v50 = vadd.f32 %v1157_v33, %v6634_v20  ;;  %v6816_v16 = vadd.f32 %v1156_v17, %v6639_v49  ;;  %v9190_v33 = vld [vmem:[#allocation39_spill] sm:$0xff]  ;;  %v9197_v38 = vld [vmem:[#allocation46_spill] sm:$0xff] }
 0x374   : > { %v6821_v37 = vadd.f32 %v1159_v24, %v6642_v21  ;;  %v1165_v20 = vmul.f32 %v6712_v55, %v9189_v60  ;;  %v6830_v49 = vadd.f32 %v1158_v31, %v6645_v1  ;;  %v1164_v17 = vmul.f32 %v6712_v55, %v9190_v33  ;;  %v9192_v21 = vld [vmem:[#allocation41_spill] sm:$0xff]  ;;  %v9194_v31 = vld [vmem:[#allocation43_spill] sm:$0xff] }
 0x375   : > { %v6799_v8 = vpop.permute.xlu0 %3355  ;;  %v1167_v44 = vmul.f32 %v6712_v55, %v9191_v3  ;;  %v1166_v24 = vmul.f32 %v6712_v55, %v9192_v21  ;;  %v1168_v60 = vmul.f32 %v6712_v55, %v9194_v31  ;;  %v6850_v33 = vadd.f32 %v1160_v12, %v6659_v43  ;;  %v9195_v3 = vld [vmem:[#allocation44_spill] sm:$0xff]  ;;  %v9198_v12 = vld [vmem:[#allocation47_spill] sm:$0xff] }
 0x376   : > { %v6797_v52 = vpop.permute.xlu1 %3360  ;;  %9184 = vst [vmem:[#allocation14_spill] sm:$0xff] %v6799_v8  ;;  %3867 = vperm.xlu0 %5437, %v3824_v59   ;;  %v1163_v59 = vmul.f32 %v6712_v55, %v9187_v11  ;;  %v6843_v11 = vadd.f32 %v1161_v57, %v6650_v19  ;;  %v1171_v21 = vmul.f32 %v6712_v55, %v9195_v3  ;;  %v9196_v8 = vld [vmem:[#allocation45_spill] sm:$0xff]  ;;  %v3829_v57 = vld [vmem:[#allocation2 + $0x45] sm:$0xff]  ;;  %v3832_v15 = vld [vmem:[#allocation2 + $0x5d] sm:$0xff] }
 0x377   : > { %9183 = vst [vmem:[#allocation13_spill] sm:$0xff] %v6797_v52  ;;  %3872 = vperm.xlu1 %5438, %v3825_v42   ;;  %v9188_v42 = vld [vmem:[#allocation37_spill] sm:$0xff]  ;;  %v1170_v52 = vmul.f32 %v6712_v55, %v9196_v8  ;;  %v1173_v19 = vmul.f32 %v6712_v55, %v9197_v38  ;;  %v6865_v43 = vadd.f32 %v1165_v20, %v6688_v22 }
 0x378   : > { %v1162_v32 = vmul.f32 %v6712_v55, %v9188_v42  ;;  %v9193_v42 = vld [vmem:[#allocation42_spill] sm:$0xff]  ;;  %v6870_v31 = vadd.f32 %v1164_v17, %v6691_v18  ;;  %v6873_v8 = vadd.f32 %v1167_v44, %v6694_v25  ;;  %v6876_v38 = vadd.f32 %v1166_v24, %v6699_v23  ;;  %v9202_v18 = vld [vmem:[#allocation49_spill] sm:$0xff]  ;;  %v6895_v23 = vld [vmem:[%s8844_s2 + $0x3] ss:$0 sm:$0xff] }
 0x379   : > { %v6840_v34 = vpop.permute.xlu0 %3365  ;;  %v1169_v1 = vmul.f32 %v6712_v55, %v9193_v42  ;;  %v6859_v42 = vadd.f32 %v1163_v59, %v6672_v41  ;;  %v9199_v41 = vld [vmem:[#allocation48_spill] sm:$0xff]  ;;  %v6888_v20 = vadd.f32 %v1168_v60, %v6705_v56  ;;  %v1174_v25 = vmul.f32 %v6712_v55, %v9202_v18  ;;  %v9203_v56 = vld [vmem:[#allocation50_spill] sm:$0xff] }
 0x37a   : > { %v6838_v4 = vpop.permute.xlu1 %3370  ;;  %3877 = vperm.xlu0 %5437, %v3826_v13   ;;  %v1172_v13 = vmul.f32 %v6712_v55, %v9198_v12  ;;  %v1175_v59 = vmul.f32 %v6712_v55, %v9199_v41  ;;  %v6898_v17 = vadd.f32 %v1171_v21, %v6719_v62  ;;  %v6901_v44 = vadd.f32 %v1170_v52, %v6722_v63  ;;  %v3830_v60 = vld [vmem:[#allocation2 + $0x4d] sm:$0xff]  ;;  %v9204_v12 = vld [vmem:[#allocation51_spill] sm:$0xff]  ;;  %v9207_v52 = vld [vmem:[#allocation54_spill] sm:$0xff] }
 0x37b   : > { %3882 = vperm.xlu1 %5438, %v3827_v14   ;;  %v6862_v14 = vadd.f32 %v1162_v32, %v6679_v45  ;;  %v6885_v22 = vadd.f32 %v1169_v1, %v6702_v46  ;;  %v6904_v46 = vadd.f32 %v1173_v19, %v6727_v29  ;;  %v1177_v24 = vmul.f32 %v6712_v55, %v9203_v56  ;;  %v3831_v1 = vld [vmem:[#allocation2 + $0x55] sm:$0xff]  ;;  %v9208_v41 = vld [vmem:[#allocation55_spill] sm:$0xff] }
 0x37c   : > { %v6909_v3 = vadd.f32 %v1172_v13, %v6730_v36  ;;  %v9206_v21 = vld [vmem:[#allocation53_spill] sm:$0xff]  ;;  %v6918_v29 = vadd.f32 %v1175_v59, %v6733_v35  ;;  %v1410_v19 = vmul.f32 %v6895_v23, %v9207_v52  ;;  %v1409_v18 = vmul.f32 %v6895_v23, %v9208_v41  ;;  %v9209_v36 = vld [vmem:[#allocation56_spill] sm:$0xff]  ;;  %v9213_v59 = vld [vmem:[#allocation58_spill] sm:$0xff] }
 0x37d   : > { %v6882_v32 = vpop.permute.xlu0 %3375  ;;  %v1178_v63 = vmul.f32 %v6712_v55, %v9206_v21  ;;  %v1412_v13 = vmul.f32 %v6895_v23, %v9209_v36  ;;  %v1414_v21 = vmul.f32 %v6895_v23, %v9213_v59  ;;  %v6938_v52 = vadd.f32 %v1177_v24, %v6747_v10  ;;  %v9214_v41 = vld [vmem:[#allocation59_spill] sm:$0xff]  ;;  %v9217_v24 = vld [vmem:[#allocation62_spill] sm:$0xff] }
 0x37e   : > { %v6880_v45 = vpop.permute.xlu1 %3380  ;;  %9201 = vst [vmem:[#allocation16_spill] sm:$0xff] %v6882_v32  ;;  %3887 = vperm.xlu0 %5437, %v3828_v39   ;;  %v1176_v39 = vmul.f32 %v6712_v55, %v9204_v12  ;;  %v1413_v36 = vmul.f32 %v6895_v23, %v9214_v41  ;;  %v9215_v32 = vld [vmem:[#allocation60_spill] sm:$0xff]  ;;  %v6958_v59 = vadd.f32 %v1410_v19, %v6779_v47  ;;  %v9223_v41 = vld [vmem:[#allocation66_spill] sm:$0xff] }
 0x37f   : > { %9200 = vst [vmem:[#allocation15_spill] sm:$0xff] %v6880_v45  ;;  %3892 = vperm.xlu1 %5438, %v3829_v57   ;;  %v9205_v57 = vld [vmem:[#allocation52_spill] sm:$0xff]  ;;  %v1416_v45 = vmul.f32 %v6895_v23, %v9215_v32  ;;  %v6953_v10 = vadd.f32 %v1178_v63, %v6776_v2  ;;  %v6961_v32 = vadd.f32 %v1409_v18, %v6782_v26 }
 0x380   : > { %v1179_v62 = vmul.f32 %v6712_v55, %v9205_v57  ;;  %v6931_v57 = vadd.f32 %v1174_v25, %v6738_v30  ;;  %v9212_v55 = vld [vmem:[#allocation57_spill] sm:$0xff]  ;;  %v1415_v30 = vmul.f32 %v6895_v23, %v9216_v58  ;;  %v3833_v25 = vld [vmem:[#allocation2 + $0x65] sm:$0xff]  ;;  %v6964_v58 = vadd.f32 %v1412_v13, %v6787_v28 }
 0x381   : > { %v6928_v12 = vpop.permute.xlu0 %3385  ;;  %v1411_v35 = vmul.f32 %v6895_v23, %v9212_v55  ;;  %v6947_v55 = vadd.f32 %v1176_v39, %v6760_v54  ;;  %v9218_v54 = vld [vmem:[#allocation63_spill] sm:$0xff]  ;;  %v6976_v63 = vadd.f32 %v1414_v21, %v6793_v0  ;;  %v9221_v47 = vld [vmem:[#allocation64_spill] sm:$0xff]  ;;  %v6981_v28 = vadd.f32 %v1413_v36, %v6802_v61  ;;  %v9222_v13 = vld [vmem:[#allocation65_spill] sm:$0xff] }
 0x382   : > { %v6926_v56 = vpop.permute.xlu1 %3390  ;;  %9211 = vst [vmem:[#allocation18_spill] sm:$0xff] %v6928_v12  ;;  %3897 = vperm.xlu0 %5437, %v3830_v60   ;;  %v1418_v60 = vmul.f32 %v6895_v23, %v9217_v24  ;;  %v1417_v39 = vmul.f32 %v6895_v23, %v9218_v54  ;;  %v1420_v26 = vmul.f32 %v6895_v23, %v9221_v47  ;;  %v3834_v0 = vld [vmem:[#allocation2 + $0x6d] sm:$0xff]  ;;  %v9227_v24 = vld [vmem:[#allocation70_spill] sm:$0xff] }
 0x383   : > { %9210 = vst [vmem:[#allocation17_spill] sm:$0xff] %v6926_v56  ;;  %3902 = vperm.xlu1 %5438, %v3831_v1   ;;  %v6950_v1 = vadd.f32 %v1179_v62, %v6767_v53  ;;  %v6973_v2 = vadd.f32 %v1411_v35, %v6790_v5  ;;  %v6984_v19 = vadd.f32 %v1416_v45, %v6805_v7  ;;  %v3835_v35 = vld [vmem:[#allocation2 + $0x75] sm:$0xff]  ;;  %v9225_v36 = vld [vmem:[#allocation68_spill] sm:$0xff]  ;;  %v4089_v12 = vld [vmem:[#allocation2 + $0x3e] sm:$0xff] }
 0x384   : > { %v6987_v18 = vadd.f32 %v1415_v30, %v6810_v6  ;;  %v1419_v5 = vmul.f32 %v6895_v23, %v9222_v13  ;;  %v6992_v21 = vadd.f32 %v1418_v60, %v6813_v50  ;;  %v1424_v7 = vmul.f32 %v6895_v23, %v9225_v36  ;;  %v9226_v45 = vld [vmem:[#allocation69_spill] sm:$0xff]  ;;  %v9228_v50 = vld [vmem:[#allocation71_spill] sm:$0xff] }
 0x385   : > { %v6970_v62 = vpop.permute.xlu0 %3395  ;;  %v7001_v6 = vadd.f32 %v1417_v39, %v6816_v16  ;;  %v1423_v30 = vmul.f32 %v6895_v23, %v9226_v45  ;;  %v1426_v54 = vmul.f32 %v6895_v23, %v9227_v24  ;;  %v1425_v60 = vmul.f32 %v6895_v23, %v9228_v50  ;;  %v9232_v39 = vld [vmem:[#allocation73_spill] sm:$0xff]  ;;  %v9233_v24 = vld [vmem:[#allocation74_spill] sm:$0xff] }
 0x386   : > { %v6968_v53 = vpop.permute.xlu1 %3400  ;;  %9220 = vst [vmem:[#allocation20_spill] sm:$0xff] %v6970_v62  ;;  %3907 = vperm.xlu0 %5437, %v3832_v15   ;;  %v1422_v15 = vmul.f32 %v6895_v23, %v9223_v41  ;;  %v7014_v41 = vadd.f32 %v1420_v26, %v6821_v37  ;;  %v1427_v36 = vmul.f32 %v6895_v23, %v9232_v39  ;;  %v9234_v62 = vld [vmem:[#allocation75_spill] sm:$0xff] }
 0x387   : > { %9219 = vst [vmem:[#allocation19_spill] sm:$0xff] %v6968_v53  ;;  %3912 = vperm.xlu1 %5438, %v3833_v25   ;;  %v9224_v25 = vld [vmem:[#allocation67_spill] sm:$0xff]  ;;  %v7021_v45 = vadd.f32 %v1419_v5, %v6830_v49  ;;  %v1430_v50 = vmul.f32 %v6895_v23, %v9233_v24  ;;  %v1429_v53 = vmul.f32 %v6895_v23, %v9234_v62  ;;  %v9236_v5 = vld [vmem:[#allocation77_spill] sm:$0xff] }
 0x388   : > { %v1421_v61 = vmul.f32 %v6895_v23, %v9224_v25  ;;  %v9231_v25 = vld [vmem:[#allocation72_spill] sm:$0xff]  ;;  %v1432_v37 = vmul.f32 %v6895_v23, %v9235_v48  ;;  %v7036_v49 = vadd.f32 %v1424_v7, %v6859_v42  ;;  %v7041_v39 = vadd.f32 %v1423_v30, %v6862_v14  ;;  %v9240_v14 = vld [vmem:[#allocation79_spill] sm:$0xff] }
 0x389   : > { %v7011_v13 = vpop.permute.xlu0 %3405  ;;  %v1428_v16 = vmul.f32 %v6895_v23, %v9231_v25  ;;  %v3837_v26 = vld [vmem:[#allocation2 + $0x85] sm:$0xff]  ;;  %v7030_v25 = vadd.f32 %v1422_v15, %v6843_v11  ;;  %v7044_v62 = vadd.f32 %v1426_v54, %v6865_v43  ;;  %v7047_v48 = vadd.f32 %v1425_v60, %v6870_v31  ;;  %v9237_v11 = vld [vmem:[#allocation78_spill] sm:$0xff]  ;;  %v7066_v31 = vld [vmem:[%s8844_s2 + $0x4] ss:$0 sm:$0xff] }
 0x38a   : > { %v7009_v47 = vpop.permute.xlu1 %3410  ;;  %9230 = vst [vmem:[#allocation22_spill] sm:$0xff] %v7011_v13  ;;  %3917 = vperm.xlu0 %5437, %v3834_v0   ;;  %v1431_v0 = vmul.f32 %v6895_v23, %v9236_v5  ;;  %v1434_v15 = vmul.f32 %v6895_v23, %v9237_v11  ;;  %v7059_v7 = vadd.f32 %v1427_v36, %v6876_v38  ;;  %v9241_v38 = vld [vmem:[#allocation80_spill] sm:$0xff]  ;;  %v9242_v5 = vld [vmem:[#allocation81_spill] sm:$0xff]  ;;  %v3848_v13 = vld [vmem:[#allocation2 + $0xdd] sm:$0xff] }
 0x38b   : > { %9229 = vst [vmem:[#allocation21_spill] sm:$0xff] %v7009_v47  ;;  %3922 = vperm.xlu1 %5438, %v3835_v35   ;;  %v7033_v35 = vadd.f32 %v1421_v61, %v6850_v33  ;;  %v7056_v42 = vadd.f32 %v1428_v16, %v6873_v8  ;;  %v1433_v43 = vmul.f32 %v6895_v23, %v9240_v14  ;;  %v3839_v16 = vld [vmem:[#allocation2 + $0x95] sm:$0xff]  ;;  %v3838_v36 = vld [vmem:[#allocation2 + $0x8d] sm:$0xff]  ;;  %v3852_v47 = vld [vmem:[#allocation2 + $0xfd] sm:$0xff] }
 0x38c   : > { %v7069_v30 = vadd.f32 %v1430_v50, %v6885_v22  ;;  %v7072_v54 = vadd.f32 %v1429_v53, %v6888_v20  ;;  %v7075_v8 = vadd.f32 %v1432_v37, %v6898_v17  ;;  %v1436_v60 = vmul.f32 %v6895_v23, %v9241_v38  ;;  %v9244_v50 = vld [vmem:[#allocation83_spill] sm:$0xff]  ;;  %v9245_v53 = vld [vmem:[#allocation84_spill] sm:$0xff]  ;;  %v9246_v11 = vld [vmem:[#allocation85_spill] sm:$0xff] }
 0x38d   : > { %v7053_v61 = vpop.permute.xlu0 %3415  ;;  %v7080_v24 = vadd.f32 %v1431_v0, %v6901_v44  ;;  %v1437_v20 = vmul.f32 %v6895_v23, %v9244_v50  ;;  %v7089_v17 = vadd.f32 %v1434_v15, %v6904_v46  ;;  %v1440_v37 = vmul.f32 %v6895_v23, %v9245_v53  ;;  %v9247_v44 = vld [vmem:[#allocation86_spill] sm:$0xff]  ;;  %v9250_v50 = vld [vmem:[#allocation87_spill] sm:$0xff]  ;;  %v9251_v15 = vld [vmem:[#allocation88_spill] sm:$0xff] }
 0x38e   : > { %v7051_v33 = vpop.permute.xlu1 %3420  ;;  %9239 = vst [vmem:[#allocation24_spill] sm:$0xff] %v7053_v61  ;;  %3927 = vperm.xlu0 %5437, %v3836_v51   ;;  %v1435_v51 = vmul.f32 %v6895_v23, %v9242_v5  ;;  %v1439_v14 = vmul.f32 %v6895_v23, %v9246_v11  ;;  %v1671_v0 = vmul.f32 %v7066_v31, %v9247_v44  ;;  %v9252_v53 = vld [vmem:[#allocation89_spill] sm:$0xff]  ;;  %v9253_v44 = vld [vmem:[#allocation90_spill] sm:$0xff] }
 0x38f   : > { %9238 = vst [vmem:[#allocation23_spill] sm:$0xff] %v7051_v33  ;;  %3932 = vperm.xlu1 %5438, %v3837_v26   ;;  %v9243_v26 = vld [vmem:[#allocation82_spill] sm:$0xff]  ;;  %v1670_v46 = vmul.f32 %v7066_v31, %v9250_v50  ;;  %v1673_v61 = vmul.f32 %v7066_v31, %v9251_v15  ;;  %v1672_v11 = vmul.f32 %v7066_v31, %v9252_v53 }
 0x390   : > { %v1438_v22 = vmul.f32 %v6895_v23, %v9243_v26  ;;  %v7102_v26 = vadd.f32 %v1433_v43, %v6909_v3  ;;  %v7109_v23 = vadd.f32 %v1436_v60, %v6918_v29  ;;  %v3841_v43 = vld [vmem:[#allocation2 + $0xa5] sm:$0xff]  ;;  %v3840_v33 = vld [vmem:[#allocation2 + $0x9d] sm:$0xff]  ;;  %v7118_v50 = vadd.f32 %v1435_v51, %v6931_v57  ;;  %v9256_v57 = vld [vmem:[#allocation93_spill] sm:$0xff] }
 0x391   : > { %v7099_v5 = vpop.permute.xlu0 %3425  ;;  %v7124_v29 = vadd.f32 %v1437_v20, %v6947_v55  ;;  %v9255_v60 = vld [vmem:[#allocation92_spill] sm:$0xff]  ;;  %v7129_v15 = vadd.f32 %v1440_v37, %v6950_v1  ;;  %v7132_v53 = vadd.f32 %v1439_v14, %v6953_v10  ;;  %v1676_v51 = vmul.f32 %v7066_v31, %v9256_v57  ;;  %v9259_v1 = vld [vmem:[#allocation94_spill] sm:$0xff] }
 0x392   : > { %v7097_v38 = vpop.permute.xlu1 %3430  ;;  %9249 = vst [vmem:[#allocation26_spill] sm:$0xff] %v7099_v5  ;;  %3937 = vperm.xlu0 %5437, %v3838_v36   ;;  %v1675_v5 = vmul.f32 %v7066_v31, %v9253_v44  ;;  %v1677_v36 = vmul.f32 %v7066_v31, %v9255_v60  ;;  %v7144_v55 = vadd.f32 %v1670_v46, %v6961_v32  ;;  %v3843_v46 = vld [vmem:[#allocation2 + $0xb5] sm:$0xff]  ;;  %v9261_v44 = vld [vmem:[#allocation96_spill] sm:$0xff]  ;;  %v4093_v56 = vld [vmem:[#allocation2 + $0x5e] sm:$0xff] }
 0x393   : > { %9248 = vst [vmem:[#allocation25_spill] sm:$0xff] %v7097_v38  ;;  %3942 = vperm.xlu1 %5438, %v3839_v16   ;;  %v9254_v38 = vld [vmem:[#allocation91_spill] sm:$0xff]  ;;  %v7121_v16 = vadd.f32 %v1438_v22, %v6938_v52  ;;  %v7147_v20 = vadd.f32 %v1673_v61, %v6964_v58  ;;  %v1679_v10 = vmul.f32 %v7066_v31, %v9259_v1  ;;  %v3842_v58 = vld [vmem:[#allocation2 + $0xad] sm:$0xff] }
 0x394   : > { %v1674_v3 = vmul.f32 %v7066_v31, %v9254_v38  ;;  %v7135_v38 = vadd.f32 %v1671_v0, %v6958_v59  ;;  %v7152_v59 = vadd.f32 %v1672_v11, %v6973_v2  ;;  %v7155_v37 = vadd.f32 %v1675_v5, %v6976_v63  ;;  %v9260_v0 = vld [vmem:[#allocation95_spill] sm:$0xff]  ;;  %v9263_v11 = vld [vmem:[#allocation98_spill] sm:$0xff]  ;;  %v9265_v60 = vld [vmem:[#allocation100_spill] sm:$0xff] }
 0x395   : > { %v7141_v22 = vpop.permute.xlu0 %3435  ;;  %v1678_v32 = vmul.f32 %v7066_v31, %v9260_v0  ;;  %v7163_v61 = vadd.f32 %v1677_v36, %v6984_v19  ;;  %v1683_v63 = vmul.f32 %v7066_v31, %v9263_v11  ;;  %v9264_v5 = vld [vmem:[#allocation99_spill] sm:$0xff]  ;;  %v1685_v57 = vmul.f32 %v7066_v31, %v9265_v60  ;;  %v9266_v19 = vld [vmem:[#allocation101_spill] sm:$0xff]  ;;  %v9271_v60 = vld [vmem:[#allocation104_spill] sm:$0xff] }
 0x396   : > { %v7139_v52 = vpop.permute.xlu1 %3440  ;;  %9258 = vst [vmem:[#allocation28_spill] sm:$0xff] %v7141_v22  ;;  %3947 = vperm.xlu0 %5437, %v3840_v33   ;;  %v7158_v14 = vadd.f32 %v1674_v3, %v6981_v28  ;;  %v1681_v33 = vmul.f32 %v7066_v31, %v9261_v44  ;;  %v7172_v28 = vadd.f32 %v1676_v51, %v6987_v18  ;;  %v9270_v51 = vld [vmem:[#allocation103_spill] sm:$0xff]  ;;  %v9273_v22 = vld [vmem:[#allocation106_spill] sm:$0xff] }
 0x397   : > { %9257 = vst [vmem:[#allocation27_spill] sm:$0xff] %v7139_v52  ;;  %3952 = vperm.xlu1 %5438, %v3841_v43   ;;  %v9262_v43 = vld [vmem:[#allocation97_spill] sm:$0xff]  ;;  %v1682_v3 = vmul.f32 %v7066_v31, %v9264_v5  ;;  %v1684_v36 = vmul.f32 %v7066_v31, %v9266_v19  ;;  %v7185_v44 = vadd.f32 %v1679_v10, %v6992_v21  ;;  %v3845_v10 = vld [vmem:[#allocation2 + $0xc5] sm:$0xff]  ;;  %v3844_v52 = vld [vmem:[#allocation2 + $0xbd] sm:$0xff] }
 0x398   : > { %v1680_v2 = vmul.f32 %v7066_v31, %v9262_v43  ;;  %v9269_v43 = vld [vmem:[#allocation102_spill] sm:$0xff]  ;;  %v1686_v11 = vmul.f32 %v7066_v31, %v9270_v51  ;;  %v7192_v5 = vadd.f32 %v1678_v32, %v7001_v6  ;;  %v1689_v19 = vmul.f32 %v7066_v31, %v9271_v60  ;;  %v9274_v32 = vld [vmem:[#allocation107_spill] sm:$0xff]  ;;  %v9282_v60 = vld [vmem:[#allocation113_spill] sm:$0xff] }
 0x399   : > { %v7182_v0 = vpop.permute.xlu0 %3445  ;;  %v1687_v18 = vmul.f32 %v7066_v31, %v9269_v43  ;;  %v1691_v21 = vmul.f32 %v7066_v31, %v9273_v22  ;;  %v7201_v43 = vadd.f32 %v1681_v33, %v7014_v41  ;;  %v7207_v6 = vadd.f32 %v1683_v63, %v7030_v25  ;;  %v9275_v41 = vld [vmem:[#allocation108_spill] sm:$0xff] }
 0x39a   : > { %v7180_v1 = vpop.permute.xlu1 %3450  ;;  %9268 = vst [vmem:[#allocation30_spill] sm:$0xff] %v7182_v0  ;;  %3957 = vperm.xlu0 %5437, %v3842_v58   ;;  %v1690_v58 = vmul.f32 %v7066_v31, %v9274_v32  ;;  %v7212_v51 = vadd.f32 %v1682_v3, %v7033_v35  ;;  %v7218_v22 = vadd.f32 %v1684_v36, %v7041_v39  ;;  %v9278_v35 = vld [vmem:[#allocation109_spill] sm:$0xff]  ;;  %v9279_v36 = vld [vmem:[#allocation110_spill] sm:$0xff] }
 0x39b   : > { %9267 = vst [vmem:[#allocation29_spill] sm:$0xff] %v7180_v1  ;;  %3962 = vperm.xlu1 %5438, %v3843_v46   ;;  %v9272_v1 = vld [vmem:[#allocation105_spill] sm:$0xff]  ;;  %v7204_v46 = vadd.f32 %v1680_v2, %v7021_v45  ;;  %v1693_v33 = vmul.f32 %v7066_v31, %v9275_v41  ;;  %v7227_v25 = vadd.f32 %v1687_v18, %v7044_v62  ;;  %v9284_v41 = vld [vmem:[#allocation115_spill] sm:$0xff] }
 0x39c   : > { %v1688_v0 = vmul.f32 %v7066_v31, %v9272_v1  ;;  %v7215_v1 = vadd.f32 %v1685_v57, %v7036_v49  ;;  %v7230_v63 = vadd.f32 %v1686_v11, %v7047_v48  ;;  %v1692_v49 = vmul.f32 %v7066_v31, %v9278_v35  ;;  %v7248_v48 = vld [vmem:[%s8844_s2 + $0x5] ss:$0 sm:$0xff]  ;;  %v3847_v18 = vld [vmem:[#allocation2 + $0xd5] sm:$0xff]  ;;  %v3846_v11 = vld [vmem:[#allocation2 + $0xcd] sm:$0xff] }
 0x39d   : > { %v7224_v2 = vpop.permute.xlu0 %3455  ;;  %v7235_v39 = vadd.f32 %v1689_v19, %v7056_v42  ;;  %v7241_v57 = vadd.f32 %v1691_v21, %v7069_v30  ;;  %v1695_v62 = vmul.f32 %v7066_v31, %v9279_v36  ;;  %v9280_v42 = vld [vmem:[#allocation111_spill] sm:$0xff]  ;;  %v1696_v19 = vmul.f32 %v7066_v31, %v9282_v60  ;;  %v9288_v60 = vld [vmem:[#allocation117_spill] sm:$0xff] }
 0x39e   : > { %v7222_v45 = vpop.permute.xlu1 %3460  ;;  %9277 = vst [vmem:[#allocation32_spill] sm:$0xff] %v7224_v2  ;;  %3967 = vperm.xlu0 %5437, %v3844_v52   ;;  %v7238_v3 = vadd.f32 %v1688_v0, %v7059_v7  ;;  %v7251_v52 = vadd.f32 %v1690_v58, %v7072_v54  ;;  %v1694_v7 = vmul.f32 %v7066_v31, %v9280_v42  ;;  %v9281_v0 = vld [vmem:[#allocation112_spill] sm:$0xff] }
 0x39f   : > { %9276 = vst [vmem:[#allocation31_spill] sm:$0xff] %v7222_v45  ;;  %3972 = vperm.xlu1 %5438, %v3845_v10   ;;  %v1697_v30 = vmul.f32 %v7066_v31, %v9281_v0  ;;  %v7260_v21 = vadd.f32 %v1693_v33, %v7075_v8  ;;  %v9283_v10 = vld [vmem:[#allocation114_spill] sm:$0xff]  ;;  %v1698_v35 = vmul.f32 %v7066_v31, %v9284_v41  ;;  %v9285_v54 = vld [vmem:[#allocation116_spill] sm:$0xff]  ;;  %v9290_v41 = vld [vmem:[#allocation119_spill] sm:$0xff] }
 0x3a0   : > { %v1699_v32 = vmul.f32 %v7066_v31, %v9283_v10  ;;  %v1701_v58 = vmul.f32 %v7066_v31, %v9285_v54  ;;  %v7273_v0 = vadd.f32 %v1692_v49, %v7080_v24  ;;  %v1700_v8 = vmul.f32 %v7066_v31, %v9288_v60  ;;  %v9289_v33 = vld [vmem:[#allocation118_spill] sm:$0xff]  ;;  %v9292_v45 = vld [vmem:[#allocation121_spill] sm:$0xff]  ;;  %v3849_v49 = vld [vmem:[#allocation2 + $0xe5] sm:$0xff] }
 0x3a1   : > { %v7270_v42 = vpop.permute.xlu0 %3465  ;;  %v1932_v2 = vmul.f32 %v7248_v48, %v9289_v33  ;;  %v7280_v10 = vadd.f32 %v1695_v62, %v7089_v17  ;;  %v1931_v54 = vmul.f32 %v7248_v48, %v9290_v41  ;;  %v1933_v24 = vmul.f32 %v7248_v48, %v9292_v45  ;;  %v9293_v62 = vld [vmem:[#allocation122_spill] sm:$0xff]  ;;  %v9300_v41 = vld [vmem:[#allocation127_spill] sm:$0xff] }
 0x3a2   : > { %v7268_v36 = vpop.permute.xlu1 %3470  ;;  %9287 = vst [vmem:[#allocation34_spill] sm:$0xff] %v7270_v42  ;;  %3977 = vperm.xlu0 %5437, %v3846_v11   ;;  %v7289_v31 = vadd.f32 %v1694_v7, %v7102_v26  ;;  %v7295_v17 = vadd.f32 %v1696_v19, %v7118_v50  ;;  %v1936_v11 = vmul.f32 %v7248_v48, %v9293_v62  ;;  %v9294_v26 = vld [vmem:[#allocation123_spill] sm:$0xff]  ;;  %v9299_v33 = vld [vmem:[#allocation126_spill] sm:$0xff] }
 0x3a3   : > { %9286 = vst [vmem:[#allocation33_spill] sm:$0xff] %v7268_v36  ;;  %3982 = vperm.xlu1 %5438, %v3847_v18   ;;  %v9291_v36 = vld [vmem:[#allocation120_spill] sm:$0xff]  ;;  %v7292_v18 = vadd.f32 %v1697_v30, %v7109_v23  ;;  %v7300_v60 = vadd.f32 %v1699_v32, %v7121_v16  ;;  %v7306_v45 = vadd.f32 %v1701_v58, %v7129_v15  ;;  %v9298_v58 = vld [vmem:[#allocation125_spill] sm:$0xff] }
 0x3a4   : > { %v1934_v42 = vmul.f32 %v7248_v48, %v9291_v36  ;;  %v7303_v36 = vadd.f32 %v1698_v35, %v7124_v29  ;;  %v1935_v7 = vmul.f32 %v7248_v48, %v9294_v26  ;;  %v7315_v50 = vadd.f32 %v1700_v8, %v7132_v53  ;;  %v9297_v16 = vld [vmem:[#allocation124_spill] sm:$0xff]  ;;  %v3851_v8 = vld [vmem:[#allocation2 + $0xf5] sm:$0xff] }
 0x3a5   : > { %v7312_v30 = vpop.permute.xlu0 %3475  ;;  %v7318_v19 = vadd.f32 %v1932_v2, %v7135_v38  ;;  %v1938_v29 = vmul.f32 %v7248_v48, %v9297_v16  ;;  %v7323_v15 = vadd.f32 %v1931_v54, %v7144_v55  ;;  %v7329_v35 = vadd.f32 %v1933_v24, %v7152_v59  ;;  %v3850_v38 = vld [vmem:[#allocation2 + $0xed] sm:$0xff] }
 0x3a6   : > { %v7310_v23 = vpop.permute.xlu1 %3480  ;;  %9296 = vst [vmem:[#allocation36_spill] sm:$0xff] %v7312_v30  ;;  %3987 = vperm.xlu0 %5437, %v3848_v13   ;;  %v7326_v32 = vadd.f32 %v1934_v42, %v7147_v20  ;;  %v1937_v53 = vmul.f32 %v7248_v48, %v9298_v58  ;;  %v7334_v2 = vadd.f32 %v1936_v11, %v7155_v37  ;;  %v9301_v54 = vld [vmem:[#allocation128_spill] sm:$0xff]  ;;  %v9302_v42 = vld [vmem:[#allocation129_spill] sm:$0xff]  ;;  %v9304_v37 = vld [vmem:[#allocation131_spill] sm:$0xff] }
 0x3a7   : > { %9295 = vst [vmem:[#allocation35_spill] sm:$0xff] %v7310_v23  ;;  %3992 = vperm.xlu1 %5438, %v3849_v49   ;;  %v1940_v13 = vmul.f32 %v7248_v48, %v9299_v33  ;;  %v1939_v55 = vmul.f32 %v7248_v48, %v9300_v41  ;;  %v1942_v20 = vmul.f32 %v7248_v48, %v9301_v54  ;;  %v9303_v49 = vld [vmem:[#allocation130_spill] sm:$0xff]  ;;  %v9305_v33 = vld [vmem:[#allocation132_spill] sm:$0xff] }
 0x3a8   : > { %v7343_v59 = vadd.f32 %v1935_v7, %v7158_v14  ;;  %v1941_v24 = vmul.f32 %v7248_v48, %v9302_v42  ;;  %v1944_v62 = vmul.f32 %v7248_v48, %v9303_v49  ;;  %v1943_v11 = vmul.f32 %v7248_v48, %v9304_v37  ;;  %v9306_v7 = vld [vmem:[#allocation133_spill] sm:$0xff]  ;;  %v9307_v42 = vld [vmem:[#allocation134_spill] sm:$0xff]  ;;  %v9308_v37 = vld [vmem:[#allocation135_spill] sm:$0xff] }
 0x3a9   : > { %v7353_v16 = vpop.permute.xlu0 %3485  ;;  %v7356_v58 = vadd.f32 %v1938_v29, %v7163_v61  ;;  %v1946_v14 = vmul.f32 %v7248_v48, %v9305_v33  ;;  %v1945_v41 = vmul.f32 %v7248_v48, %v9306_v7  ;;  %v7363_v54 = vadd.f32 %v1937_v53, %v7172_v28  ;;  %v9309_v23 = vld [vmem:[#allocation136_spill] sm:$0xff]  ;;  %v9310_v53 = vld [vmem:[#allocation137_spill] sm:$0xff] }
 0x3aa   : > { %v7351_v26 = vpop.permute.xlu1 %3490  ;;  %3997 = vperm.xlu0 %5437, %v3850_v38   ;;  %v1948_v49 = vmul.f32 %v7248_v48, %v9307_v42  ;;  %v1947_v30 = vmul.f32 %v7248_v48, %v9308_v37  ;;  %v1950_v61 = vmul.f32 %v7248_v48, %v9309_v23  ;;  %v3853_v29 = vld [vmem:[#allocation2 + $0x105] sm:$0xff]  ;;  %v7372_v33 = vadd.f32 %v1940_v13, %v7185_v44  ;;  %v9311_v44 = vld [vmem:[#allocation138_spill] sm:$0xff]  ;;  %v9316_v37 = vld [vmem:[#allocation141_spill] sm:$0xff] }
 0x3ab   : > { %4002 = vperm.xlu1 %5438, %v3851_v8   ;;  %v7375_v8 = vadd.f32 %v1939_v55, %v7192_v5  ;;  %v7378_v28 = vadd.f32 %v1942_v20, %v7201_v43  ;;  %v1949_v38 = vmul.f32 %v7248_v48, %v9310_v53  ;;  %v7383_v7 = vadd.f32 %v1941_v24, %v7204_v46  ;;  %v9314_v46 = vld [vmem:[#allocation139_spill] sm:$0xff] }
 0x3ac   : > { %v7386_v42 = vadd.f32 %v1944_v62, %v7207_v6  ;;  %v7389_v23 = vadd.f32 %v1943_v11, %v7212_v51  ;;  %v1952_v13 = vmul.f32 %v7248_v48, %v9311_v44  ;;  %v7398_v43 = vadd.f32 %v1946_v14, %v7215_v1  ;;  %v9315_v11 = vld [vmem:[#allocation140_spill] sm:$0xff]  ;;  %v4084_v14 = vld [vmem:[#allocation2 + $0x16] sm:$0xff] }
 0x3ad   : > { %v7395_v55 = vpop.permute.xlu0 %3596  ;;  %v7401_v20 = vadd.f32 %v1945_v41, %v7218_v22  ;;  %v1951_v6 = vmul.f32 %v7248_v48, %v9314_v46  ;;  %v7406_v51 = vadd.f32 %v1948_v49, %v7227_v25  ;;  %v7409_v24 = vadd.f32 %v1947_v30, %v7230_v63  ;;  %v4083_v22 = vld [vmem:[#allocation2 + $0xe] sm:$0xff]  ;;  %v9317_v49 = vld [vmem:[#allocation142_spill] sm:$0xff] }
 0x3ae   : > { %v7393_v5 = vpop.permute.xlu1 %3601  ;;  %9313 = vst [vmem:[#allocation38_spill] sm:$0xff] %v7395_v55  ;;  %4007 = vperm.xlu0 %5437, %v3852_v47   ;;  %v7412_v62 = vadd.f32 %v1950_v61, %v7235_v39  ;;  %v1954_v1 = vmul.f32 %v7248_v48, %v9315_v11  ;;  %v7417_v41 = vadd.f32 %v1949_v38, %v7238_v3  ;;  %v7428_v39 = vld [vmem:[%s8844_s2 + $0x6] ss:$0 sm:$0xff]  ;;  %v9320_v38 = vld [vmem:[#allocation145_spill] sm:$0xff]  ;;  %v9327_v55 = vld [vmem:[#allocation150_spill] sm:$0xff] }
 0x3af   : > { %9312 = vst [vmem:[#allocation37_spill] sm:$0xff] %v7393_v5  ;;  %4012 = vperm.xlu1 %5438, %v3853_v29   ;;  %v1953_v47 = vmul.f32 %v7248_v48, %v9316_v37  ;;  %v1956_v25 = vmul.f32 %v7248_v48, %v6146_v9  ;;  %v1955_v63 = vmul.f32 %v7248_v48, %v9317_v49  ;;  %v9318_v61 = vld [vmem:[#allocation143_spill] sm:$0xff]  ;;  %v9319_v29 = vld [vmem:[#allocation144_spill] sm:$0xff]  ;;  %v9323_v37 = vld [vmem:[#allocation146_spill] sm:$0xff] }
 0x3b0   : > { %v7431_v30 = vadd.f32 %v1952_v13, %v7241_v57  ;;  %v1958_v3 = vmul.f32 %v7248_v48, %v9318_v61  ;;  %v1957_v53 = vmul.f32 %v7248_v48, %v9319_v29  ;;  %v1960_v9 = vmul.f32 %v7248_v48, %v9320_v38  ;;  %v9324_v13 = vld [vmem:[#allocation147_spill] sm:$0xff]  ;;  %v9325_v29 = vld [vmem:[#allocation148_spill] sm:$0xff] }
 0x3b1   : > { %v7441_v46 = vpop.permute.xlu0 %3606  ;;  %v7444_v11 = vadd.f32 %v1951_v6, %v7251_v52  ;;  %v1959_v57 = vmul.f32 %v7248_v48, %v9323_v37  ;;  %v1962_v49 = vmul.f32 %v7248_v48, %v9324_v13  ;;  %v7451_v61 = vadd.f32 %v1954_v1, %v7260_v21  ;;  %v4086_v6 = vld [vmem:[#allocation2 + $0x26] sm:$0xff]  ;;  %v4085_v5 = vld [vmem:[#allocation2 + $0x1e] sm:$0xff] }
 0x3b2   : > { %v7439_v44 = vpop.permute.xlu1 %3611  ;;  %9322 = vst [vmem:[#allocation40_spill] sm:$0xff] %v7441_v46  ;;  %4118 = vperm.xlu0 %5437, %v4083_v22   ;;  %v1961_v38 = vmul.f32 %v7248_v48, %v9325_v29  ;;  %v2192_v52 = vmul.f32 %v7428_v39, %v9327_v55  ;;  %v7460_v37 = vadd.f32 %v1953_v47, %v7273_v0  ;;  %v9328_v1 = vld [vmem:[#allocation151_spill] sm:$0xff]  ;;  %v9329_v0 = vld [vmem:[#allocation152_spill] sm:$0xff] }
 0x3b3   : > { %9321 = vst [vmem:[#allocation39_spill] sm:$0xff] %v7439_v44  ;;  %4123 = vperm.xlu1 %5438, %v4084_v14   ;;  %v9326_v44 = vld [vmem:[#allocation149_spill] sm:$0xff]  ;;  %v7463_v14 = vadd.f32 %v1956_v25, %v7280_v10  ;;  %v7466_v21 = vadd.f32 %v1955_v63, %v7289_v31  ;;  %v2195_v48 = vmul.f32 %v7428_v39, %v9328_v1 }
 0x3b4   : > { %v2193_v46 = vmul.f32 %v7428_v39, %v9326_v44  ;;  %v7471_v22 = vadd.f32 %v1958_v3, %v7292_v18  ;;  %v7474_v44 = vadd.f32 %v1957_v53, %v7295_v17  ;;  %v7477_v55 = vadd.f32 %v1960_v9, %v7300_v60  ;;  %v9332_v18 = vld [vmem:[#allocation153_spill] sm:$0xff] }
 0x3b5   : > { %v2194_v47 = vmul.f32 %v7428_v39, %v9329_v0  ;;  %v7483_v25 = vpop.permute.xlu0 %3616  ;;  %v7486_v31 = vadd.f32 %v1959_v57, %v7303_v36  ;;  %v7489_v63 = vadd.f32 %v1962_v49, %v7306_v45  ;;  %v2197_v17 = vmul.f32 %v7428_v39, %v9332_v18  ;;  %v9333_v36 = vld [vmem:[#allocation154_spill] sm:$0xff]  ;;  %v4087_v57 = vld [vmem:[#allocation2 + $0x2e] sm:$0xff]  ;;  %v9334_v49 = vld [vmem:[#allocation155_spill] sm:$0xff] }
 0x3b6   : > { %v7481_v10 = vpop.permute.xlu1 %3621  ;;  %9331 = vst [vmem:[#allocation42_spill] sm:$0xff] %v7483_v25  ;;  %4128 = vperm.xlu0 %5437, %v4085_v5   ;;  %v7494_v60 = vadd.f32 %v1961_v38, %v7315_v50  ;;  %v7497_v3 = vadd.f32 %v2193_v46, %v7318_v19  ;;  %v7500_v53 = vadd.f32 %v2192_v52, %v7323_v15  ;;  %v4088_v45 = vld [vmem:[#allocation2 + $0x36] sm:$0xff]  ;;  %v9335_v50 = vld [vmem:[#allocation156_spill] sm:$0xff] }
 0x3b7   : > { %9330 = vst [vmem:[#allocation41_spill] sm:$0xff] %v7481_v10  ;;  %4133 = vperm.xlu1 %5438, %v4086_v6   ;;  %v2196_v9 = vmul.f32 %v7428_v39, %v9333_v36  ;;  %v7505_v13 = vadd.f32 %v2195_v48, %v7326_v32  ;;  %v2199_v5 = vmul.f32 %v7428_v39, %v9334_v49  ;;  %v9336_v38 = vld [vmem:[#allocation157_spill] sm:$0xff]  ;;  %v9337_v46 = vld [vmem:[#allocation158_spill] sm:$0xff]  ;;  %v9338_v6 = vld [vmem:[#allocation159_spill] sm:$0xff] }
 0x3b8   : > { %v2198_v29 = vmul.f32 %v7428_v39, %v9335_v50  ;;  %v2201_v19 = vmul.f32 %v7428_v39, %v9336_v38  ;;  %v7514_v15 = vadd.f32 %v2194_v47, %v7329_v35  ;;  %v2200_v52 = vmul.f32 %v7428_v39, %v9337_v46  ;;  %v9339_v32 = vld [vmem:[#allocation160_spill] sm:$0xff]  ;;  %v9340_v35 = vld [vmem:[#allocation161_spill] sm:$0xff]  ;;  %v9341_v49 = vld [vmem:[#allocation162_spill] sm:$0xff] }
 0x3b9   : > { %v2203_v1 = vmul.f32 %v7428_v39, %v9338_v6  ;;  %v2202_v48 = vmul.f32 %v7428_v39, %v9339_v32  ;;  %v7524_v18 = vpop.permute.xlu0 %3626  ;;  %v7530_v36 = vadd.f32 %v2197_v17, %v7334_v2  ;;  %v2205_v47 = vmul.f32 %v7428_v39, %v9340_v35  ;;  %v9342_v46 = vld [vmem:[#allocation163_spill] sm:$0xff]  ;;  %v9343_v32 = vld [vmem:[#allocation164_spill] sm:$0xff]  ;;  %v9344_v10 = vld [vmem:[#allocation165_spill] sm:$0xff] }
 0x3ba   : > { %v7522_v0 = vpop.permute.xlu1 %3631  ;;  %v2204_v50 = vmul.f32 %v7428_v39, %v9341_v49  ;;  %4138 = vperm.xlu0 %5437, %v4087_v57   ;;  %v7537_v38 = vadd.f32 %v2196_v9, %v7343_v59  ;;  %v2207_v6 = vmul.f32 %v7428_v39, %v9342_v46  ;;  %v2206_v25 = vmul.f32 %v7428_v39, %v9343_v32  ;;  %v4090_v17 = vld [vmem:[#allocation2 + $0x46] sm:$0xff]  ;;  %v9345_v9 = vld [vmem:[#allocation166_spill] sm:$0xff] }
 0x3bb   : > { %4143 = vperm.xlu1 %5438, %v4088_v45   ;;  %v2209_v2 = vmul.f32 %v7428_v39, %v9344_v10  ;;  %v7546_v35 = vadd.f32 %v2199_v5, %v7356_v58  ;;  %v7549_v45 = vadd.f32 %v2198_v29, %v7363_v54  ;;  %v7552_v59 = vadd.f32 %v2201_v19, %v7372_v33  ;;  %v9346_v58 = vld [vmem:[#allocation167_spill] sm:$0xff]  ;;  %v9351_v32 = vld [vmem:[#allocation170_spill] sm:$0xff] }
 0x3bc   : > { %v2208_v57 = vmul.f32 %v7428_v39, %v9345_v9  ;;  %v7557_v49 = vadd.f32 %v2200_v52, %v7375_v8  ;;  %v7560_v46 = vadd.f32 %v2203_v1, %v7378_v28  ;;  %v7563_v10 = vadd.f32 %v2202_v48, %v7383_v7  ;;  %v9349_v8 = vld [vmem:[#allocation168_spill] sm:$0xff]  ;;  %v9350_v48 = vld [vmem:[#allocation169_spill] sm:$0xff]  ;;  %v9355_v9 = vld [vmem:[#allocation174_spill] sm:$0xff] }
 0x3bd   : > { %v2211_v5 = vmul.f32 %v7428_v39, %v9346_v58  ;;  %v7569_v29 = vpop.permute.xlu0 %3636  ;;  %v7572_v33 = vadd.f32 %v2205_v47, %v7386_v42  ;;  %v7575_v19 = vadd.f32 %v2204_v50, %v7389_v23  ;;  %v2210_v28 = vmul.f32 %v7428_v39, %v9349_v8  ;;  %v4092_v47 = vld [vmem:[#allocation2 + $0x56] sm:$0xff]  ;;  %v4091_v23 = vld [vmem:[#allocation2 + $0x4e] sm:$0xff]  ;;  %v7611_v8 = vld [vmem:[%s8844_s2 + $0x7] ss:$0 sm:$0xff] }
 0x3be   : > { %v7567_v54 = vpop.permute.xlu1 %3641  ;;  %9348 = vst [vmem:[#allocation44_spill] sm:$0xff] %v7569_v29  ;;  %4148 = vperm.xlu0 %5437, %v4089_v12   ;;  %v7580_v7 = vadd.f32 %v2207_v6, %v7398_v43  ;;  %v7583_v52 = vadd.f32 %v2206_v25, %v7401_v20  ;;  %v7586_v1 = vadd.f32 %v2209_v2, %v7406_v51  ;;  %v9353_v6 = vld [vmem:[#allocation172_spill] sm:$0xff]  ;;  %v9354_v25 = vld [vmem:[#allocation173_spill] sm:$0xff] }
 0x3bf   : > { %9347 = vst [vmem:[#allocation43_spill] sm:$0xff] %v7567_v54  ;;  %4153 = vperm.xlu1 %5438, %v4090_v17   ;;  %v2213_v42 = vmul.f32 %v7428_v39, %v9350_v48  ;;  %v7591_v50 = vadd.f32 %v2208_v57, %v7409_v24  ;;  %v2212_v12 = vmul.f32 %v7428_v39, %v9351_v32  ;;  %v9352_v17 = vld [vmem:[#allocation171_spill] sm:$0xff] }
 0x3c0   : > { %v2215_v43 = vmul.f32 %v7428_v39, %v9352_v17  ;;  %v2214_v20 = vmul.f32 %v7428_v39, %v9353_v6  ;;  %v7600_v51 = vadd.f32 %v2211_v5, %v7412_v62  ;;  %v2217_v2 = vmul.f32 %v7428_v39, %v9354_v25  ;;  %v9356_v24 = vld [vmem:[#allocation175_spill] sm:$0xff]  ;;  %v9359_v5 = vld [vmem:[#allocation176_spill] sm:$0xff]  ;;  %v9360_v6 = vld [vmem:[#allocation177_spill] sm:$0xff] }
 0x3c1   : > { %v2216_v58 = vmul.f32 %v7428_v39, %v9355_v9  ;;  %v2219_v57 = vmul.f32 %v7428_v39, %v9356_v24  ;;  %v7615_v32 = vpop.permute.xlu0 %3646  ;;  %v7618_v62 = vadd.f32 %v2210_v28, %v7417_v41  ;;  %v2218_v17 = vmul.f32 %v7428_v39, %v9359_v5  ;;  %v9361_v24 = vld [vmem:[#allocation178_spill] sm:$0xff]  ;;  %v9362_v54 = vld [vmem:[#allocation179_spill] sm:$0xff] }
 0x3c2   : > { %v7613_v48 = vpop.permute.xlu1 %3651  ;;  %9358 = vst [vmem:[#allocation46_spill] sm:$0xff] %v7615_v32  ;;  %v2221_v25 = vmul.f32 %v7428_v39, %v9360_v6  ;;  %4158 = vperm.xlu0 %5437, %v4091_v23   ;;  %v7625_v9 = vadd.f32 %v2213_v42, %v7431_v30  ;;  %v2220_v29 = vmul.f32 %v7428_v39, %v9361_v24  ;;  %v4094_v28 = vld [vmem:[#allocation2 + $0x66] sm:$0xff]  ;;  %v9364_v42 = vld [vmem:[#allocation181_spill] sm:$0xff]  ;;  %v9371_v24 = vld [vmem:[#allocation186_spill] sm:$0xff] }
 0x3c3   : > { %9357 = vst [vmem:[#allocation45_spill] sm:$0xff] %v7613_v48  ;;  %4163 = vperm.xlu1 %5438, %v4092_v47   ;;  %v2223_v32 = vmul.f32 %v7428_v39, %v9362_v54  ;;  %v9363_v48 = vld [vmem:[#allocation180_spill] sm:$0xff]  ;;  %v7634_v5 = vadd.f32 %v2212_v12, %v7444_v11  ;;  %v7637_v47 = vadd.f32 %v2215_v43, %v7451_v61  ;;  %v9365_v11 = vld [vmem:[#allocation182_spill] sm:$0xff] }
 0x3c4   : > { %v2222_v41 = vmul.f32 %v7428_v39, %v9363_v48  ;;  %v7640_v30 = vadd.f32 %v2214_v20, %v7460_v37  ;;  %v2454_v23 = vmul.f32 %v7611_v8, %v9364_v42  ;;  %v7645_v6 = vadd.f32 %v2217_v2, %v7463_v14  ;;  %v9368_v14 = vld [vmem:[#allocation183_spill] sm:$0xff]  ;;  %v4096_v48 = vld [vmem:[#allocation2 + $0x76] sm:$0xff] }
 0x3c5   : > { %v7648_v54 = vadd.f32 %v2216_v58, %v7466_v21  ;;  %v7651_v39 = vadd.f32 %v2219_v57, %v7471_v22  ;;  %v2453_v12 = vmul.f32 %v7611_v8, %v9365_v11  ;;  %v7657_v43 = vpop.permute.xlu0 %3656  ;;  %v7660_v37 = vadd.f32 %v2218_v17, %v7474_v44  ;;  %v9369_v57 = vld [vmem:[#allocation184_spill] sm:$0xff] }
 0x3c6   : > { %v7655_v61 = vpop.permute.xlu1 %3661  ;;  %9367 = vst [vmem:[#allocation48_spill] sm:$0xff] %v7657_v43  ;;  %v7663_v20 = vadd.f32 %v2221_v25, %v7477_v55  ;;  %v2456_v21 = vmul.f32 %v7611_v8, %v9368_v14  ;;  %4168 = vperm.xlu0 %5437, %v4093_v56   ;;  %v7668_v22 = vadd.f32 %v2220_v29, %v7486_v31  ;;  %v4095_v55 = vld [vmem:[#allocation2 + $0x6e] sm:$0xff]  ;;  %v9372_v29 = vld [vmem:[#allocation187_spill] sm:$0xff] }
 0x3c7   : > { %9366 = vst [vmem:[#allocation47_spill] sm:$0xff] %v7655_v61  ;;  %4173 = vperm.xlu1 %5438, %v4094_v28   ;;  %v7671_v2 = vadd.f32 %v2223_v32, %v7489_v63  ;;  %v7674_v58 = vadd.f32 %v2222_v41, %v7494_v60  ;;  %v2455_v44 = vmul.f32 %v7611_v8, %v9369_v57  ;;  %v9370_v25 = vld [vmem:[#allocation185_spill] sm:$0xff]  ;;  %v9373_v32 = vld [vmem:[#allocation188_spill] sm:$0xff]  ;;  %v9382_v61 = vld [vmem:[#allocation195_spill] sm:$0xff] }
 0x3c8   : > { %v7679_v17 = vadd.f32 %v2454_v23, %v7497_v3  ;;  %v2458_v56 = vmul.f32 %v7611_v8, %v9370_v25  ;;  %v2457_v31 = vmul.f32 %v7611_v8, %v9371_v24  ;;  %v2460_v63 = vmul.f32 %v7611_v8, %v9372_v29  ;;  %v9374_v28 = vld [vmem:[#allocation189_spill] sm:$0xff]  ;;  %v9375_v3 = vld [vmem:[#allocation190_spill] sm:$0xff]  ;;  %v9378_v25 = vld [vmem:[#allocation191_spill] sm:$0xff] }
 0x3c9   : > { %v7688_v60 = vadd.f32 %v2453_v12, %v7500_v53  ;;  %v2459_v41 = vmul.f32 %v7611_v8, %v9373_v32  ;;  %v2462_v42 = vmul.f32 %v7611_v8, %v9374_v28  ;;  %v2461_v23 = vmul.f32 %v7611_v8, %v9375_v3  ;;  %v7698_v14 = vpop.permute.xlu0 %3666  ;;  %v9379_v12 = vld [vmem:[#allocation192_spill] sm:$0xff]  ;;  %v9380_v32 = vld [vmem:[#allocation193_spill] sm:$0xff]  ;;  %v9381_v3 = vld [vmem:[#allocation194_spill] sm:$0xff] }
 0x3ca   : > { %v7696_v11 = vpop.permute.xlu1 %3671  ;;  %9377 = vst [vmem:[#allocation50_spill] sm:$0xff] %v7698_v14  ;;  %v7701_v57 = vadd.f32 %v2456_v21, %v7505_v13  ;;  %v2464_v53 = vmul.f32 %v7611_v8, %v9378_v25  ;;  %v2463_v24 = vmul.f32 %v7611_v8, %v9379_v12  ;;  %4178 = vperm.xlu0 %5437, %v4095_v55   ;;  %v4098_v21 = vld [vmem:[#allocation2 + $0x86] sm:$0xff]  ;;  %v4097_v14 = vld [vmem:[#allocation2 + $0x7e] sm:$0xff] }
 0x3cb   : > { %9376 = vst [vmem:[#allocation49_spill] sm:$0xff] %v7696_v11  ;;  %4183 = vperm.xlu1 %5438, %v4096_v48   ;;  %v7708_v29 = vadd.f32 %v2455_v44, %v7514_v15  ;;  %v2466_v28 = vmul.f32 %v7611_v8, %v9380_v32  ;;  %v2465_v43 = vmul.f32 %v7611_v8, %v9381_v3  ;;  %v9383_v44 = vld [vmem:[#allocation196_spill] sm:$0xff] }
 0x3cc   : > { %v2468_v13 = vmul.f32 %v7611_v8, %v9382_v61  ;;  %v7717_v25 = vadd.f32 %v2458_v56, %v7530_v36  ;;  %v7720_v48 = vadd.f32 %v2457_v31, %v7537_v38  ;;  %v7723_v15 = vadd.f32 %v2460_v63, %v7546_v35  ;;  %v9384_v36 = vld [vmem:[#allocation197_spill] sm:$0xff]  ;;  %v9389_v3 = vld [vmem:[#allocation200_spill] sm:$0xff] }
 0x3cd   : > { %v2467_v55 = vmul.f32 %v7611_v8, %v9383_v44  ;;  %v7728_v12 = vadd.f32 %v2459_v41, %v7549_v45  ;;  %v7731_v32 = vadd.f32 %v2462_v42, %v7552_v59  ;;  %v7734_v61 = vadd.f32 %v2461_v23, %v7557_v49  ;;  %v7740_v31 = vpop.permute.xlu0 %3676  ;;  %v9387_v45 = vld [vmem:[#allocation198_spill] sm:$0xff]  ;;  %v9388_v23 = vld [vmem:[#allocation199_spill] sm:$0xff]  ;;  %v9393_v44 = vld [vmem:[#allocation204_spill] sm:$0xff] }
 0x3ce   : > { %v2470_v56 = vmul.f32 %v7611_v8, %v9384_v36  ;;  %v7738_v38 = vpop.permute.xlu1 %3681  ;;  %9386 = vst [vmem:[#allocation52_spill] sm:$0xff] %v7740_v31  ;;  %v7743_v35 = vadd.f32 %v2464_v53, %v7560_v46  ;;  %v7746_v63 = vadd.f32 %v2463_v24, %v7563_v10  ;;  %v2469_v59 = vmul.f32 %v7611_v8, %v9387_v45  ;;  %v4100_v53 = vld [vmem:[#allocation2 + $0x96] sm:$0xff]  ;;  %v4099_v10 = vld [vmem:[#allocation2 + $0x8e] sm:$0xff] }
 0x3cf   : > { %9385 = vst [vmem:[#allocation51_spill] sm:$0xff] %v7738_v38  ;;  %4193 = vperm.xlu1 %5438, %v4098_v21   ;;  %4188 = vperm.xlu0 %5437, %v4097_v14   ;;  %v7751_v49 = vadd.f32 %v2466_v28, %v7572_v33  ;;  %v7754_v41 = vadd.f32 %v2465_v43, %v7575_v19  ;;  %v9390_v21 = vld [vmem:[#allocation201_spill] sm:$0xff]  ;;  %v9391_v28 = vld [vmem:[#allocation202_spill] sm:$0xff]  ;;  %v9392_v43 = vld [vmem:[#allocation203_spill] sm:$0xff] }
 0x3d0   : > { %v7757_v42 = vadd.f32 %v2468_v13, %v7580_v7  ;;  %v2472_v46 = vmul.f32 %v7611_v8, %v9388_v23  ;;  %v7762_v24 = vadd.f32 %v2467_v55, %v7583_v52  ;;  %v2471_v14 = vmul.f32 %v7611_v8, %v9389_v3  ;;  %v9394_v52 = vld [vmem:[#allocation205_spill] sm:$0xff]  ;;  %v9401_v31 = vld [vmem:[#allocation210_spill] sm:$0xff] }
 0x3d1   : > { %v2474_v33 = vmul.f32 %v7611_v8, %v9390_v21  ;;  %v2473_v19 = vmul.f32 %v7611_v8, %v9391_v28  ;;  %v7771_v7 = vadd.f32 %v2470_v56, %v7586_v1  ;;  %v2476_v13 = vmul.f32 %v7611_v8, %v9392_v43  ;;  %v7781_v23 = vpop.permute.xlu0 %3686  ;;  %v9397_v21 = vld [vmem:[#allocation206_spill] sm:$0xff]  ;;  %v9398_v56 = vld [vmem:[#allocation207_spill] sm:$0xff] }
 0x3d2   : > { %v2475_v36 = vmul.f32 %v7611_v8, %v9393_v44  ;;  %v2478_v55 = vmul.f32 %v7611_v8, %v9394_v52  ;;  %v7779_v45 = vpop.permute.xlu1 %3691  ;;  %9396 = vst [vmem:[#allocation54_spill] sm:$0xff] %v7781_v23  ;;  %v7784_v3 = vadd.f32 %v2469_v59, %v7591_v50  ;;  %v2477_v1 = vmul.f32 %v7611_v8, %v9397_v21  ;;  %v9399_v44 = vld [vmem:[#allocation208_spill] sm:$0xff] }
 0x3d3   : > { %9395 = vst [vmem:[#allocation53_spill] sm:$0xff] %v7779_v45  ;;  %v2480_v28 = vmul.f32 %v7611_v8, %v9398_v56  ;;  %4203 = vperm.xlu1 %5438, %v4100_v53   ;;  %4198 = vperm.xlu0 %5437, %v4099_v10   ;;  %v7791_v43 = vadd.f32 %v2472_v46, %v7600_v51  ;;  %v9400_v45 = vld [vmem:[#allocation209_spill] sm:$0xff]  ;;  %v7802_v59 = vld [vmem:[%s8844_s2 + $0x8] ss:$0 sm:$0xff]  ;;  %v4101_v53 = vld [vmem:[#allocation2 + $0x9e] sm:$0xff] }
 0x3d4   : > { %v2479_v52 = vmul.f32 %v7611_v8, %v9399_v44  ;;  %v2482_v23 = vmul.f32 %v7611_v8, %v9400_v45  ;;  %v2481_v50 = vmul.f32 %v7611_v8, %v9401_v31  ;;  %v4102_v21 = vld [vmem:[#allocation2 + $0xa6] sm:$0xff]  ;;  %v7805_v10 = vadd.f32 %v2471_v14, %v7618_v62 }
 0x3d5   : > { %v7808_v51 = vadd.f32 %v2474_v33, %v7625_v9  ;;  %v7811_v46 = vadd.f32 %v2473_v19, %v7634_v5  ;;  %v9402_v45 = vld [vmem:[#allocation211_spill] sm:$0xff]  ;;  %v7816_v31 = vadd.f32 %v2476_v13, %v7637_v47  ;;  %v7819_v44 = vadd.f32 %v2475_v36, %v7640_v30  ;;  %v9403_v62 = vld [vmem:[#allocation212_spill] sm:$0xff]  ;;  %v7828_v33 = vpop.permute.xlu0 %3696  ;;  %v9406_v47 = vld [vmem:[#allocation213_spill] sm:$0xff] }
 0x3d6   : > { %v2484_v56 = vmul.f32 %v7611_v8, %v9402_v45  ;;  %v7822_v38 = vadd.f32 %v2478_v55, %v7645_v6  ;;  %v2483_v14 = vmul.f32 %v7611_v8, %v9403_v62  ;;  %v7826_v9 = vpop.permute.xlu1 %3701  ;;  %9405 = vst [vmem:[#allocation56_spill] sm:$0xff] %v7828_v33  ;;  %v7831_v5 = vadd.f32 %v2477_v1, %v7648_v54  ;;  %v9407_v36 = vld [vmem:[#allocation214_spill] sm:$0xff]  ;;  %v9412_v45 = vld [vmem:[#allocation219_spill] sm:$0xff]  ;;  %v9420_v33 = vld [vmem:[#allocation225_spill] sm:$0xff] }
 0x3d7   : > { %9404 = vst [vmem:[#allocation55_spill] sm:$0xff] %v7826_v9  ;;  %v7834_v19 = vadd.f32 %v2480_v28, %v7651_v39  ;;  %v2715_v30 = vmul.f32 %v7802_v59, %v9406_v47  ;;  %4213 = vperm.xlu1 %5438, %v4102_v21   ;;  %4208 = vperm.xlu0 %5437, %v4101_v53   ;;  %v4104_v55 = vld [vmem:[#allocation2 + $0xb6] sm:$0xff]  ;;  %v4103_v39 = vld [vmem:[#allocation2 + $0xae] sm:$0xff]  ;;  %v9408_v28 = vld [vmem:[#allocation215_spill] sm:$0xff] }
 0x3d8   : > { %v7839_v6 = vadd.f32 %v2479_v52, %v7660_v37  ;;  %v7842_v8 = vadd.f32 %v2482_v23, %v7663_v20  ;;  %v7845_v13 = vadd.f32 %v2481_v50, %v7668_v22  ;;  %v2714_v54 = vmul.f32 %v7802_v59, %v9407_v36  ;;  %v9409_v53 = vld [vmem:[#allocation216_spill] sm:$0xff]  ;;  %v9410_v52 = vld [vmem:[#allocation217_spill] sm:$0xff]  ;;  %v9411_v22 = vld [vmem:[#allocation218_spill] sm:$0xff] }
 0x3d9   : > { %v2516_v1 = vadd.f32 %v2484_v56, %v7671_v2  ;;  %v2717_v21 = vmul.f32 %v7802_v59, %v9408_v28  ;;  %v2716_v37 = vmul.f32 %v7802_v59, %v9409_v53  ;;  %v2719_v20 = vmul.f32 %v7802_v59, %v9410_v52  ;;  %v9413_v47 = vld [vmem:[#allocation220_spill] sm:$0xff]  ;;  %v7867_v36 = vpop.permute.xlu0 %3706  ;;  %v9416_v53 = vld [vmem:[#allocation221_spill] sm:$0xff]  ;;  %v4105_v9 = vld [vmem:[#allocation2 + $0xbe] sm:$0xff] }
 0x3da   : > { %v7857_v23 = vadd.f32 %v2483_v14, %v7674_v58  ;;  %v2718_v50 = vmul.f32 %v7802_v59, %v9411_v22  ;;  %v2721_v62 = vmul.f32 %v7802_v59, %v9412_v45  ;;  %v2720_v2 = vmul.f32 %v7802_v59, %v9413_v47  ;;  %v7865_v56 = vpop.permute.xlu1 %3711  ;;  %9415 = vst [vmem:[#allocation58_spill] sm:$0xff] %v7867_v36  ;;  %v9417_v14 = vld [vmem:[#allocation222_spill] sm:$0xff]  ;;  %v9418_v45 = vld [vmem:[#allocation223_spill] sm:$0xff] }
 0x3db   : > { %9414 = vst [vmem:[#allocation57_spill] sm:$0xff] %v7865_v56  ;;  %v7870_v28 = vadd.f32 %v2715_v30, %v7679_v17  ;;  %v2723_v58 = vmul.f32 %v7802_v59, %v9416_v53  ;;  %v2722_v52 = vmul.f32 %v7802_v59, %v9417_v14  ;;  %4223 = vperm.xlu1 %5438, %v4104_v55   ;;  %v9419_v56 = vld [vmem:[#allocation224_spill] sm:$0xff] }
 0x3dc   : > { %4218 = vperm.xlu0 %5437, %v4103_v39   ;;  %v7877_v22 = vadd.f32 %v2714_v54, %v7688_v60  ;;  %v2725_v47 = vmul.f32 %v7802_v59, %v9418_v45  ;;  %v2724_v36 = vmul.f32 %v7802_v59, %v9419_v56  ;;  %v2727_v17 = vmul.f32 %v7802_v59, %v9420_v33  ;;  %v4106_v30 = vld [vmem:[#allocation2 + $0xc6] sm:$0xff]  ;;  %v9421_v54 = vld [vmem:[#allocation226_spill] sm:$0xff]  ;;  %v9427_v45 = vld [vmem:[#allocation229_spill] sm:$0xff] }
 0x3dd   : > { %v7886_v53 = vadd.f32 %v2717_v21, %v7701_v57  ;;  %v7889_v55 = vadd.f32 %v2716_v37, %v7708_v29  ;;  %v7892_v60 = vadd.f32 %v2719_v20, %v7717_v25  ;;  %v2726_v39 = vmul.f32 %v7802_v59, %v9421_v54  ;;  %v9422_v57 = vld [vmem:[#allocation227_spill] sm:$0xff]  ;;  %v7909_v37 = vpop.permute.xlu0 %3716  ;;  %v9431_v54 = vld [vmem:[#allocation232_spill] sm:$0xff] }
 0x3de   : > { %v7897_v14 = vadd.f32 %v2718_v50, %v7720_v48  ;;  %v7900_v56 = vadd.f32 %v2721_v62, %v7723_v15  ;;  %v7903_v33 = vadd.f32 %v2720_v2, %v7728_v12  ;;  %v2729_v21 = vmul.f32 %v7802_v59, %v9422_v57  ;;  %v7907_v29 = vpop.permute.xlu1 %3721  ;;  %9424 = vst [vmem:[#allocation60_spill] sm:$0xff] %v7909_v37  ;;  %v9425_v48 = vld [vmem:[#allocation228_spill] sm:$0xff]  ;;  %v9426_v2 = vld [vmem:[#allocation243_spill] sm:$0xff] }
 0x3df   : > { %9423 = vst [vmem:[#allocation59_spill] sm:$0xff] %v7907_v29  ;;  %v7912_v25 = vadd.f32 %v2723_v58, %v7731_v32  ;;  %v7915_v20 = vadd.f32 %v2722_v52, %v7734_v61  ;;  %v2728_v15 = vmul.f32 %v7802_v59, %v9425_v48  ;;  %4233 = vperm.xlu1 %5438, %v4106_v30   ;;  %v4108_v58 = vld [vmem:[#allocation2 + $0xd6] sm:$0xff]  ;;  %v4107_v61 = vld [vmem:[#allocation2 + $0xce] sm:$0xff]  ;;  %v9432_v57 = vld [vmem:[#allocation275_spill] sm:$0xff] }
 0x3e0   : > { %4228 = vperm.xlu0 %5437, %v4105_v9   ;;  %v7920_v12 = vadd.f32 %v2725_v47, %v7743_v35  ;;  %v7923_v50 = vadd.f32 %v2724_v36, %v7746_v63  ;;  %v7926_v62 = vadd.f32 %v2727_v17, %v7751_v49  ;;  %v2745_v32 = vmul.f32 %v7802_v59, %v9426_v2  ;;  %v9428_v30 = vld [vmem:[#allocation230_spill] sm:$0xff]  ;;  %v9429_v47 = vld [vmem:[#allocation244_spill] sm:$0xff]  ;;  %v9430_v17 = vld [vmem:[#allocation231_spill] sm:$0xff] }
 0x3e1   : > { %v7931_v52 = vadd.f32 %v2726_v39, %v7754_v41  ;;  %v2731_v9 = vmul.f32 %v7802_v59, %v9427_v45  ;;  %v2730_v35 = vmul.f32 %v7802_v59, %v9428_v30  ;;  %v2744_v63 = vmul.f32 %v7802_v59, %v9429_v47  ;;  %v7942_v49 = vld [vmem:[%s8844_s2 + $0x9] ss:$0 sm:$0xff]  ;;  %v7955_v45 = vpop.permute.xlu0 %3726  ;;  %v9435_v47 = vld [vmem:[#allocation233_spill] sm:$0xff]  ;;  %v4109_v29 = vld [vmem:[#allocation2 + $0xde] sm:$0xff] }
 0x3e2   : > { %v7945_v36 = vadd.f32 %v2729_v21, %v7757_v42  ;;  %v2733_v41 = vmul.f32 %v7802_v59, %v9430_v17  ;;  %v2732_v39 = vmul.f32 %v7802_v59, %v9431_v54  ;;  %v3006_v48 = vmul.f32 %v7942_v49, %v9432_v57  ;;  %v7953_v2 = vpop.permute.xlu1 %3731  ;;  %9434 = vst [vmem:[#allocation62_spill] sm:$0xff] %v7955_v45  ;;  %v9436_v21 = vld [vmem:[#allocation276_spill] sm:$0xff]  ;;  %v9437_v54 = vld [vmem:[#allocation234_spill] sm:$0xff]  ;;  %v9438_v45 = vld [vmem:[#allocation235_spill] sm:$0xff] }
 0x3e3   : > { %9433 = vst [vmem:[#allocation61_spill] sm:$0xff] %v7953_v2  ;;  %v7958_v30 = vadd.f32 %v2728_v15, %v7762_v24  ;;  %v2735_v42 = vmul.f32 %v7802_v59, %v9435_v47  ;;  %v3005_v37 = vmul.f32 %v7942_v49, %v9436_v21  ;;  %v7967_v17 = vld [vmem:[%s8844_s2 + $0xa] ss:$0 sm:$0xff]  ;;  %4243 = vperm.xlu1 %5438, %v4108_v58  }
 0x3e4   : > { %4238 = vperm.xlu0 %5437, %v4107_v61   ;;  %v2734_v57 = vmul.f32 %v7802_v59, %v9437_v54  ;;  %v2737_v24 = vmul.f32 %v7802_v59, %v9438_v45  ;;  %v2777_v15 = vadd.f32 %v2745_v32, %v2516_v1  ;;  %v3267_v47 = vmul.f32 %v7967_v17, %v6667_v27  ;;  %v4110_v2 = vld [vmem:[#allocation2 + $0xe6] sm:$0xff]  ;;  %v4111_v45 = vld [vmem:[#allocation2 + $0xee] sm:$0xff] }
 0x3e5   : > { %v7976_v21 = vadd.f32 %v2731_v9, %v7771_v7  ;;  %v7979_v11 = vadd.f32 %v2730_v35, %v7784_v3  ;;  %v2776_v58 = vadd.f32 %v2744_v63, %v7857_v23  ;;  %v3266_v61 = vmul.f32 %v7967_v17, %v6669_v40  ;;  %v7987_v1 = vld [vmem:[%s8844_s2 + $0xb] ss:$0 sm:$0xff]  ;;  %v7999_v23 = vpop.permute.xlu0 %3736 }
 0x3e6   : > { %v7990_v27 = vadd.f32 %v2733_v41, %v7791_v43  ;;  %v7993_v32 = vadd.f32 %v2732_v39, %v7805_v10  ;;  %v3038_v7 = vadd.f32 %v3006_v48, %v2777_v15  ;;  %v3528_v3 = vmul.f32 %v7987_v1, %v7351_v26  ;;  %v7997_v9 = vpop.permute.xlu1 %3741  ;;  %9440 = vst [vmem:[#allocation64_spill] sm:$0xff] %v7999_v23  ;;  %v9443_v26 = vld [vmem:[#allocation236_spill] sm:$0xff]  ;;  %v4112_v48 = vld [vmem:[#allocation2 + $0xf6] sm:$0xff] }
 0x3e7   : > { %9439 = vst [vmem:[#allocation63_spill] sm:$0xff] %v7997_v9  ;;  %v8002_v40 = vadd.f32 %v2735_v42, %v7808_v51  ;;  %v3037_v35 = vadd.f32 %v3005_v37, %v2776_v58  ;;  %v3527_v63 = vmul.f32 %v7987_v1, %v7353_v16  ;;  %4253 = vperm.xlu1 %5438, %v4110_v2   ;;  %v9444_v51 = vld [vmem:[#allocation237_spill] sm:$0xff]  ;;  %v9445_v42 = vld [vmem:[#allocation238_spill] sm:$0xff]  ;;  %v9446_v2 = vld [vmem:[#allocation239_spill] sm:$0xff] }
 0x3e8   : > { %4248 = vperm.xlu0 %5437, %v4109_v29   ;;  %v8007_v43 = vadd.f32 %v2734_v57, %v7811_v46  ;;  %v8010_v10 = vadd.f32 %v2737_v24, %v7816_v31  ;;  %v2736_v41 = vmul.f32 %v7802_v59, %v9443_v26  ;;  %v3299_v39 = vadd.f32 %v3267_v47, %v3038_v7  ;;  %v9447_v54 = vld [vmem:[#allocation240_spill] sm:$0xff]  ;;  %v9448_v57 = vld [vmem:[#allocation241_spill] sm:$0xff]  ;;  %v9449_v15 = vld [vmem:[#allocation242_spill] sm:$0xff] }
 0x3e9   : > { %v2739_v37 = vmul.f32 %v7802_v59, %v9444_v51  ;;  %v2738_v16 = vmul.f32 %v7802_v59, %v9445_v42  ;;  %v2741_v29 = vmul.f32 %v7802_v59, %v9446_v2  ;;  %v3298_v46 = vadd.f32 %v3266_v61, %v3037_v35  ;;  %v8029_v7 = vld [vmem:[%s8844_s2 + $0xc] ss:$0 sm:$0xff]  ;;  %v3747_v51 = vpop.permute.xlu0 %3746  ;;  %v9450_v2 = vld [vmem:[#allocation245_spill] sm:$0xff] }
 0x3ea   : > { %9441 = vst [vmem:[#allocation65_spill] sm:$0xff] %v8007_v43  ;;  %9442 = vst [vmem:[#allocation66_spill] sm:$0xff] %v8010_v10  ;;  %v2740_v31 = vmul.f32 %v7802_v59, %v9447_v54  ;;  %v2743_v24 = vmul.f32 %v7802_v59, %v9448_v57  ;;  %v2742_v47 = vmul.f32 %v7802_v59, %v9449_v15  ;;  %v3752_v26 = vpop.permute.xlu1 %3751  ;;  %v9451_v57 = vld [vmem:[#allocation246_spill] sm:$0xff]  ;;  %v9453_v15 = vld [vmem:[#allocation248_spill] sm:$0xff] }
 0x3eb   : > { %v3560_v58 = vadd.f32 %v3528_v3, %v3299_v39  ;;  %v3559_v42 = vadd.f32 %v3527_v63, %v3298_v46  ;;  %v3789_v61 = vmul.f32 %v8029_v7, %v3752_v26  ;;  %v3788_v35 = vmul.f32 %v8029_v7, %v3747_v51  ;;  %4263 = vperm.xlu1 %5438, %v4112_v48   ;;  %v9452_v3 = vld [vmem:[#allocation247_spill] sm:$0xff]  ;;  %v9454_v46 = vld [vmem:[#allocation249_spill] sm:$0xff]  ;;  %v9455_v51 = vld [vmem:[#allocation250_spill] sm:$0xff] }
 0x3ec   : > { %4258 = vperm.xlu0 %5437, %v4111_v45   ;;  %v2976_v54 = vmul.f32 %v7942_v49, %v9450_v2  ;;  %v2975_v59 = vmul.f32 %v7942_v49, %v9451_v57  ;;  %v2978_v39 = vmul.f32 %v7942_v49, %v9452_v3  ;;  %v2977_v23 = vmul.f32 %v7942_v49, %v9453_v15  ;;  %v4114_v9 = vld [vmem:[#allocation2 + $0x106] sm:$0xff]  ;;  %v4113_v63 = vld [vmem:[#allocation2 + $0xfe] sm:$0xff] }
 0x3ed   : > { %v2980_v26 = vmul.f32 %v7942_v49, %v9454_v46  ;;  %v2979_v48 = vmul.f32 %v7942_v49, %v9455_v51  ;;  %v8045_v45 = vadd.f32 %v3789_v61, %v3560_v58  ;;  %v8047_v2 = vadd.f32 %v3788_v35, %v3559_v42  ;;  %v8063_v43 = vpop.permute.xlu0 %3857  ;;  %v9456_v42 = vld [vmem:[#allocation251_spill] sm:$0xff]  ;;  %v9465_v51 = vld [vmem:[#allocation258_spill] sm:$0xff] }
 0x3ee   : > { %v8050_v57 = vadd.f32 %v2736_v41, %v7819_v44  ;;  %v8053_v3 = vadd.f32 %v2739_v37, %v7822_v38  ;;  %v8056_v15 = vadd.f32 %v2738_v16, %v7831_v5  ;;  %v8059_v10 = vadd.f32 %v2741_v29, %v7834_v19  ;;  %v8061_v46 = vpop.permute.xlu1 %3862  ;;  %v9457_v41 = vld [vmem:[#allocation252_spill] sm:$0xff]  ;;  %v9462_v35 = vld [vmem:[#allocation283_spill] sm:$0xff] }
 0x3ef   : > { %v8066_v58 = vadd.f32 %v2740_v31, %v7839_v6  ;;  %v2982_v44 = vmul.f32 %v7942_v49, %v9456_v42  ;;  %v2981_v38 = vmul.f32 %v7942_v49, %v9457_v41  ;;  %4273 = vperm.xlu1 %5438, %v4114_v9   ;;  %v8073_v5 = vadd.f32 %v2743_v24, %v7842_v8  ;;  %v9466_v42 = vld [vmem:[#allocation259_spill] sm:$0xff] }
 0x3f0   : > { %4268 = vperm.xlu0 %5437, %v4113_v63   ;;  %v8076_v19 = vadd.f32 %v2742_v47, %v7845_v13  ;;  %v8079_v37 = vadd.f32 %v2976_v54, %v7870_v28  ;;  %v8082_v6 = vadd.f32 %v2975_v59, %v7877_v22  ;;  %v8085_v16 = vadd.f32 %v2978_v39, %v7886_v53  ;;  %v9458_v13 = vld [vmem:[#allocation253_spill] sm:$0xff]  ;;  %v9459_v28 = vld [vmem:[#allocation254_spill] sm:$0xff]  ;;  %v9460_v22 = vld [vmem:[#allocation255_spill] sm:$0xff] }
 0x3f1   : > { %v8088_v29 = vadd.f32 %v2977_v23, %v7889_v55  ;;  %v8091_v9 = vadd.f32 %v2980_v26, %v7892_v60  ;;  %v8094_v8 = vadd.f32 %v2979_v48, %v7897_v14  ;;  %v2984_v31 = vmul.f32 %v7942_v49, %v9458_v13  ;;  %v9461_v53 = vld [vmem:[#allocation256_spill] sm:$0xff]  ;;  %v8106_v23 = vpop.permute.xlu0 %3867  ;;  %v9464_v63 = vld [vmem:[#allocation257_spill] sm:$0xff] }
 0x3f2   : > { %v2983_v24 = vmul.f32 %v7942_v49, %v9459_v28  ;;  %v2986_v47 = vmul.f32 %v7942_v49, %v9460_v22  ;;  %v2985_v61 = vmul.f32 %v7942_v49, %v9461_v53  ;;  %v8104_v55 = vpop.permute.xlu1 %3872  ;;  %v3014_v60 = vadd.f32 %v2982_v44, %v7900_v56  ;;  %v9463_v59 = vld [vmem:[#allocation284_spill] sm:$0xff]  ;;  %v9468_v44 = vld [vmem:[#allocation261_spill] sm:$0xff] }
 0x3f3   : > { %v3013_v14 = vadd.f32 %v2981_v38, %v7903_v33  ;;  %v3243_v54 = vmul.f32 %v7967_v17, %v9462_v35  ;;  %v3242_v39 = vmul.f32 %v7967_v17, %v9463_v59  ;;  %v2988_v26 = vmul.f32 %v7942_v49, %v9464_v63  ;;  %v9467_v13 = vld [vmem:[#allocation260_spill] sm:$0xff]  ;;  %v9469_v38 = vld [vmem:[#allocation262_spill] sm:$0xff] }
 0x3f4   : > { %v2987_v48 = vmul.f32 %v7942_v49, %v9465_v51  ;;  %v2990_v41 = vmul.f32 %v7942_v49, %v9466_v42  ;;  %v2989_v56 = vmul.f32 %v7942_v49, %v9467_v13  ;;  %v2992_v33 = vmul.f32 %v7942_v49, %v9468_v44 }
 0x3f5   : > { %v2991_v28 = vmul.f32 %v7942_v49, %v9469_v38  ;;  %v3504_v22 = vmul.f32 %v7987_v1, %v6838_v4  ;;  %v3503_v53 = vmul.f32 %v7987_v1, %v6840_v34  ;;  %v8131_v35 = vadd.f32 %v2984_v31, %v7912_v25  ;;  %v8140_v13 = vpop.permute.xlu0 %3877 }
 0x3f6   : > { %v8134_v59 = vadd.f32 %v2983_v24, %v7915_v20  ;;  %v3018_v63 = vadd.f32 %v2986_v47, %v7920_v12  ;;  %v3017_v51 = vadd.f32 %v2985_v61, %v7923_v50  ;;  %v8138_v42 = vpop.permute.xlu1 %3882  ;;  %v3275_v44 = vadd.f32 %v3243_v54, %v3014_v60  ;;  %v9470_v61 = vld [vmem:[#allocation263_spill] sm:$0xff] }
 0x3f7   : > { %v3274_v38 = vadd.f32 %v3242_v39, %v3013_v14  ;;  %v3765_v4 = vmul.f32 %v8029_v7, %v7522_v0  ;;  %v3764_v34 = vmul.f32 %v8029_v7, %v7524_v18  ;;  %v8147_v25 = vadd.f32 %v2988_v26, %v7926_v62  ;;  %v9471_v62 = vld [vmem:[#allocation264_spill] sm:$0xff] }
 0x3f8   : > { %v8150_v20 = vadd.f32 %v2987_v48, %v7931_v52  ;;  %v3022_v12 = vadd.f32 %v2990_v41, %v7945_v36  ;;  %v3021_v50 = vadd.f32 %v2989_v56, %v7958_v30  ;;  %v8155_v31 = vadd.f32 %v2992_v33, %v7976_v21  ;;  %v9472_v52 = vld [vmem:[#allocation287_spill] sm:$0xff]  ;;  %v9473_v36 = vld [vmem:[#allocation288_spill] sm:$0xff]  ;;  %v9474_v56 = vld [vmem:[#allocation265_spill] sm:$0xff] }
 0x3f9   : > { %v8158_v24 = vadd.f32 %v2991_v28, %v7979_v11  ;;  %v3536_v0 = vadd.f32 %v3504_v22, %v3275_v44  ;;  %v3535_v47 = vadd.f32 %v3503_v53, %v3274_v38  ;;  %v2994_v18 = vmul.f32 %v7942_v49, %v9470_v61  ;;  %v8171_v21 = vld [vmem:[%s8844_s2 + $0xd] ss:$0 sm:$0xff]  ;;  %v3888_v54 = vpop.permute.xlu0 %3887  ;;  %v9475_v28 = vld [vmem:[#allocation266_spill] sm:$0xff]  ;;  %v9476_v53 = vld [vmem:[#allocation267_spill] sm:$0xff] }
 0x3fa   : > { %v2993_v60 = vmul.f32 %v7942_v49, %v9471_v62  ;;  %v3247_v14 = vmul.f32 %v7967_v17, %v9472_v52  ;;  %v3246_v30 = vmul.f32 %v7967_v17, %v9473_v36  ;;  %v3893_v11 = vpop.permute.xlu1 %3892  ;;  %v4025_v41 = vmul.f32 %v8171_v21, %v3888_v54  ;;  %v9477_v38 = vld [vmem:[#allocation268_spill] sm:$0xff]  ;;  %v9478_v62 = vld [vmem:[#allocation17_spill] sm:$0xff] }
 0x3fb   : > { %v3797_v39 = vadd.f32 %v3765_v4, %v3536_v0  ;;  %v3796_v26 = vadd.f32 %v3764_v34, %v3535_v47  ;;  %v4026_v48 = vmul.f32 %v8171_v21, %v3893_v11  ;;  %v2996_v33 = vmul.f32 %v7942_v49, %v9474_v56  ;;  %v9479_v34 = vld [vmem:[#allocation18_spill] sm:$0xff]  ;;  %v9482_v54 = vld [vmem:[#allocation269_spill] sm:$0xff] }
 0x3fc   : > { %v2995_v22 = vmul.f32 %v7942_v49, %v9475_v28  ;;  %v2998_v44 = vmul.f32 %v7942_v49, %v9476_v53  ;;  %v2997_v61 = vmul.f32 %v7942_v49, %v9477_v38  ;;  %v3508_v4 = vmul.f32 %v7987_v1, %v9478_v62  ;;  %v9483_v28 = vld [vmem:[#allocation270_spill] sm:$0xff] }
 0x3fd   : > { %v3507_v0 = vmul.f32 %v7987_v1, %v9479_v34  ;;  %v8187_v47 = vadd.f32 %v4026_v48, %v3797_v39  ;;  %v8189_v52 = vadd.f32 %v4025_v41, %v3796_v26  ;;  %v8192_v36 = vadd.f32 %v2994_v18, %v7990_v27  ;;  %v8203_v62 = vpop.permute.xlu0 %3897  ;;  %v9486_v26 = vld [vmem:[#allocation45_spill] sm:$0xff]  ;;  %v9487_v27 = vld [vmem:[#allocation46_spill] sm:$0xff] }
 0x3fe   : > { %v8195_v11 = vadd.f32 %v2993_v60, %v7993_v32  ;;  %v3000_v56 = vmul.f32 %v7942_v49, %v9482_v54  ;;  %v2999_v53 = vmul.f32 %v7942_v49, %v9483_v28  ;;  %v8201_v38 = vpop.permute.xlu1 %3902  ;;  %9485 = vst [vmem:[#allocation70_spill] sm:$0xff] %v8203_v62  ;;  %v3279_v39 = vadd.f32 %v3247_v14, %v3018_v63  ;;  %v9488_v60 = vld [vmem:[#allocation65_spill] sm:$0xff]  ;;  %v9489_v54 = vld [vmem:[#allocation66_spill] sm:$0xff]  ;;  %v9490_v63 = vld [vmem:[#allocation291_spill] sm:$0xff] }
 0x3ff   : > { %9480 = vst [vmem:[#allocation67_spill] sm:$0xff] %v8187_v47  ;;  %9481 = vst [vmem:[#allocation68_spill] sm:$0xff] %v8189_v52  ;;  %v3278_v48 = vadd.f32 %v3246_v30, %v3017_v51  ;;  %v3769_v41 = vmul.f32 %v8029_v7, %v9486_v26  ;;  %v3768_v18 = vmul.f32 %v8029_v7, %v9487_v27  ;;  %v9491_v14 = vld [vmem:[#allocation292_spill] sm:$0xff] }
 0x400   : > { %9484 = vst [vmem:[#allocation69_spill] sm:$0xff] %v8201_v38  ;;  %v8210_v32 = vadd.f32 %v2996_v33, %v8002_v40  ;;  %v8213_v34 = vadd.f32 %v2995_v22, %v9488_v60  ;;  %v8216_v28 = vadd.f32 %v2998_v44, %v9489_v54  ;;  %v8219_v52 = vadd.f32 %v2997_v61, %v8050_v57  ;;  %v9492_v22 = vld [vmem:[#allocation271_spill] sm:$0xff]  ;;  %v9493_v60 = vld [vmem:[#allocation272_spill] sm:$0xff] }
 0x401   : > { %v3251_v51 = vmul.f32 %v7967_v17, %v9490_v63  ;;  %v3250_v30 = vmul.f32 %v7967_v17, %v9491_v14  ;;  %v3540_v26 = vadd.f32 %v3508_v4, %v3279_v39  ;;  %v3539_v27 = vadd.f32 %v3507_v0, %v3278_v48  ;;  %v3908_v54 = vpop.permute.xlu0 %3907  ;;  %v9494_v0 = vld [vmem:[#allocation273_spill] sm:$0xff]  ;;  %v9497_v48 = vld [vmem:[#allocation22_spill] sm:$0xff] }
 0x402   : > { %v8226_v40 = vadd.f32 %v3000_v56, %v8053_v3  ;;  %v8229_v33 = vadd.f32 %v2999_v53, %v8056_v15  ;;  %v3002_v44 = vmul.f32 %v7942_v49, %v9492_v22  ;;  %v3001_v57 = vmul.f32 %v7942_v49, %v9493_v60  ;;  %v3913_v61 = vpop.permute.xlu1 %3912  ;;  %v9495_v56 = vld [vmem:[#allocation274_spill] sm:$0xff]  ;;  %v9496_v53 = vld [vmem:[#allocation21_spill] sm:$0xff] }
 0x403   : > { %v3801_v63 = vadd.f32 %v3769_v41, %v3540_v26  ;;  %v3800_v47 = vadd.f32 %v3768_v18, %v3539_v27  ;;  %v4030_v14 = vmul.f32 %v8171_v21, %v3913_v61  ;;  %v4029_v4 = vmul.f32 %v8171_v21, %v3908_v54  ;;  %v9500_v26 = vld [vmem:[#allocation293_spill] sm:$0xff]  ;;  %v9501_v61 = vld [vmem:[#allocation294_spill] sm:$0xff] }
 0x404   : > { %v3004_v3 = vmul.f32 %v7942_v49, %v9494_v0  ;;  %v3003_v15 = vmul.f32 %v7942_v49, %v9495_v56  ;;  %v3512_v39 = vmul.f32 %v7987_v1, %v9496_v53  ;;  %v3511_v22 = vmul.f32 %v7987_v1, %v9497_v48  ;;  %v9502_v0 = vld [vmem:[#allocation49_spill] sm:$0xff]  ;;  %v9503_v56 = vld [vmem:[#allocation50_spill] sm:$0xff] }
 0x405   : > { %v3283_v60 = vadd.f32 %v3251_v51, %v3022_v12  ;;  %v3282_v62 = vadd.f32 %v3250_v30, %v3021_v50  ;;  %v8245_v41 = vadd.f32 %v4030_v14, %v3801_v63  ;;  %v8247_v18 = vadd.f32 %v4029_v4, %v3800_v47  ;;  %v8259_v12 = vpop.permute.xlu0 %3917  ;;  %v9504_v51 = vld [vmem:[#allocation277_spill] sm:$0xff]  ;;  %v9505_v63 = vld [vmem:[#allocation278_spill] sm:$0xff]  ;;  %v9506_v4 = vld [vmem:[#allocation279_spill] sm:$0xff] }
 0x406   : > { %v3253_v27 = vmul.f32 %v7967_v17, %v9500_v26  ;;  %v3252_v54 = vmul.f32 %v7967_v17, %v9501_v61  ;;  %v3773_v49 = vmul.f32 %v8029_v7, %v9502_v0  ;;  %v3772_v53 = vmul.f32 %v8029_v7, %v9503_v56  ;;  %v8257_v38 = vpop.permute.xlu1 %3922  ;;  %v9507_v26 = vld [vmem:[#allocation280_spill] sm:$0xff] }
 0x407   : > { %9498 = vst [vmem:[#allocation71_spill] sm:$0xff] %v8245_v41  ;;  %9499 = vst [vmem:[#allocation72_spill] sm:$0xff] %v8247_v18  ;;  %v8262_v50 = vadd.f32 %v3002_v44, %v8059_v10  ;;  %v8265_v47 = vadd.f32 %v3001_v57, %v8066_v58  ;;  %v3237_v30 = vmul.f32 %v7967_v17, %v9504_v51  ;;  %v9508_v44 = vld [vmem:[#allocation23_spill] sm:$0xff]  ;;  %v9509_v51 = vld [vmem:[#allocation24_spill] sm:$0xff] }
 0x408   : > { %v3236_v14 = vmul.f32 %v7967_v17, %v9505_v63  ;;  %v3239_v48 = vmul.f32 %v7967_v17, %v9506_v4  ;;  %v3238_v61 = vmul.f32 %v7967_v17, %v9507_v26  ;;  %v3544_v0 = vadd.f32 %v3512_v39, %v3283_v60 }
 0x409   : > { %v3543_v56 = vadd.f32 %v3511_v22, %v3282_v62  ;;  %v8276_v10 = vadd.f32 %v3004_v3, %v8073_v5  ;;  %v8279_v58 = vadd.f32 %v3003_v15, %v8076_v19  ;;  %v3514_v57 = vmul.f32 %v7987_v1, %v9508_v44  ;;  %v3928_v62 = vpop.permute.xlu0 %3927  ;;  %v9510_v22 = vld [vmem:[#allocation51_spill] sm:$0xff]  ;;  %v9511_v3 = vld [vmem:[#allocation52_spill] sm:$0xff] }
 0x40a   : > { %v3513_v63 = vmul.f32 %v7987_v1, %v9509_v51  ;;  %v3285_v18 = vadd.f32 %v3253_v27, %v8155_v31  ;;  %v3284_v4 = vadd.f32 %v3252_v54, %v8158_v24  ;;  %v3805_v41 = vadd.f32 %v3773_v49, %v3544_v0  ;;  %v3933_v39 = vpop.permute.xlu1 %3932 }
 0x40b   : > { %v3804_v26 = vadd.f32 %v3772_v53, %v3543_v56  ;;  %v3775_v5 = vmul.f32 %v8029_v7, %v9510_v22  ;;  %v3774_v19 = vmul.f32 %v8029_v7, %v9511_v3  ;;  %v4034_v15 = vmul.f32 %v8171_v21, %v3933_v39  ;;  %v9513_v56 = vld [vmem:[#allocation281_spill] sm:$0xff]  ;;  %v9518_v39 = vld [vmem:[#allocation286_spill] sm:$0xff] }
 0x40c   : > { %v4033_v60 = vmul.f32 %v8171_v21, %v3928_v62  ;;  %v8294_v44 = vadd.f32 %v3237_v30, %v8079_v37  ;;  %v8297_v31 = vadd.f32 %v3236_v14, %v8082_v6  ;;  %v8300_v24 = vadd.f32 %v3239_v48, %v8085_v16  ;;  %v9514_v37 = vld [vmem:[#allocation282_spill] sm:$0xff]  ;;  %v9515_v6 = vld [vmem:[#allocation297_spill] sm:$0xff] }
 0x40d   : > { %v8303_v27 = vadd.f32 %v3238_v61, %v8088_v29  ;;  %v3546_v54 = vadd.f32 %v3514_v57, %v3285_v18  ;;  %v3545_v49 = vadd.f32 %v3513_v63, %v3284_v4  ;;  %v8305_v53 = vadd.f32 %v4034_v15, %v3805_v41  ;;  %v9516_v16 = vld [vmem:[#allocation298_spill] sm:$0xff]  ;;  %v3938_v61 = vpop.permute.xlu0 %3937  ;;  %v9517_v4 = vld [vmem:[#allocation285_spill] sm:$0xff] }
 0x40e   : > { %v8307_v0 = vadd.f32 %v4033_v60, %v3804_v26  ;;  %v3241_v51 = vmul.f32 %v7967_v17, %v9513_v56  ;;  %v3240_v30 = vmul.f32 %v7967_v17, %v9514_v37  ;;  %v3257_v14 = vmul.f32 %v7967_v17, %v9515_v6  ;;  %v3943_v29 = vpop.permute.xlu1 %3942  ;;  %v9519_v22 = vld [vmem:[#allocation289_spill] sm:$0xff]  ;;  %v9520_v15 = vld [vmem:[#allocation290_spill] sm:$0xff]  ;;  %v9521_v56 = vld [vmem:[#allocation27_spill] sm:$0xff] }
 0x40f   : > { %v3256_v48 = vmul.f32 %v7967_v17, %v9516_v16  ;;  %v3807_v18 = vadd.f32 %v3775_v5, %v3546_v54  ;;  %v3806_v57 = vadd.f32 %v3774_v19, %v3545_v49  ;;  %v4036_v41 = vmul.f32 %v8171_v21, %v3943_v29  ;;  %v9522_v19 = vld [vmem:[#allocation28_spill] sm:$0xff]  ;;  %v9525_v29 = vld [vmem:[#allocation301_spill] sm:$0xff] }
 0x410   : > { %9512 = vst [vmem:[#allocation73_spill] sm:$0xff] %v8307_v0  ;;  %v4035_v63 = vmul.f32 %v8171_v21, %v3938_v61  ;;  %v3245_v26 = vmul.f32 %v7967_v17, %v9517_v4  ;;  %v3244_v62 = vmul.f32 %v7967_v17, %v9518_v39  ;;  %v3249_v3 = vmul.f32 %v7967_v17, %v9519_v22  ;;  %v9526_v4 = vld [vmem:[#allocation302_spill] sm:$0xff] }
 0x411   : > { %v3248_v60 = vmul.f32 %v7967_v17, %v9520_v15  ;;  %v3518_v5 = vmul.f32 %v7987_v1, %v9521_v56  ;;  %v3517_v54 = vmul.f32 %v7987_v1, %v9522_v19  ;;  %v8331_v49 = vadd.f32 %v4036_v41, %v3807_v18  ;;  %v8347_v15 = vpop.permute.xlu0 %3947  ;;  %v9527_v41 = vld [vmem:[#allocation55_spill] sm:$0xff] }
 0x412   : > { %v8333_v37 = vadd.f32 %v4035_v63, %v3806_v57  ;;  %v8336_v6 = vadd.f32 %v3241_v51, %v8091_v9  ;;  %v8339_v16 = vadd.f32 %v3240_v30, %v8094_v8  ;;  %v3261_v61 = vmul.f32 %v7967_v17, %v9525_v29  ;;  %v8345_v22 = vpop.permute.xlu1 %3952  ;;  %v9528_v51 = vld [vmem:[#allocation56_spill] sm:$0xff] }
 0x413   : > { %9523 = vst [vmem:[#allocation74_spill] sm:$0xff] %v8331_v49  ;;  %v3260_v39 = vmul.f32 %v7967_v17, %v9526_v4  ;;  %v3289_v18 = vadd.f32 %v3257_v14, %v8210_v32  ;;  %v3288_v57 = vadd.f32 %v3256_v48, %v8213_v34  ;;  %v3779_v9 = vmul.f32 %v8029_v7, %v9527_v41  ;;  %v9529_v32 = vld [vmem:[#allocation295_spill] sm:$0xff]  ;;  %v9530_v14 = vld [vmem:[#allocation296_spill] sm:$0xff] }
 0x414   : > { %9524 = vst [vmem:[#allocation75_spill] sm:$0xff] %v8333_v37  ;;  %v3778_v8 = vmul.f32 %v8029_v7, %v9528_v51  ;;  %v8356_v30 = vadd.f32 %v3245_v26, %v8131_v35  ;;  %v8359_v63 = vadd.f32 %v3244_v62, %v8134_v59  ;;  %v8362_v56 = vadd.f32 %v3249_v3, %v8147_v25  ;;  %v9531_v41 = vld [vmem:[#allocation299_spill] sm:$0xff]  ;;  %v9532_v26 = vld [vmem:[#allocation300_spill] sm:$0xff] }
 0x415   : > { %v8365_v19 = vadd.f32 %v3248_v60, %v8150_v20  ;;  %v3255_v34 = vmul.f32 %v7967_v17, %v9529_v32  ;;  %v3254_v48 = vmul.f32 %v7967_v17, %v9530_v14  ;;  %v3550_v29 = vadd.f32 %v3518_v5, %v3289_v18  ;;  %v3958_v3 = vpop.permute.xlu0 %3957  ;;  %v9533_v5 = vld [vmem:[#allocation303_spill] sm:$0xff]  ;;  %v9534_v18 = vld [vmem:[#allocation304_spill] sm:$0xff] }
 0x416   : > { %v3549_v4 = vadd.f32 %v3517_v54, %v3288_v57  ;;  %v3259_v35 = vmul.f32 %v7967_v17, %v9531_v41  ;;  %v3258_v59 = vmul.f32 %v7967_v17, %v9532_v26  ;;  %v3293_v25 = vadd.f32 %v3261_v61, %v8226_v40  ;;  %v3963_v20 = vpop.permute.xlu1 %3962  ;;  %v9535_v41 = vld [vmem:[#allocation31_spill] sm:$0xff]  ;;  %v9536_v40 = vld [vmem:[#allocation32_spill] sm:$0xff]  ;;  %v9537_v61 = vld [vmem:[#allocation305_spill] sm:$0xff] }
 0x417   : > { %v3292_v62 = vadd.f32 %v3260_v39, %v8229_v33  ;;  %v3811_v60 = vadd.f32 %v3779_v9, %v3550_v29  ;;  %v4040_v32 = vmul.f32 %v8171_v21, %v3963_v20  ;;  %v4039_v14 = vmul.f32 %v8171_v21, %v3958_v3  ;;  %v9538_v9 = vld [vmem:[#allocation306_spill] sm:$0xff]  ;;  %v9541_v20 = vld [vmem:[#allocation9_spill] sm:$0xff] }
 0x418   : > { %v3810_v51 = vadd.f32 %v3778_v8, %v3549_v4  ;;  %v3263_v54 = vmul.f32 %v7967_v17, %v9533_v5  ;;  %v3262_v57 = vmul.f32 %v7967_v17, %v9534_v18  ;;  %v3522_v26 = vmul.f32 %v7987_v1, %v9535_v41  ;;  %v9542_v5 = vld [vmem:[#allocation10_spill] sm:$0xff]  ;;  %v9543_v41 = vld [vmem:[#allocation59_spill] sm:$0xff] }
 0x419   : > { %v3521_v33 = vmul.f32 %v7987_v1, %v9536_v40  ;;  %v3265_v39 = vmul.f32 %v7967_v17, %v9537_v61  ;;  %v3264_v8 = vmul.f32 %v7967_v17, %v9538_v9  ;;  %v8391_v29 = vadd.f32 %v4040_v32, %v3811_v60  ;;  %v9544_v40 = vld [vmem:[#allocation60_spill] sm:$0xff]  ;;  %v8405_v0 = vpop.permute.xlu0 %3967 }
 0x41a   : > { %v8393_v4 = vadd.f32 %v4039_v14, %v3810_v51  ;;  %v3498_v3 = vmul.f32 %v7987_v1, %v9541_v20  ;;  %v3497_v18 = vmul.f32 %v7987_v1, %v9542_v5  ;;  %v3783_v37 = vmul.f32 %v8029_v7, %v9543_v41  ;;  %v8403_v61 = vpop.permute.xlu1 %3972 }
 0x41b   : > { %9539 = vst [vmem:[#allocation76_spill] sm:$0xff] %v8391_v29  ;;  %v3782_v49 = vmul.f32 %v8029_v7, %v9544_v40  ;;  %v3287_v17 = vadd.f32 %v3255_v34, %v8192_v36  ;;  %v3286_v60 = vadd.f32 %v3254_v48, %v8195_v11  ;;  %v3291_v51 = vadd.f32 %v3259_v35, %v8216_v28  ;;  %v9546_v36 = vld [vmem:[#allocation34_spill] sm:$0xff]  ;;  %v9547_v35 = vld [vmem:[#allocation61_spill] sm:$0xff] }
 0x41c   : > { %9540 = vst [vmem:[#allocation77_spill] sm:$0xff] %v8393_v4  ;;  %v3290_v32 = vadd.f32 %v3258_v59, %v8219_v52  ;;  %v3295_v14 = vadd.f32 %v3263_v54, %v8262_v50  ;;  %v3294_v9 = vadd.f32 %v3262_v57, %v8265_v47  ;;  %v3554_v20 = vadd.f32 %v3522_v26, %v3293_v25  ;;  %v9545_v4 = vld [vmem:[#allocation33_spill] sm:$0xff]  ;;  %v9549_v54 = vld [vmem:[#allocation11_spill] sm:$0xff]  ;;  %v9550_v57 = vld [vmem:[#allocation12_spill] sm:$0xff] }
 0x41d   : > { %v3553_v5 = vadd.f32 %v3521_v33, %v3292_v62  ;;  %v3297_v41 = vadd.f32 %v3265_v39, %v8276_v10  ;;  %v3296_v40 = vadd.f32 %v3264_v8, %v8279_v58  ;;  %v3524_v29 = vmul.f32 %v7987_v1, %v9545_v4  ;;  %v3978_v48 = vpop.permute.xlu0 %3977  ;;  %v9548_v58 = vld [vmem:[#allocation62_spill] sm:$0xff] }
 0x41e   : > { %v3523_v11 = vmul.f32 %v7987_v1, %v9546_v36  ;;  %v8420_v28 = vadd.f32 %v3498_v3, %v8294_v44  ;;  %v8423_v52 = vadd.f32 %v3497_v18, %v8297_v31  ;;  %v3815_v50 = vadd.f32 %v3783_v37, %v3554_v20  ;;  %v3983_v34 = vpop.permute.xlu1 %3982  ;;  %v9551_v37 = vld [vmem:[#allocation13_spill] sm:$0xff]  ;;  %v9552_v26 = vld [vmem:[#allocation14_spill] sm:$0xff]  ;;  %v9553_v18 = vld [vmem:[#allocation15_spill] sm:$0xff] }
 0x41f   : > { %v3814_v47 = vadd.f32 %v3782_v49, %v3553_v5  ;;  %v3785_v10 = vmul.f32 %v8029_v7, %v9547_v35  ;;  %v3784_v59 = vmul.f32 %v8029_v7, %v9548_v58  ;;  %v4044_v25 = vmul.f32 %v8171_v21, %v3983_v34  ;;  %v9554_v5 = vld [vmem:[#allocation16_spill] sm:$0xff]  ;;  %v9555_v34 = vld [vmem:[#allocation19_spill] sm:$0xff] }
 0x420   : > { %v4043_v62 = vmul.f32 %v8171_v21, %v3978_v48  ;;  %v3500_v44 = vmul.f32 %v7987_v1, %v9549_v54  ;;  %v3499_v31 = vmul.f32 %v7987_v1, %v9550_v57  ;;  %v3502_v49 = vmul.f32 %v7987_v1, %v9551_v37  ;;  %v9556_v35 = vld [vmem:[#allocation20_spill] sm:$0xff]  ;;  %v9558_v37 = vld [vmem:[#allocation26_spill] sm:$0xff] }
 0x421   : > { %v3501_v33 = vmul.f32 %v7987_v1, %v9552_v26  ;;  %v3556_v39 = vadd.f32 %v3524_v29, %v3295_v14  ;;  %v3555_v8 = vadd.f32 %v3523_v11, %v3294_v9  ;;  %v8439_v4 = vadd.f32 %v4044_v25, %v3815_v50  ;;  %v3988_v57 = vpop.permute.xlu0 %3987  ;;  %v9557_v25 = vld [vmem:[#allocation25_spill] sm:$0xff] }
 0x422   : > { %v8441_v3 = vadd.f32 %v4043_v62, %v3814_v47  ;;  %v3506_v20 = vmul.f32 %v7987_v1, %v9553_v18  ;;  %v3505_v36 = vmul.f32 %v7987_v1, %v9554_v5  ;;  %v3510_v48 = vmul.f32 %v7987_v1, %v9555_v34  ;;  %v3993_v54 = vpop.permute.xlu1 %3992  ;;  %v9559_v18 = vld [vmem:[#allocation29_spill] sm:$0xff]  ;;  %v9560_v34 = vld [vmem:[#allocation30_spill] sm:$0xff] }
 0x423   : > { %v3509_v58 = vmul.f32 %v7987_v1, %v9556_v35  ;;  %v3817_v29 = vadd.f32 %v3785_v10, %v3556_v39  ;;  %v3816_v14 = vadd.f32 %v3784_v59, %v3555_v8  ;;  %v4046_v9 = vmul.f32 %v8171_v21, %v3993_v54  ;;  %v9562_v8 = vld [vmem:[#allocation36_spill] sm:$0xff] }
 0x424   : > { %v4045_v11 = vmul.f32 %v8171_v21, %v3988_v57  ;;  %v3532_v50 = vadd.f32 %v3500_v44, %v8300_v24  ;;  %v3531_v47 = vadd.f32 %v3499_v31, %v8303_v27  ;;  %v3516_v62 = vmul.f32 %v7987_v1, %v9557_v25  ;;  %v9561_v44 = vld [vmem:[#allocation35_spill] sm:$0xff] }
 0x425   : > { %v3515_v26 = vmul.f32 %v7987_v1, %v9558_v37  ;;  %v3520_v5 = vmul.f32 %v7987_v1, %v9559_v18  ;;  %v3519_v10 = vmul.f32 %v7987_v1, %v9560_v34  ;;  %v8463_v59 = vadd.f32 %v4046_v9, %v3817_v29  ;;  %v8475_v57 = vpop.permute.xlu0 %3997  ;;  %v9566_v37 = vld [vmem:[#allocation40_spill] sm:$0xff] }
 0x426   : > { %v8465_v39 = vadd.f32 %v4045_v11, %v3816_v14  ;;  %v3534_v24 = vadd.f32 %v3502_v49, %v8336_v6  ;;  %v3533_v27 = vadd.f32 %v3501_v33, %v8339_v16  ;;  %v3526_v31 = vmul.f32 %v7987_v1, %v9561_v44  ;;  %v8473_v54 = vpop.permute.xlu1 %4002  ;;  %v9563_v49 = vld [vmem:[#allocation37_spill] sm:$0xff]  ;;  %v9564_v33 = vld [vmem:[#allocation38_spill] sm:$0xff]  ;;  %v9565_v11 = vld [vmem:[#allocation39_spill] sm:$0xff] }
 0x427   : > { %v3525_v35 = vmul.f32 %v7987_v1, %v9562_v8  ;;  %v3538_v25 = vadd.f32 %v3506_v20, %v8356_v30  ;;  %v3537_v29 = vadd.f32 %v3505_v36, %v8359_v63  ;;  %v3542_v14 = vadd.f32 %v3510_v48, %v8362_v56  ;;  %v9567_v36 = vld [vmem:[#allocation41_spill] sm:$0xff] }
 0x428   : > { %v3541_v6 = vadd.f32 %v3509_v58, %v8365_v19  ;;  %v3759_v16 = vmul.f32 %v8029_v7, %v9563_v49  ;;  %v3758_v9 = vmul.f32 %v8029_v7, %v9564_v33  ;;  %v3761_v1 = vmul.f32 %v8029_v7, %v9565_v11  ;;  %v9568_v58 = vld [vmem:[#allocation42_spill] sm:$0xff]  ;;  %v9572_v33 = vld [vmem:[#allocation48_spill] sm:$0xff] }
 0x429   : > { %v3760_v18 = vmul.f32 %v8029_v7, %v9566_v37  ;;  %v3548_v34 = vadd.f32 %v3516_v62, %v3287_v17  ;;  %v8489_v30 = vadd.f32 %v3515_v26, %v3286_v60  ;;  %v8491_v63 = vadd.f32 %v3520_v5, %v3291_v51  ;;  %v4008_v49 = vpop.permute.xlu0 %4007  ;;  %v8514_v5 = vld [vmem:[%s8844_s2 + $0xe] ss:$0 sm:$0xff] }
 0x42a   : > { %v8493_v56 = vadd.f32 %v3519_v10, %v3290_v32  ;;  %v8495_v19 = vadd.f32 %v3526_v31, %v3297_v41  ;;  %v8497_v20 = vadd.f32 %v3525_v35, %v3296_v40  ;;  %v3763_v48 = vmul.f32 %v8029_v7, %v9567_v36  ;;  %v4013_v8 = vpop.permute.xlu1 %4012  ;;  %v9569_v10 = vld [vmem:[#allocation43_spill] sm:$0xff]  ;;  %v9570_v31 = vld [vmem:[#allocation44_spill] sm:$0xff] }
 0x42b   : > { %v3762_v44 = vmul.f32 %v8029_v7, %v9568_v58  ;;  %v4020_v17 = vmul.f32 %v8171_v21, %v8061_v46  ;;  %v4019_v60 = vmul.f32 %v8171_v21, %v8063_v43  ;;  %v4050_v51 = vmul.f32 %v8171_v21, %v4013_v8  ;;  %v9573_v58 = vld [vmem:[#allocation53_spill] sm:$0xff] }
 0x42c   : > { %v4049_v32 = vmul.f32 %v8171_v21, %v4008_v49  ;;  %v3791_v41 = vadd.f32 %v3759_v16, %v8420_v28  ;;  %v3790_v40 = vadd.f32 %v3758_v9, %v8423_v52  ;;  %v3793_v62 = vadd.f32 %v3761_v1, %v3532_v50 }
 0x42d   : > { %v3792_v26 = vadd.f32 %v3760_v18, %v3531_v47  ;;  %v3767_v46 = vmul.f32 %v8029_v7, %v9569_v10  ;;  %v3766_v43 = vmul.f32 %v8029_v7, %v9570_v31  ;;  %v8521_v35 = vadd.f32 %v4050_v51, %v8045_v45  ;;  %v9571_v47 = vld [vmem:[#allocation47_spill] sm:$0xff]  ;;  %v4119_v1 = vpop.permute.xlu0 %4118 }
 0x42e   : > { %v8524_v28 = vadd.f32 %v4049_v32, %v8047_v2  ;;  %v3795_v52 = vadd.f32 %v3763_v48, %v3534_v24  ;;  %v3794_v50 = vadd.f32 %v3762_v44, %v3533_v27  ;;  %v3771_v16 = vmul.f32 %v8029_v7, %v9571_v47  ;;  %v4124_v11 = vpop.permute.xlu1 %4123  ;;  %v8543_v44 = vld [vmem:[%s8845_s3] ss:$0 sm:$0xff] }
 0x42f   : > { %v3770_v9 = vmul.f32 %v8029_v7, %v9572_v33  ;;  %v4052_v37 = vadd.f32 %v4020_v17, %v3791_v41  ;;  %v4051_v18 = vadd.f32 %v4019_v60, %v3790_v40  ;;  %v4281_v36 = vmul.f32 %v8514_v5, %v4124_v11 }
 0x430   : > { %v4280_v45 = vmul.f32 %v8514_v5, %v4119_v1  ;;  %v3777_v2 = vmul.f32 %v8029_v7, %v9573_v58  ;;  %v4022_v24 = vmul.f32 %v8171_v21, %v8104_v55  ;;  %v4021_v27 = vmul.f32 %v8171_v21, %v8106_v23  ;;  %v9574_v55 = vld [vmem:[#allocation54_spill] sm:$0xff] }
 0x431   : > { %v4024_v48 = vmul.f32 %v8171_v21, %v8138_v42  ;;  %v3799_v8 = vadd.f32 %v3767_v46, %v3538_v25  ;;  %v3798_v49 = vadd.f32 %v3766_v43, %v3537_v29  ;;  %v4313_v17 = vadd.f32 %v4281_v36, %v4052_v37  ;;  %v4129_v40 = vpop.permute.xlu0 %4128 }
 0x432   : > { %v4312_v60 = vadd.f32 %v4280_v45, %v4051_v18  ;;  %v8546_v51 = vadd.f32 %v3771_v16, %v3542_v14  ;;  %v8548_v32 = vadd.f32 %v3770_v9, %v3541_v6  ;;  %v3776_v23 = vmul.f32 %v8029_v7, %v9574_v55  ;;  %v4134_v41 = vpop.permute.xlu1 %4133  ;;  %v9575_v18 = vld [vmem:[#allocation69_spill] sm:$0xff] }
 0x433   : > { %v4023_v42 = vmul.f32 %v8171_v21, %v8140_v13  ;;  %v4352_v10 = vadd.f32 %v8543_v44, %v4313_v17  ;;  %v4283_v29 = vmul.f32 %v8514_v5, %v4134_v41  ;;  %v4282_v46 = vmul.f32 %v8514_v5, %v4129_v40 }
 0x434   : > { %v4351_v25 = vadd.f32 %v8543_v44, %v4312_v60  ;;  %v8558_v14 = vadd.f32 %v3777_v2, %v3548_v34  ;;  %v4054_v6 = vadd.f32 %v4022_v24, %v3793_v62  ;;  %v4053_v31 = vadd.f32 %v4021_v27, %v3792_v26  ;;  %v9576_v26 = vld [vmem:[#allocation70_spill] sm:$0xff] }
 0x435   : > { %v4056_v43 = vadd.f32 %v4024_v48, %v3795_v52  ;;  %vm4544_vm1 = vcmp.ge.f32.partialorder %v4352_v10, 0.0  ;;  %v4576_v47 = vmul.f32 0.1, %v4352_v10  ;;  %v4055_v13 = vadd.f32 %v4023_v42, %v3794_v50  ;;  %v4139_v37 = vpop.permute.xlu0 %4138 }
 0x436   : > { %v5168_v16 = vpack.c.bf16 %v4352_v10, %v4351_v25  ;;  %vm4543_vm2 = vcmp.ge.f32.partialorder %v4351_v25, 0.0  ;;  %v4575_v33 = vmul.f32 0.1, %v4351_v25  ;;  %v4315_v9 = vadd.f32 %v4283_v29, %v4054_v6  ;;  %v4144_v1 = vpop.permute.xlu1 %4143 }
 0x437   : > { %v4314_v11 = vadd.f32 %v4282_v46, %v4053_v31  ;;  %v4028_v36 = vmul.f32 %v8171_v21, %v9575_v18  ;;  %v4608_v45 = vsel %vm4544_vm1, %v4352_v10, %v4576_v47  ;;  %v4285_v34 = vmul.f32 %v8514_v5, %v4144_v1 }
 0x438   : > { %5169 = vst [vmem:[%s8564_s27] sm:$0xff] %v5168_v16   ;;  %v4284_v62 = vmul.f32 %v8514_v5, %v4139_v37  ;;  %v4027_v52 = vmul.f32 %v8171_v21, %v9576_v26  ;;  %v4607_v50 = vsel %vm4543_vm2, %v4351_v25, %v4575_v33  ;;  %v4354_v58 = vadd.f32 %v8543_v44, %v4315_v9  ;;  %v9577_v33 = vld [vmem:[#allocation67_spill] sm:$0xff] }
 0x439   : > { %v4353_v2 = vadd.f32 %v8543_v44, %v4314_v11  ;;  %v8574_v24 = vadd.f32 %v3776_v23, %v8489_v30  ;;  %v5248_v27 = vpack.c.bf16 %v4608_v45, %v4607_v50  ;;  %v4317_v48 = vadd.f32 %v4285_v34, %v4056_v43  ;;  %v4149_v41 = vpop.permute.xlu0 %4148  ;;  %v9579_v45 = vld [vmem:[#allocation57_spill] sm:$0xff] }
 0x43a   : > { %v4316_v17 = vadd.f32 %v4284_v62, %v4055_v13  ;;  %vm4546_vm3 = vcmp.ge.f32.partialorder %v4354_v58, 0.0  ;;  %v4578_v60 = vmul.f32 0.1, %v4354_v58  ;;  %v4154_v42 = vpop.permute.xlu1 %4153  ;;  %v4060_v25 = vadd.f32 %v4028_v36, %v3799_v8  ;;  %v9578_v8 = vld [vmem:[#allocation68_spill] sm:$0xff] }
 0x43b   : > { %v5173_v55 = vpack.c.bf16 %v4354_v58, %v4353_v2  ;;  %vm4545_vm4 = vcmp.ge.f32.partialorder %v4353_v2, 0.0  ;;  %5249 = vst [vmem:[%s8578_s13] sm:$0xff] %v5248_v27   ;;  %v4577_v40 = vmul.f32 0.1, %v4353_v2  ;;  %v4356_v10 = vadd.f32 %v8543_v44, %v4317_v48  ;;  %v9580_v48 = vld [vmem:[#allocation58_spill] sm:$0xff] }
 0x43c   : > { %v4355_v30 = vadd.f32 %v8543_v44, %v4316_v17  ;;  %v4287_v23 = vmul.f32 %v8514_v5, %v4154_v42  ;;  %v4059_v29 = vadd.f32 %v4027_v52, %v3798_v49  ;;  %v4610_v46 = vsel %vm4546_vm3, %v4354_v58, %v4578_v60 }
 0x43d   : > { %5325 = vst [vmem:[%s8564_s27 + $0x8] sm:$0xff] %v5173_v55   ;;  %v4286_v6 = vmul.f32 %v8514_v5, %v4149_v41  ;;  %v4609_v31 = vsel %vm4545_vm4, %v4353_v2, %v4577_v40  ;;  %vm4548_vm5 = vcmp.ge.f32.partialorder %v4356_v10, 0.0  ;;  %v4580_v43 = vmul.f32 0.1, %v4356_v10  ;;  %v4159_v1 = vpop.permute.xlu0 %4158 }
 0x43e   : > { %v5178_v47 = vpack.c.bf16 %v4356_v10, %v4355_v30  ;;  %v5253_v16 = vpack.c.bf16 %v4610_v46, %v4609_v31  ;;  %vm4547_vm6 = vcmp.ge.f32.partialorder %v4355_v30, 0.0  ;;  %v4579_v13 = vmul.f32 0.1, %v4355_v30  ;;  %v4164_v11 = vpop.permute.xlu1 %4163 }
 0x43f   : > { %v4319_v9 = vadd.f32 %v4287_v23, %v9577_v33  ;;  %v4612_v37 = vsel %vm4548_vm5, %v4356_v10, %v4580_v43  ;;  %v4318_v49 = vadd.f32 %v4286_v6, %v9578_v8  ;;  %v4289_v18 = vmul.f32 %v8514_v5, %v4164_v11 }
 0x440   : > { %5326 = vst [vmem:[%s8564_s27 + $0x10] sm:$0xff] %v5178_v47   ;;  %v4288_v36 = vmul.f32 %v8514_v5, %v4159_v1  ;;  %v3781_v34 = vmul.f32 %v8029_v7, %v9579_v45  ;;  %v4032_v62 = vmul.f32 %v8171_v21, %v8257_v38  ;;  %5340 = vst [vmem:[%s8578_s13 + $0x8] sm:$0xff] %v5253_v16   ;;  %v9582_v1 = vld [vmem:[#allocation72_spill] sm:$0xff] }
 0x441   : > { %v4611_v26 = vsel %vm4547_vm6, %v4355_v30, %v4579_v13  ;;  %v4358_v52 = vadd.f32 %v8543_v44, %v4319_v9  ;;  %v4357_v58 = vadd.f32 %v8543_v44, %v4318_v49  ;;  %v4321_v2 = vadd.f32 %v4289_v18, %v4060_v25  ;;  %v4169_v38 = vpop.permute.xlu0 %4168  ;;  %v9581_v9 = vld [vmem:[#allocation71_spill] sm:$0xff] }
 0x442   : > { %v5258_v50 = vpack.c.bf16 %v4612_v37, %v4611_v26  ;;  %v4320_v27 = vadd.f32 %v4288_v36, %v4059_v29  ;;  %v3780_v17 = vmul.f32 %v8029_v7, %v9580_v48  ;;  %v4031_v60 = vmul.f32 %v8171_v21, %v8259_v12  ;;  %v4174_v42 = vpop.permute.xlu1 %4173 }
 0x443   : > { %vm4550_vm7 = vcmp.ge.f32.partialorder %v4358_v52, 0.0  ;;  %v4582_v55 = vmul.f32 0.1, %v4358_v52  ;;  %v5183_v41 = vpack.c.bf16 %v4358_v52, %v4357_v58  ;;  %vm4549_vm8 = vcmp.ge.f32.partialorder %v4357_v58, 0.0 }
 0x444   : > { %5341 = vst [vmem:[%s8578_s13 + $0x10] sm:$0xff] %v5258_v50   ;;  %v4581_v40 = vmul.f32 0.1, %v4357_v58  ;;  %v4360_v10 = vadd.f32 %v8543_v44, %v4321_v2  ;;  %v4359_v23 = vadd.f32 %v8543_v44, %v4320_v27  ;;  %v4291_v25 = vmul.f32 %v8514_v5, %v4174_v42 }
 0x445   : > { %v4614_v30 = vsel %vm4550_vm7, %v4358_v52, %v4582_v55  ;;  %v4290_v29 = vmul.f32 %v8514_v5, %v4169_v38  ;;  %v4064_v46 = vadd.f32 %v4032_v62, %v8546_v51  ;;  %5327 = vst [vmem:[%s8564_s27 + $0x18] sm:$0xff] %v5183_v41   ;;  %v4179_v13 = vpop.permute.xlu0 %4178  ;;  %v4063_v51 = vadd.f32 %v4031_v60, %v8548_v32 }
 0x446   : > { %v4613_v12 = vsel %vm4549_vm8, %v4357_v58, %v4581_v40  ;;  %vm4552_vm9 = vcmp.ge.f32.partialorder %v4360_v10, 0.0  ;;  %v4584_v6 = vmul.f32 0.1, %v4360_v10  ;;  %v5188_v43 = vpack.c.bf16 %v4360_v10, %v4359_v23  ;;  %v4184_v16 = vpop.permute.xlu1 %4183  ;;  %v9583_v58 = vld [vmem:[#allocation63_spill] sm:$0xff] }
 0x447   : > { %v5263_v31 = vpack.c.bf16 %v4614_v30, %v4613_v12  ;;  %vm4551_vm10 = vcmp.ge.f32.partialorder %v4359_v23, 0.0  ;;  %v4583_v47 = vmul.f32 0.1, %v4359_v23  ;;  %v4323_v11 = vadd.f32 %v4291_v25, %v9581_v9 }
 0x448   : > { %v4616_v33 = vsel %vm4552_vm9, %v4360_v10, %v4584_v6  ;;  %v4322_v37 = vadd.f32 %v4290_v29, %v9582_v1  ;;  %v4293_v8 = vmul.f32 %v8514_v5, %v4184_v16  ;;  %v4038_v49 = vmul.f32 %v8171_v21, %v8345_v22  ;;  %5328 = vst [vmem:[%s8564_s27 + $0x20] sm:$0xff] %v5188_v43   ;;  %v9584_v6 = vld [vmem:[#allocation73_spill] sm:$0xff] }
 0x449   : > { %5342 = vst [vmem:[%s8578_s13 + $0x18] sm:$0xff] %v5263_v31   ;;  %v4615_v18 = vsel %vm4551_vm10, %v4359_v23, %v4583_v47  ;;  %v4292_v36 = vmul.f32 %v8514_v5, %v4179_v13  ;;  %v4362_v62 = vadd.f32 %v8543_v44, %v4323_v11  ;;  %v8621_v50 = vadd.f32 %v3781_v34, %v8491_v63  ;;  %v9585_v11 = vld [vmem:[#allocation74_spill] sm:$0xff] }
 0x44a   : > { %v5268_v45 = vpack.c.bf16 %v4616_v33, %v4615_v18  ;;  %v4361_v26 = vadd.f32 %v8543_v44, %v4322_v37  ;;  %v4325_v52 = vadd.f32 %v4293_v8, %v4064_v46  ;;  %v8624_v32 = vadd.f32 %v3780_v17, %v8493_v56  ;;  %v4194_v27 = vpop.permute.xlu1 %4193  ;;  %v4189_v48 = vpop.permute.xlu0 %4188  ;;  %v9586_v37 = vld [vmem:[#allocation75_spill] sm:$0xff] }
 0x44b   : > { %v8628_v22 = vmul.f32 %v8029_v7, %v9583_v58  ;;  %v4324_v2 = vadd.f32 %v4292_v36, %v4063_v51  ;;  %vm4554_vm11 = vcmp.ge.f32.partialorder %v4362_v62, 0.0  ;;  %v4586_v60 = vmul.f32 0.1, %v4362_v62 }
 0x44c   : > { %5343 = vst [vmem:[%s8578_s13 + $0x20] sm:$0xff] %v5268_v45   ;;  %v5193_v55 = vpack.c.bf16 %v4362_v62, %v4361_v26  ;;  %vm4553_vm12 = vcmp.ge.f32.partialorder %v4361_v26, 0.0  ;;  %v4585_v42 = vmul.f32 0.1, %v4361_v26  ;;  %v4364_v63 = vadd.f32 %v8543_v44, %v4325_v52 }
 0x44d   : > { %v4363_v34 = vadd.f32 %v8543_v44, %v4324_v2  ;;  %v4295_v56 = vmul.f32 %v8514_v5, %v4194_v27  ;;  %v4070_v17 = vadd.f32 %v4038_v49, %v8558_v14  ;;  %v4037_v7 = vmul.f32 %v8171_v21, %v8347_v15 }
 0x44e   : > { %v4618_v38 = vsel %vm4554_vm11, %v4362_v62, %v4586_v60  ;;  %5329 = vst [vmem:[%s8564_s27 + $0x28] sm:$0xff] %v5193_v55   ;;  %v4294_v41 = vmul.f32 %v8514_v5, %v4189_v48  ;;  %v4617_v40 = vsel %vm4553_vm12, %v4361_v26, %v4585_v42  ;;  %vm4556_vm13 = vcmp.ge.f32.partialorder %v4364_v63, 0.0  ;;  %v4204_v23 = vpop.permute.xlu1 %4203  ;;  %v4199_v25 = vpop.permute.xlu0 %4198 }
 0x44f   : > { %v4588_v10 = vmul.f32 0.1, %v4364_v63  ;;  %v5198_v30 = vpack.c.bf16 %v4364_v63, %v4363_v34  ;;  %v5273_v29 = vpack.c.bf16 %v4618_v38, %v4617_v40  ;;  %vm4555_vm14 = vcmp.ge.f32.partialorder %v4363_v34, 0.0  ;;  %v9587_v40 = vld [vmem:[#allocation64_spill] sm:$0xff] }
 0x450   : > { %v4587_v46 = vmul.f32 0.1, %v4363_v34  ;;  %v4327_v14 = vadd.f32 %v4295_v56, %v8305_v53  ;;  %v4326_v15 = vadd.f32 %v4294_v41, %v9584_v6  ;;  %v4297_v31 = vmul.f32 %v8514_v5, %v4204_v23 }
 0x451   : > { %v4620_v12 = vsel %vm4556_vm13, %v4364_v63, %v4588_v10  ;;  %5330 = vst [vmem:[%s8564_s27 + $0x30] sm:$0xff] %v5198_v30   ;;  %v4296_v43 = vmul.f32 %v8514_v5, %v4199_v25  ;;  %v4069_v47 = vadd.f32 %v4037_v7, %v8574_v24  ;;  %v4042_v16 = vmul.f32 %v8171_v21, %v8403_v61 }
 0x452   : > { %5344 = vst [vmem:[%s8578_s13 + $0x28] sm:$0xff] %v5273_v29   ;;  %v4619_v13 = vsel %vm4555_vm14, %v4363_v34, %v4587_v46  ;;  %v4366_v33 = vadd.f32 %v8543_v44, %v4327_v14  ;;  %v4365_v53 = vadd.f32 %v8543_v44, %v4326_v15  ;;  %v4329_v1 = vadd.f32 %v4297_v31, %v9585_v11  ;;  %v4214_v51 = vpop.permute.xlu1 %4213  ;;  %v4209_v49 = vpop.permute.xlu0 %4208  ;;  %v9588_v31 = vld [vmem:[#allocation76_spill] sm:$0xff] }
 0x453   : > { %v5278_v9 = vpack.c.bf16 %v4620_v12, %v4619_v13  ;;  %v4328_v8 = vadd.f32 %v4296_v43, %v9586_v37  ;;  %v4299_v24 = vmul.f32 %v8514_v5, %v4214_v51  ;;  %v4298_v61 = vmul.f32 %v8514_v5, %v4209_v49 }
 0x454   : > { %vm4558_vm15 = vcmp.ge.f32.partialorder %v4366_v33, 0.0  ;;  %v4590_v18 = vmul.f32 0.1, %v4366_v33  ;;  %v5203_v36 = vpack.c.bf16 %v4366_v33, %v4365_v53  ;;  %vm4557_vm0 = vcmp.ge.f32.partialorder %v4365_v53, 0.0 }
 0x455   : > { %5345 = vst [vmem:[%s8578_s13 + $0x30] sm:$0xff] %v5278_v9   ;;  %v4589_v45 = vmul.f32 0.1, %v4365_v53  ;;  %v4368_v62 = vadd.f32 %v8543_v44, %v4329_v1  ;;  %v4367_v52 = vadd.f32 %v8543_v44, %v4328_v8  ;;  %v4331_v58 = vadd.f32 %v4299_v24, %v4070_v17 }
 0x456   : > { %v4622_v26 = vsel %vm4558_vm15, %v4366_v33, %v4590_v18  ;;  %v4330_v2 = vadd.f32 %v4298_v61, %v4069_v47  ;;  %v4041_v27 = vmul.f32 %v8171_v21, %v8405_v0  ;;  %5331 = vst [vmem:[%s8564_s27 + $0x38] sm:$0xff] %v5203_v36   ;;  %v4224_v55 = vpop.permute.xlu1 %4223  ;;  %v5439_v0 = vld [vmem:[%s8844_s2 + $0xc] ss:$0 sm:$0xff]  ;;  %v4074_v30 = vadd.f32 %v4042_v16, %v8621_v50  ;;  %v9589_v47 = vld [vmem:[#allocation77_spill] sm:$0xff] }
 0x457   : > { %v4621_v48 = vsel %vm4557_vm0, %v4365_v53, %v4589_v45  ;;  %vm4560_vm1 = vcmp.ge.f32.partialorder %v4368_v62, 0.0  ;;  %v4592_v60 = vmul.f32 0.1, %v4368_v62  ;;  %v4219_v42 = vpop.permute.xlu0 %4218  ;;  %v5208_v34 = vpack.c.bf16 %v4368_v62, %v4367_v52 }
 0x458   : > { %v5283_v63 = vpack.c.bf16 %v4622_v26, %v4621_v48  ;;  %vm4559_vm2 = vcmp.ge.f32.partialorder %v4367_v52, 0.0  ;;  %v4591_v56 = vmul.f32 0.1, %v4367_v52  ;;  %v4370_v38 = vadd.f32 %v8543_v44, %v4331_v58 }
 0x459   : > { %v4624_v7 = vsel %vm4560_vm1, %v4368_v62, %v4592_v60  ;;  %v4369_v17 = vadd.f32 %v8543_v44, %v4330_v2  ;;  %v4301_v41 = vmul.f32 %v8514_v5, %v4224_v55  ;;  %v3786_v10 = vmul.f32 %v5439_v0, %v9587_v40  ;;  %5332 = vst [vmem:[%s8564_s27 + $0x40] sm:$0xff] %v5208_v34  }
 0x45a   : > { %5346 = vst [vmem:[%s8578_s13 + $0x38] sm:$0xff] %v5283_v63   ;;  %v4623_v23 = vsel %vm4559_vm2, %v4367_v52, %v4591_v56  ;;  %v4300_v25 = vmul.f32 %v8514_v5, %v4219_v42  ;;  %vm4562_vm3 = vcmp.ge.f32.partialorder %v4370_v38, 0.0  ;;  %v4594_v46 = vmul.f32 0.1, %v4370_v38  ;;  %v4234_v12 = vpop.permute.xlu1 %4233 }
 0x45b   : > { %v5288_v29 = vpack.c.bf16 %v4624_v7, %v4623_v23  ;;  %v5213_v14 = vpack.c.bf16 %v4370_v38, %v4369_v17  ;;  %v4229_v6 = vpop.permute.xlu0 %4228  ;;  %vm4561_vm4 = vcmp.ge.f32.partialorder %v4369_v17, 0.0  ;;  %v4593_v15 = vmul.f32 0.1, %v4369_v17 }
 0x45c   : > { %v4333_v43 = vadd.f32 %v4301_v41, %v9588_v31  ;;  %v4332_v13 = vadd.f32 %v4300_v25, %v9589_v47  ;;  %v4073_v50 = vadd.f32 %v4041_v27, %v8624_v32  ;;  %v4626_v16 = vsel %vm4562_vm3, %v4370_v38, %v4594_v46 }
 0x45d   : > { %5347 = vst [vmem:[%s8578_s13 + $0x40] sm:$0xff] %v5288_v29   ;;  %5333 = vst [vmem:[%s8564_s27 + $0x48] sm:$0xff] %v5213_v14   ;;  %v4303_v33 = vmul.f32 %v8514_v5, %v4234_v12  ;;  %v4302_v9 = vmul.f32 %v8514_v5, %v4229_v6  ;;  %v3819_v53 = vadd.f32 %v8628_v22, %v8495_v19 }
 0x45e   : > { %v4625_v11 = vsel %vm4561_vm4, %v4369_v17, %v4593_v15  ;;  %v4372_v1 = vadd.f32 %v8543_v44, %v4333_v43  ;;  %v4371_v37 = vadd.f32 %v8543_v44, %v4332_v13  ;;  %v3818_v8 = vadd.f32 %v3786_v10, %v8497_v20  ;;  %v4244_v18 = vpop.permute.xlu1 %4243 }
 0x45f   : > { %v5293_v51 = vpack.c.bf16 %v4626_v16, %v4625_v11  ;;  %v4335_v32 = vadd.f32 %v4303_v33, %v4074_v30  ;;  %v4334_v49 = vadd.f32 %v4302_v9, %v4073_v50  ;;  %v4239_v24 = vpop.permute.xlu0 %4238  ;;  %v4305_v62 = vmul.f32 %v8514_v5, %v4244_v18 }
 0x460   : > { %vm4564_vm5 = vcmp.ge.f32.partialorder %v4372_v1, 0.0  ;;  %v4596_v61 = vmul.f32 0.1, %v4372_v1  ;;  %v5218_v36 = vpack.c.bf16 %v4372_v1, %v4371_v37  ;;  %vm4563_vm6 = vcmp.ge.f32.partialorder %v4371_v37, 0.0 }
 0x461   : > { %5348 = vst [vmem:[%s8578_s13 + $0x48] sm:$0xff] %v5293_v51   ;;  %v4595_v45 = vmul.f32 0.1, %v4371_v37  ;;  %v4374_v19 = vadd.f32 %v8543_v44, %v4335_v32  ;;  %v4373_v22 = vadd.f32 %v8543_v44, %v4334_v49  ;;  %v4048_v20 = vmul.f32 %v8171_v21, %v8473_v54 }
 0x462   : > { %v4047_v26 = vmul.f32 %v8171_v21, %v8475_v57  ;;  %v4628_v52 = vsel %vm4564_vm5, %v4372_v1, %v4596_v61  ;;  %5334 = vst [vmem:[%s8564_s27 + $0x50] sm:$0xff] %v5218_v36   ;;  %v4304_v58 = vmul.f32 %v8514_v5, %v4239_v24  ;;  %v4254_v60 = vpop.permute.xlu1 %4253  ;;  %v4337_v54 = vadd.f32 %v4305_v62, %v8439_v4 }
 0x463   : > { %v4627_v2 = vsel %vm4563_vm6, %v4371_v37, %v4595_v45  ;;  %vm4566_vm7 = vcmp.ge.f32.partialorder %v4374_v19, 0.0  ;;  %v4598_v27 = vmul.f32 0.1, %v4374_v19  ;;  %v5223_v48 = vpack.c.bf16 %v4374_v19, %v4373_v22  ;;  %v4249_v55 = vpop.permute.xlu0 %4248 }
 0x464   : > { %v5298_v42 = vpack.c.bf16 %v4628_v52, %v4627_v2  ;;  %vm4565_vm8 = vcmp.ge.f32.partialorder %v4373_v22, 0.0  ;;  %v4597_v63 = vmul.f32 0.1, %v4373_v22  ;;  %v4336_v21 = vadd.f32 %v4304_v58, %v8441_v3 }
 0x465   : > { %v4630_v34 = vsel %vm4566_vm7, %v4374_v19, %v4598_v27  ;;  %5335 = vst [vmem:[%s8564_s27 + $0x58] sm:$0xff] %v5223_v48   ;;  %v4307_v57 = vmul.f32 %v8514_v5, %v4254_v60  ;;  %v4306_v56 = vmul.f32 %v8514_v5, %v4249_v55  ;;  %v4080_v7 = vadd.f32 %v4048_v20, %v3819_v53 }
 0x466   : > { %v4079_v38 = vadd.f32 %v4047_v26, %v3818_v8  ;;  %5349 = vst [vmem:[%s8578_s13 + $0x50] sm:$0xff] %v5298_v42   ;;  %v4629_v17 = vsel %vm4565_vm8, %v4373_v22, %v4597_v63  ;;  %v4376_v41 = vadd.f32 %v8543_v44, %v4337_v54  ;;  %v4375_v40 = vadd.f32 %v8543_v44, %v4336_v21  ;;  %v4264_v3 = vpop.permute.xlu1 %4263 }
 0x467   : > { %v5303_v0 = vpack.c.bf16 %v4630_v34, %v4629_v17  ;;  %v4339_v4 = vadd.f32 %v4307_v57, %v8463_v59  ;;  %v4338_v10 = vadd.f32 %v4306_v56, %v8465_v39  ;;  %v4259_v30 = vpop.permute.xlu0 %4258  ;;  %v4309_v25 = vmul.f32 %v8514_v5, %v4264_v3 }
 0x468   : > { %vm4568_vm9 = vcmp.ge.f32.partialorder %v4376_v41, 0.0  ;;  %v4600_v23 = vmul.f32 0.1, %v4376_v41  ;;  %v4308_v29 = vmul.f32 %v8514_v5, %v4259_v30  ;;  %v5228_v46 = vpack.c.bf16 %v4376_v41, %v4375_v40 }
 0x469   : > { %5350 = vst [vmem:[%s8578_s13 + $0x58] sm:$0xff] %v5303_v0   ;;  %vm4567_vm10 = vcmp.ge.f32.partialorder %v4375_v40, 0.0  ;;  %v4599_v14 = vmul.f32 0.1, %v4375_v40  ;;  %v4378_v12 = vadd.f32 %v8543_v44, %v4339_v4  ;;  %v4377_v59 = vadd.f32 %v8543_v44, %v4338_v10 }
 0x46a   : > { %v4632_v6 = vsel %vm4568_vm9, %v4376_v41, %v4600_v23  ;;  %v4341_v15 = vadd.f32 %v4309_v25, %v4080_v7  ;;  %v4340_v39 = vadd.f32 %v4308_v29, %v4079_v38  ;;  %5336 = vst [vmem:[%s8564_s27 + $0x60] sm:$0xff] %v5228_v46   ;;  %v4274_v47 = vpop.permute.xlu1 %4273 }
 0x46b   : > { %v4631_v31 = vsel %vm4567_vm10, %v4375_v40, %v4599_v14  ;;  %vm4570_vm11 = vcmp.ge.f32.partialorder %v4378_v12, 0.0  ;;  %v4602_v43 = vmul.f32 0.1, %v4378_v12  ;;  %v4269_v13 = vpop.permute.xlu0 %4268  ;;  %v5233_v16 = vpack.c.bf16 %v4378_v12, %v4377_v59 }
 0x46c   : > { %v5308_v50 = vpack.c.bf16 %v4632_v6, %v4631_v31  ;;  %vm4569_vm12 = vcmp.ge.f32.partialorder %v4377_v59, 0.0  ;;  %v4601_v33 = vmul.f32 0.1, %v4377_v59  ;;  %v4380_v53 = vadd.f32 %v8543_v44, %v4341_v15 }
 0x46d   : > { %v4634_v9 = vsel %vm4570_vm11, %v4378_v12, %v4602_v43  ;;  %v4379_v11 = vadd.f32 %v8543_v44, %v4340_v39  ;;  %v4311_v1 = vmul.f32 %v8514_v5, %v4274_v47  ;;  %5337 = vst [vmem:[%s8564_s27 + $0x68] sm:$0xff] %v5233_v16   ;;  %v4310_v8 = vmul.f32 %v8514_v5, %v4269_v13 }
 0x46e   : > { %5351 = vst [vmem:[%s8578_s13 + $0x60] sm:$0xff] %v5308_v50   ;;  %v4633_v37 = vsel %vm4569_vm12, %v4377_v59, %v4601_v33  ;;  %vm4572_vm13 = vcmp.ge.f32.partialorder %v4380_v53, 0.0  ;;  %v4604_v32 = vmul.f32 0.1, %v4380_v53 }
 0x46f   : > { %v5313_v51 = vpack.c.bf16 %v4634_v9, %v4633_v37  ;;  %v5238_v49 = vpack.c.bf16 %v4380_v53, %v4379_v11  ;;  %vm4571_vm14 = vcmp.ge.f32.partialorder %v4379_v11, 0.0  ;;  %v4603_v18 = vmul.f32 0.1, %v4379_v11 }
 0x470   : > { %v4343_v24 = vadd.f32 %v4311_v1, %v8521_v35  ;;  %v4342_v61 = vadd.f32 %v4310_v8, %v8524_v28  ;;  %v4636_v36 = vsel %vm4572_vm13, %v4380_v53, %v4604_v32 }
 0x471   : > { %5352 = vst [vmem:[%s8578_s13 + $0x68] sm:$0xff] %v5313_v51   ;;  %5338 = vst [vmem:[%s8564_s27 + $0x70] sm:$0xff] %v5238_v49   ;;  %v4635_v45 = vsel %vm4571_vm14, %v4379_v11, %v4603_v18 }
 0x472   : > { %v4382_v5 = vadd.f32 %v8543_v44, %v4343_v24  ;;  %v4381_v19 = vadd.f32 %v8543_v44, %v4342_v61  ;;  %v5318_v22 = vpack.c.bf16 %v4636_v36, %v4635_v45 }
 0x474   : > { %vm4574_vm15 = vcmp.ge.f32.partialorder %v4382_v5, 0.0  ;;  %v4606_v62 = vmul.f32 0.1, %v4382_v5  ;;  %v5243_v20 = vpack.c.bf16 %v4382_v5, %v4381_v19  ;;  %vm4573_vm0 = vcmp.ge.f32.partialorder %v4381_v19, 0.0  ;;  %5353 = vst [vmem:[%s8578_s13 + $0x70] sm:$0xff] %v5318_v22  }
 0x475   : > { %v4605_v35 = vmul.f32 0.1, %v4381_v19 }
 0x476   : > { %v4638_v26 = vsel %vm4574_vm15, %v4382_v5, %v4606_v62  ;;  %5339 = vst [vmem:[%s8564_s27 + $0x78] sm:$0xff] %v5243_v20   ;;  %4811 = sbr.rel (!%p5652_p3) target bundleno = 1176 (0x498), region = 40 }
 0x477   : > { %v4637_v28 = vsel %vm4573_vm0, %v4381_v19, %v4605_v35 }
 0x478   : > { %v5323_v52 = vpack.c.bf16 %v4638_v26, %v4637_v28 }
 0x47a   : > { %5354 = vst [vmem:[%s8578_s13 + $0x78] sm:$0xff] %v5323_v52  }
 0x47b   : > { %s9611_s10 = smov (!%p4814_p2, %s4813_s10), 32 }
 0x47c   : > { %s8729_s14 = sshll.u32 %s9611_s10, 6 }
 0x47d   : > { %s4818_s16 = ssub.s32 2048, %s8729_s14 }
 0x47e   : > { %4819 = vsyncadd %s8848_s21, %s4818_s16  ;;  %p5083_p4 = scmp.ne.s32.totalorder %s8729_s14, 0  ;;  %s5356_s17 = smul.u32 500, %s5550_s22 }
 0x47f   : > { %s4826_s26 = sshll.u32 %s8564_s27, 4  ;;  %s5565_s0 = smov [#allocation3]   ;;  %s8738_s26 = int_to_ptr.vmem [resolvable:$true] %s4826_s26 }
 0x480   : > { %s4822_s15 = sadd.s32 %s5356_s17, %s5673_s12  ;;  %s5440_s21 = scalar_lea.vmem %s8738_s26, %s8729_s14 }
 0x481   : > { %s5084_s8 = sshll.u32 %s4822_s15, 6  ;;  %p5441_p5 = scmp.ne.s32.totalorder %s8738_s26, %s5440_s21 }
 0x482   : > { %s8743_s16 = scalar_lea.hbm %s8846_s4, %s5084_s8  ;;  %s5444_s1 = sshll.u32 %s5565_s0, 4  ;;  %s5445_s1 = int_to_ptr.vmem [resolvable:$false] %s5444_s1 }
 0x483   : > { %p5442_p6 = pnand %p5441_p5, %p5083_p4  ;;  %s5446_s27 = scalar_lea.vmem %s5445_s1, 4096 }
 0x484   : > { %p5447_p9 = scmp.lt.s32.totalorder %s8738_s26, %s5445_s1  ;;  %p5448_p10 = scmp.lt.s32.totalorder %s5446_s27, %s5440_s21 }
 0x485   : > { %p5443_p7 = pneg %p5442_p6 }
 0x486   : > { %p5449_p11 = por %p5448_p10, %p5447_p9 }
 0x488   : > { %p5450_p12 = pnand %p5449_p11, %p5443_p7 }
 0x48a   : > { %5453 = shalt.err (!%p5450_p12)
}
 0x48b   : > { %s5454_s9 = scalar_lea.hbm %s8743_s16, %s8729_s14  ;;  %s5458_s0 = scalar_lea.hbm %s8846_s4, 64000 }
 0x48c   : > { %p5455_p13 = scmp.ne.s32.totalorder %s8743_s16, %s5454_s9  ;;  %p5459_p2 = scmp.lt.s32.totalorder %s8743_s16, %s8846_s4 }
 0x48d   : > { %p5460_p5 = scmp.lt.s32.totalorder %s5458_s0, %s5454_s9 }
 0x48e   : > { %p5456_p0 = pnand %p5455_p13, %p5083_p4 }
 0x48f   : > { %p5461_p6 = por %p5460_p5, %p5459_p2 }
 0x490   : > { %p5457_p1 = pneg %p5456_p0 }
 0x492   : > { %p5462_p7 = pnand %p5461_p6, %p5457_p1 }
 0x494   : > { %5465 = shalt.err (!%p5462_p7)
}
 0x495   : > { %s5566_s21 = smov 64   ;;  %s5567_s10 = smov 4  }
 0x496   : > { %s9590_s27 = scalar_lea.sflag [#allocation4], %s7527_s30 }
 0x497   : > { %4832 = dma.vmem_to_hbm [thread:$0]  (%p5083_p4), %s8738_s26, %s8729_s14, %s8743_s16, %s9590_s27, %s5566_s21, %s5566_s21, %s5567_s10  }
 0x498 PF: > { %4835 = sbr.rel (!%p5652_p3) target bundleno = 1210 (0x4ba), region = 44  ;;  %s4837_s9 = ssub.s32 (%p5652_p3), 500, %s5673_s12 }
 0x499   : > { %p4838_p9 = scmp.lt.s32.totalorder (%p5652_p3), %s4837_s9, 32  ;;  %s9591_s0 = scalar_lea.sflag (%p5652_p3), [#allocation6], %s7527_s30 }
 0x49d   : > { %s9613_s9 = smov (!%p4838_p9, %s4837_s9), 32 }
 0x49e   : > { %s8773_s17 = sshll.u32 %s9613_s9, 6 }
 0x49f   : > { %s4842_s15 = ssub.s32 2048, %s8773_s17 }
 0x4a0   : > { %4843 = vsyncadd %s9591_s0, %s4842_s15  ;;  %p5089_p4 = scmp.ne.s32.totalorder %s8773_s17, 0  ;;  %s5357_s6 = smul.u32 500, %s5550_s22 }
 0x4a1   : > { %s4850_s14 = sshll.u32 %s8578_s13, 4  ;;  %s5568_s27 = smov [#allocation5]   ;;  %s8782_s14 = int_to_ptr.vmem [resolvable:$true] %s4850_s14 }
 0x4a2   : > { %s4846_s26 = sadd.s32 %s5357_s6, %s5673_s12  ;;  %s5466_s10 = scalar_lea.vmem %s8782_s14, %s8773_s17 }
 0x4a3   : > { %s5090_s16 = sshll.u32 %s4846_s26, 6  ;;  %p5467_p3 = scmp.ne.s32.totalorder %s8782_s14, %s5466_s10 }
 0x4a4   : > { %s8787_s21 = scalar_lea.hbm %s8847_s5, %s5090_s16  ;;  %s5470_s22 = sshll.u32 %s5568_s27, 4  ;;  %s5471_s22 = int_to_ptr.vmem [resolvable:$false] %s5470_s22 }
 0x4a5   : > { %p5468_p10 = pnand %p5467_p3, %p5089_p4  ;;  %s5472_s12 = scalar_lea.vmem %s5471_s22, 4096 }
 0x4a6   : > { %p5473_p12 = scmp.lt.s32.totalorder %s8782_s14, %s5471_s22  ;;  %p5474_p13 = scmp.lt.s32.totalorder %s5472_s12, %s5466_s10 }
 0x4a7   : > { %p5469_p11 = pneg %p5468_p10 }
 0x4a8   : > { %p5475_p0 = por %p5474_p13, %p5473_p12 }
 0x4aa   : > { %p5476_p1 = pnand %p5475_p0, %p5469_p11 }
 0x4ac   : > { %5479 = shalt.err (!%p5476_p1)
}
 0x4ad   : > { %s5480_s13 = scalar_lea.hbm %s8787_s21, %s8773_s17  ;;  %s5484_s0 = scalar_lea.hbm %s8847_s5, 64000 }
 0x4ae   : > { %p5481_p2 = scmp.ne.s32.totalorder %s8787_s21, %s5480_s13  ;;  %p5485_p7 = scmp.lt.s32.totalorder %s8787_s21, %s8847_s5 }
 0x4af   : > { %p5486_p9 = scmp.lt.s32.totalorder %s5484_s0, %s5480_s13 }
 0x4b0   : > { %p5482_p5 = pnand %p5481_p2, %p5089_p4 }
 0x4b1   : > { %p5487_p3 = por %p5486_p9, %p5485_p7 }
 0x4b2   : > { %p5483_p6 = pneg %p5482_p5 }
 0x4b4   : > { %p5488_p10 = pnand %p5487_p3, %p5483_p6 }
 0x4b6   : > { %5491 = shalt.err (!%p5488_p10)
}
 0x4b7   : > { %s5569_s16 = smov 64   ;;  %s5570_s8 = smov 4  }
 0x4b8   : > { %s9592_s1 = scalar_lea.sflag [#allocation6], %s7527_s30 }
 0x4b9   : > { %4856 = dma.vmem_to_hbm [thread:$0]  (%p5089_p4), %s8782_s14, %s8773_s17, %s8787_s21, %s9592_s1, %s5569_s16, %s5569_s16, %s5570_s8  }
 0x4ba PF: > { %p5367_p11 = scmp.ge.s32.totalorder %s5562_s25, 2  ;;  %s4865_s10 = sand.u32 1, %s5534_s18  }
 0x4bb   : > { %s4866_s27 = scalar_lea.sflag [#allocation4], %s4865_s10 }
 0x4bc   : > { %p5361_p12 = pnand %p5367_p11, %p5661_p8 }
 0x4be   : > { %p5362_p13 = pneg %p5361_p12 }
 0x4c0   : > { %5525 = dma.done.wait (%p5362_p13), %s4866_s27, 2048  }
 0x4c1   : > { %5527 = vsyncadd (%p5362_p13), %s4866_s27, 4294965248  ;;  %s4875_s22 = scalar_lea.sflag [#allocation6], %s4865_s10 }
 0x4c2   : > { %5529 = dma.done.wait (%p5362_p13), %s4875_s22, 2048  }
 0x4c3   : > { %5531 = vsyncadd (%p5362_p13), %s4875_s22, 4294965248  ;;  %s22_s25 = sadd.s32 1, %s5562_s25   ;;  %s9593_s18 = smov %s5538_s19 }
 0x4c4   : > { %p19_p0 = scmp.ge.s32.totalorder %s22_s25, 34   ;;  %s9594_s19 = smov %s5542_s20 }
 0x4c5   : > { %s9595_s20 = smov %s5670_s11  ;;  %s9596_s21 = smov %s5554_s23 }
 0x4c6   : > { %s9597_s22 = smov %s5558_s24  ;;  %s9598_s23 = smov %s9601_s28 }
 0x4c7   : > { %s9599_s24 = smov %s9605_s29  ;;  %21 = sbr.rel (!%p19_p0) target bundleno = 10 (0xa), region = 91 }
 0x4cc   :  { %4880 = vsyncpa [#allocation4], 1 }
 0x4cd   :  { %4882 = vsyncpa [#allocation4 + $0x1], 1 }
 0x4ce   :  { %4883 = vsyncpa [#allocation6], 1 }
 0x4cf   :  { %4885 = vsyncpa [#allocation6 + $0x1], 1 }

</bundles_post_ra>
